<compile_context>
chip_gen: v6e
topology: v6e:2x2x1
jax: 0.10.0
libtpu: 0.0.40
codegen_flags: <defaults>
</compile_context>

<pallas_src>
import jax
import jax.numpy as jnp
from jax import lax
from jax.experimental import pallas as pl
from jax.experimental.pallas import tpu as pltpu

H = W = 16          # spatial size
N = 2               # batch
C_IN = 1            # input channels
C1 = 32             # first conv output channels
C2 = 64             # second conv output channels
FEAT = 128          # feature_dim
HW = H * W          # 256 flattened spatial positions (r = y*W + x)
K9 = 9              # 3x3 taps

# flat lane shift of each tap, t = 3*(dy+1) + (dx+1), source index = r + shift
TAP_SHIFTS = tuple(W * dy + dx for dy in (-1, 0, 1) for dx in (-1, 0, 1))


# ---------------------------------------------------------------------------
# Fused kernel: conv1+ReLU -> conv2+ReLU -> global-avg-pool -> Linear -> ReLU
# (all intermediates stay in VMEM / vregs; one grid step per image group)
# ---------------------------------------------------------------------------
def lesion_encoder_kernel(x_ref, m_ref, w1_ref, b1_ref, w2_ref, b2_ref,
                          pool_ref, wl_ref, bl_ref, o_ref, col_ref):
    # x_ref   : (1, 1, L)      input pixels, images concatenated on lanes
    # m_ref   : (9, L)         per-tap boundary masks (host precomputed)
    # w1_ref  : (C1, 9)        conv1 weights, one column per tap
    # b1_ref  : (C1, 1)
    # w2_ref  : (C2, 9*C1)     conv2 weights, bf16, column = t*C1 + c1
    # b2_ref  : (C2, 1)
    # pool_ref: (L, nb)        per-image average-pool matrix (1/HW folded in)
    # wl_ref  : (FEAT, C2)
    # bl_ref  : (FEAT, 1)
    # o_ref   : (1, FEAT, nb)  features on sublanes, one column per image
    # col_ref : (9*C1, L)      bf16 im2col scratch for conv2 (fully overwritten)
    L = x_ref.shape[-1]
    x_row = x_ref[0]                                           # (1, L)

    # ---- conv1 + ReLU (Cin=1): 9 lane-dense VPU broadcast-FMA taps ----------
    acc1 = jnp.broadcast_to(b1_ref[...], (C1, L))              # init from bias
    for t, s in enumerate(TAP_SHIFTS):
        if s == 0:
            xs = x_row                                         # center tap: no roll/mask
        else:
            xs = pltpu.roll(x_row, (-s) % L, axis=1) * m_ref[t:t + 1, :]
        acc1 = acc1 + w1_ref[:, t:t + 1] * xs                  # (C1,1)*(1,L)
    y1 = jnp.maximum(acc1, 0.0)                                # (C1, L)

    # ---- conv2 + ReLU: bf16 im2col slab + ONE MXU matmul (K = 9*C1) ---------
    for t, s in enumerate(TAP_SHIFTS):
        if s == 0:
            slab = y1
        else:
            slab = pltpu.roll(y1, (-s) % L, axis=1) * m_ref[t:t + 1, :]
        col_ref[t * C1:(t + 1) * C1, :] = slab.astype(jnp.bfloat16)  # aligned store
    y2 = jnp.dot(w2_ref[...], col_ref[...],
                 preferred_element_type=jnp.float32)           # (C2, L) f32 acc
    y2 = jnp.maximum(y2 + b2_ref[...], 0.0)

    # ---- per-image global average pool + Linear + ReLU ----------------------
    pooled = jnp.dot(y2, pool_ref[...],
                     preferred_element_type=jnp.float32)       # (C2, nb), mean folded in
    feat_t = jnp.dot(wl_ref[...], pooled,
                     preferred_element_type=jnp.float32) + bl_ref[...]
    o_ref[0] = jnp.maximum(feat_t, 0.0)                        # (FEAT, nb)


# ---------------------------------------------------------------------------
# Host-side constants
# ---------------------------------------------------------------------------
def _tap_masks(nb):
    """(9, nb*HW) masks: 1 where tap source (y+dy, x+dx) is inside the image."""
    y = jnp.arange(HW, dtype=jnp.int32) // W
    x = jnp.arange(HW, dtype=jnp.int32) % W
    rows = []
    for dy in (-1, 0, 1):
        for dx in (-1, 0, 1):
            ok = ((y + dy >= 0) & (y + dy < H) & (x + dx >= 0) & (x + dx < W))
            rows.append(jnp.tile(ok.astype(jnp.float32), nb))
    return jnp.stack(rows)


def _pool_matrix(nb):
    """(nb*HW, nb) selector with the 1/HW mean scale folded in."""
    img = jnp.repeat(jnp.arange(nb, dtype=jnp.int32), HW)
    onehot = (img[:, None] == jnp.arange(nb, dtype=jnp.int32)[None, :])
    return onehot.astype(jnp.float32) / float(HW)


# ---------------------------------------------------------------------------
# Wrapper
# ---------------------------------------------------------------------------
def lesion_encoder_pallas(x_nchw, params, images_per_step=None):
    """x_nchw: (N, 1, H, W) float32 -> (N, FEAT) float32."""
    w1, b1, w2, b2, wl, bl = params  # PyTorch-convention shapes
    n = x_nchw.shape[0]

    if images_per_step is None:
        kind = jax.devices()[0].device_kind.lower()
        # only v7x-class parts have 2 TensorCores; elsewhere batch into one step
        images_per_step = 1 if "v7" in kind else n
    nb = images_per_step
    if n % nb != 0:
        nb = 1
    steps = n // nb
    L = nb * HW

    # Free relayouts: images side-by-side on the lane axis, weights laid out
    # exactly as the kernel consumes them (conv2 weights shipped as bf16).
    x_col = x_nchw.reshape(steps, 1, L)
    masks = _tap_masks(nb)                                            # (9, L)
    pool = _pool_matrix(nb)                                           # (L, nb)
    w1_k = w1.reshape(C1, K9)                                         # (32, 9)
    b1_k = b1.reshape(C1, 1)
    w2_k = jnp.transpose(w2, (0, 2, 3, 1)).reshape(C2, K9 * C1).astype(jnp.bfloat16)
    b2_k = b2.reshape(C2, 1)
    wl_k = wl                                                         # (128, 64)
    bl_k = bl.reshape(FEAT, 1)

    out_t = pl.pallas_call(
        lesion_encoder_kernel,
        out_shape=jax.ShapeDtypeStruct((steps, FEAT, nb), jnp.float32),
        grid_spec=pltpu.PrefetchScalarGridSpec(
            num_scalar_prefetch=0,
            grid=(steps,),
            in_specs=[
                pl.BlockSpec((1, 1, L), lambda i: (i, 0, 0)),
                pl.BlockSpec((K9, L), lambda i: (0, 0)),          # constants /
                pl.BlockSpec((C1, K9), lambda i: (0, 0)),         # weights: same
                pl.BlockSpec((C1, 1), lambda i: (0, 0)),          # block every
                pl.BlockSpec((C2, K9 * C1), lambda i: (0, 0)),    # step -> DMA'd
                pl.BlockSpec((C2, 1), lambda i: (0, 0)),          # once, VMEM-
                pl.BlockSpec((L, nb), lambda i: (0, 0)),          # resident
                pl.BlockSpec((FEAT, C2), lambda i: (0, 0)),
                pl.BlockSpec((FEAT, 1), lambda i: (0, 0)),
            ],
            out_specs=pl.BlockSpec((1, FEAT, nb), lambda i: (i, 0, 0)),
            scratch_shapes=[pltpu.VMEM((K9 * C1, L), jnp.bfloat16)],  # im2col slab
        ),
        compiler_params=pltpu.CompilerParams(
            dimension_semantics=("parallel",)),   # v7x: one image per TensorCore
    )(x_col, masks, w1_k, b1_k, w2_k, b2_k, pool, wl_k, bl_k)

    # (steps, FEAT, nb) -> (N, FEAT): free XLA transpose/reshape outside the kernel
    return jnp.transpose(out_t, (0, 2, 1)).reshape(n, FEAT)


# ---------------------------------------------------------------------------
# Pure-JAX reference (mirrors the PyTorch module exactly) for verification.
# ---------------------------------------------------------------------------
def lesion_encoder_ref(x_nchw, params):
    w1, b1, w2, b2, wl, bl = params
    dn = ("NCHW", "OIHW", "NCHW")
    y = lax.conv_general_dilated(x_nchw, w1, (1, 1), "SAME", dimension_numbers=dn)
    y = jnp.maximum(y + b1[None, :, None, None], 0.0)
    y = lax.conv_general_dilated(y, w2, (1, 1), "SAME", dimension_numbers=dn)
    y = jnp.maximum(y + b2[None, :, None, None], 0.0)
    pooled = jnp.mean(y, axis=(2, 3))                 # AdaptiveAvgPool2d((1,1)) + Flatten
    return jnp.maximum(pooled @ wl.T + bl, 0.0)


def init_params(key):
    ks = jax.random.split(key, 6)
    w1 = 0.1 * jax.random.normal(ks[0], (C1, C_IN, 3, 3), jnp.float32)
    b1 = 0.1 * jax.random.normal(ks[1], (C1,), jnp.float32)
    w2 = 0.1 * jax.random.normal(ks[2], (C2, C1, 3, 3), jnp.float32)
    b2 = 0.1 * jax.random.normal(ks[3], (C2,), jnp.float32)
    wl = 0.1 * jax.random.normal(ks[4], (FEAT, C2), jnp.float32)
    bl = 0.1 * jax.random.normal(ks[5], (FEAT,), jnp.float32)
    return (w1, b1, w2, b2, wl, bl)


if __name__ == "__main__":
    key = jax.random.PRNGKey(0)
    k_x, k_p = jax.random.split(key)
    x = jax.random.normal(k_x, (N, C_IN, H, W), jnp.float32)
    params = init_params(k_p)

    run = jax.jit(lesion_encoder_pallas)
    out = jax.block_until_ready(run(x, params))
    ref = jax.block_until_ready(lesion_encoder_ref(x, params))

    assert out.shape == (N, FEAT), out.shape
    err = float(jnp.max(jnp.abs(out - ref)))
    # conv2 runs on the MXU in bf16 (per perf review) -> tolerance loosened from 1e-4
    assert jnp.allclose(out, ref, rtol=2e-2, atol=2e-2), err
    print("KERNEL_OK")
</pallas_src>

<mosaic_0001>
module attributes {stable_mosaic.version = 11 : i64} {
  func.func @lesion_encoder_kernel(%arg0: i32, %arg1: memref<1x1x512xf32, #tpu.memory_space<vmem>>, %arg2: memref<9x512xf32, #tpu.memory_space<vmem>>, %arg3: memref<32x9xf32, #tpu.memory_space<vmem>>, %arg4: memref<32x1xf32, #tpu.memory_space<vmem>>, %arg5: memref<64x288xbf16, #tpu.memory_space<vmem>>, %arg6: memref<64x1xf32, #tpu.memory_space<vmem>>, %arg7: memref<512x2xf32, #tpu.memory_space<vmem>>, %arg8: memref<128x64xf32, #tpu.memory_space<vmem>>, %arg9: memref<128x1xf32, #tpu.memory_space<vmem>>, %arg10: memref<1x128x2xf32, #tpu.memory_space<vmem>>, %arg11: memref<288x512xbf16, #tpu.memory_space<vmem>>) attributes {dimension_semantics = [#tpu.dimension_semantics<parallel>], iteration_bounds = array<i64: 1>, scalar_prefetch = 0 : i64, scratch_operands = 1 : i64, tpu.core_type = #tpu.core_type<tc>, window_params = [{transform_indices = @transform_0, window_bounds = array<i64: 1, 1, 512>}, {pipeline_mode = #tpu.pipeline_mode<synchronous>, transform_indices = @transform_1, window_bounds = array<i64: 9, 512>}, {pipeline_mode = #tpu.pipeline_mode<synchronous>, transform_indices = @transform_2, window_bounds = array<i64: 32, 9>}, {pipeline_mode = #tpu.pipeline_mode<synchronous>, transform_indices = @transform_3, window_bounds = array<i64: 32, 1>}, {pipeline_mode = #tpu.pipeline_mode<synchronous>, transform_indices = @transform_4, window_bounds = array<i64: 64, 288>}, {pipeline_mode = #tpu.pipeline_mode<synchronous>, transform_indices = @transform_5, window_bounds = array<i64: 64, 1>}, {pipeline_mode = #tpu.pipeline_mode<synchronous>, transform_indices = @transform_6, window_bounds = array<i64: 512, 2>}, {pipeline_mode = #tpu.pipeline_mode<synchronous>, transform_indices = @transform_7, window_bounds = array<i64: 128, 64>}, {pipeline_mode = #tpu.pipeline_mode<synchronous>, transform_indices = @transform_8, window_bounds = array<i64: 128, 1>}, {transform_indices = @transform_9, window_bounds = array<i64: 1, 128, 2>}]} {
    %c0 = arith.constant 0 : index
    %c0_0 = arith.constant 0 : index
    %c0_1 = arith.constant 0 : index
    %0 = vector.load %arg1[%c0, %c0_0, %c0_1] : memref<1x1x512xf32, #tpu.memory_space<vmem>>, vector<1x1x512xf32>
    %1 = vector.shape_cast %0 : vector<1x1x512xf32> to vector<1x512xf32>
    %c0_2 = arith.constant 0 : index
    %c0_3 = arith.constant 0 : index
    %2 = vector.load %arg4[%c0_2, %c0_3] : memref<32x1xf32, #tpu.memory_space<vmem>>, vector<32x1xf32>
    %3 = vector.shape_cast %2 : vector<32x1xf32> to vector<32x1xf32>
    %4 = vector.broadcast %3 : vector<32x1xf32> to vector<32x512xf32>
    %c17_i32 = arith.constant 17 : i32
    %5 = tpu.dynamic_rotate %1 by %c17_i32 dim 1 : vector<1x512xf32>, i32 -> vector<1x512xf32>
    %c0_4 = arith.constant 0 : index
    %c0_5 = arith.constant 0 : index
    %6 = vector.load %arg2[%c0_4, %c0_5] : memref<9x512xf32, #tpu.memory_space<vmem>>, vector<1x512xf32>
    %7 = arith.mulf %5, %6 : vector<1x512xf32>
    %c0_6 = arith.constant 0 : index
    %c0_7 = arith.constant 0 : index
    %8 = vector.load %arg3[%c0_6, %c0_7] : memref<32x9xf32, #tpu.memory_space<vmem>>, vector<32x1xf32>
    %9 = vector.broadcast %8 : vector<32x1xf32> to vector<32x512xf32>
    %10 = vector.broadcast %7 : vector<1x512xf32> to vector<32x512xf32>
    %11 = arith.mulf %9, %10 : vector<32x512xf32>
    %12 = arith.addf %4, %11 : vector<32x512xf32>
    %c16_i32 = arith.constant 16 : i32
    %13 = tpu.dynamic_rotate %1 by %c16_i32 dim 1 : vector<1x512xf32>, i32 -> vector<1x512xf32>
    %c1 = arith.constant 1 : index
    %c0_8 = arith.constant 0 : index
    %14 = vector.load %arg2[%c1, %c0_8] : memref<9x512xf32, #tpu.memory_space<vmem>>, vector<1x512xf32>
    %15 = arith.mulf %13, %14 : vector<1x512xf32>
    %c0_9 = arith.constant 0 : index
    %c1_10 = arith.constant 1 : index
    %16 = vector.load %arg3[%c0_9, %c1_10] : memref<32x9xf32, #tpu.memory_space<vmem>>, vector<32x1xf32>
    %17 = vector.broadcast %16 : vector<32x1xf32> to vector<32x512xf32>
    %18 = vector.broadcast %15 : vector<1x512xf32> to vector<32x512xf32>
    %19 = arith.mulf %17, %18 : vector<32x512xf32>
    %20 = arith.addf %12, %19 : vector<32x512xf32>
    %c15_i32 = arith.constant 15 : i32
    %21 = tpu.dynamic_rotate %1 by %c15_i32 dim 1 : vector<1x512xf32>, i32 -> vector<1x512xf32>
    %c2 = arith.constant 2 : index
    %c0_11 = arith.constant 0 : index
    %22 = vector.load %arg2[%c2, %c0_11] : memref<9x512xf32, #tpu.memory_space<vmem>>, vector<1x512xf32>
    %23 = arith.mulf %21, %22 : vector<1x512xf32>
    %c0_12 = arith.constant 0 : index
    %c2_13 = arith.constant 2 : index
    %24 = vector.load %arg3[%c0_12, %c2_13] : memref<32x9xf32, #tpu.memory_space<vmem>>, vector<32x1xf32>
    %25 = vector.broadcast %24 : vector<32x1xf32> to vector<32x512xf32>
    %26 = vector.broadcast %23 : vector<1x512xf32> to vector<32x512xf32>
    %27 = arith.mulf %25, %26 : vector<32x512xf32>
    %28 = arith.addf %20, %27 : vector<32x512xf32>
    %c1_i32 = arith.constant 1 : i32
    %29 = tpu.dynamic_rotate %1 by %c1_i32 dim 1 : vector<1x512xf32>, i32 -> vector<1x512xf32>
    %c3 = arith.constant 3 : index
    %c0_14 = arith.constant 0 : index
    %30 = vector.load %arg2[%c3, %c0_14] : memref<9x512xf32, #tpu.memory_space<vmem>>, vector<1x512xf32>
    %31 = arith.mulf %29, %30 : vector<1x512xf32>
    %c0_15 = arith.constant 0 : index
    %c3_16 = arith.constant 3 : index
    %32 = vector.load %arg3[%c0_15, %c3_16] : memref<32x9xf32, #tpu.memory_space<vmem>>, vector<32x1xf32>
    %33 = vector.broadcast %32 : vector<32x1xf32> to vector<32x512xf32>
    %34 = vector.broadcast %31 : vector<1x512xf32> to vector<32x512xf32>
    %35 = arith.mulf %33, %34 : vector<32x512xf32>
    %36 = arith.addf %28, %35 : vector<32x512xf32>
    %c0_17 = arith.constant 0 : index
    %c4 = arith.constant 4 : index
    %37 = vector.load %arg3[%c0_17, %c4] : memref<32x9xf32, #tpu.memory_space<vmem>>, vector<32x1xf32>
    %38 = vector.broadcast %37 : vector<32x1xf32> to vector<32x512xf32>
    %39 = vector.broadcast %1 : vector<1x512xf32> to vector<32x512xf32>
    %40 = arith.mulf %38, %39 : vector<32x512xf32>
    %41 = arith.addf %36, %40 : vector<32x512xf32>
    %c511_i32 = arith.constant 511 : i32
    %42 = tpu.dynamic_rotate %1 by %c511_i32 dim 1 : vector<1x512xf32>, i32 -> vector<1x512xf32>
    %c5 = arith.constant 5 : index
    %c0_18 = arith.constant 0 : index
    %43 = vector.load %arg2[%c5, %c0_18] : memref<9x512xf32, #tpu.memory_space<vmem>>, vector<1x512xf32>
    %44 = arith.mulf %42, %43 : vector<1x512xf32>
    %c0_19 = arith.constant 0 : index
    %c5_20 = arith.constant 5 : index
    %45 = vector.load %arg3[%c0_19, %c5_20] : memref<32x9xf32, #tpu.memory_space<vmem>>, vector<32x1xf32>
    %46 = vector.broadcast %45 : vector<32x1xf32> to vector<32x512xf32>
    %47 = vector.broadcast %44 : vector<1x512xf32> to vector<32x512xf32>
    %48 = arith.mulf %46, %47 : vector<32x512xf32>
    %49 = arith.addf %41, %48 : vector<32x512xf32>
    %c497_i32 = arith.constant 497 : i32
    %50 = tpu.dynamic_rotate %1 by %c497_i32 dim 1 : vector<1x512xf32>, i32 -> vector<1x512xf32>
    %c6 = arith.constant 6 : index
    %c0_21 = arith.constant 0 : index
    %51 = vector.load %arg2[%c6, %c0_21] : memref<9x512xf32, #tpu.memory_space<vmem>>, vector<1x512xf32>
    %52 = arith.mulf %50, %51 : vector<1x512xf32>
    %c0_22 = arith.constant 0 : index
    %c6_23 = arith.constant 6 : index
    %53 = vector.load %arg3[%c0_22, %c6_23] : memref<32x9xf32, #tpu.memory_space<vmem>>, vector<32x1xf32>
    %54 = vector.broadcast %53 : vector<32x1xf32> to vector<32x512xf32>
    %55 = vector.broadcast %52 : vector<1x512xf32> to vector<32x512xf32>
    %56 = arith.mulf %54, %55 : vector<32x512xf32>
    %57 = arith.addf %49, %56 : vector<32x512xf32>
    %c496_i32 = arith.constant 496 : i32
    %58 = tpu.dynamic_rotate %1 by %c496_i32 dim 1 : vector<1x512xf32>, i32 -> vector<1x512xf32>
    %c7 = arith.constant 7 : index
    %c0_24 = arith.constant 0 : index
    %59 = vector.load %arg2[%c7, %c0_24] : memref<9x512xf32, #tpu.memory_space<vmem>>, vector<1x512xf32>
    %60 = arith.mulf %58, %59 : vector<1x512xf32>
    %c0_25 = arith.constant 0 : index
    %c7_26 = arith.constant 7 : index
    %61 = vector.load %arg3[%c0_25, %c7_26] : memref<32x9xf32, #tpu.memory_space<vmem>>, vector<32x1xf32>
    %62 = vector.broadcast %61 : vector<32x1xf32> to vector<32x512xf32>
    %63 = vector.broadcast %60 : vector<1x512xf32> to vector<32x512xf32>
    %64 = arith.mulf %62, %63 : vector<32x512xf32>
    %65 = arith.addf %57, %64 : vector<32x512xf32>
    %c495_i32 = arith.constant 495 : i32
    %66 = tpu.dynamic_rotate %1 by %c495_i32 dim 1 : vector<1x512xf32>, i32 -> vector<1x512xf32>
    %c8 = arith.constant 8 : index
    %c0_27 = arith.constant 0 : index
    %67 = vector.load %arg2[%c8, %c0_27] : memref<9x512xf32, #tpu.memory_space<vmem>>, vector<1x512xf32>
    %68 = arith.mulf %66, %67 : vector<1x512xf32>
    %c0_28 = arith.constant 0 : index
    %c8_29 = arith.constant 8 : index
    %69 = vector.load %arg3[%c0_28, %c8_29] : memref<32x9xf32, #tpu.memory_space<vmem>>, vector<32x1xf32>
    %70 = vector.broadcast %69 : vector<32x1xf32> to vector<32x512xf32>
    %71 = vector.broadcast %68 : vector<1x512xf32> to vector<32x512xf32>
    %72 = arith.mulf %70, %71 : vector<32x512xf32>
    %73 = arith.addf %65, %72 : vector<32x512xf32>
    %cst = arith.constant 0.000000e+00 : f32
    %74 = vector.broadcast %cst : f32 to vector<32x512xf32>
    %75 = arith.maximumf %73, %74 : vector<32x512xf32>
    %c17_i32_30 = arith.constant 17 : i32
    %76 = tpu.dynamic_rotate %75 by %c17_i32_30 dim 1 : vector<32x512xf32>, i32 -> vector<32x512xf32>
    %c0_31 = arith.constant 0 : index
    %c0_32 = arith.constant 0 : index
    %77 = vector.load %arg2[%c0_31, %c0_32] : memref<9x512xf32, #tpu.memory_space<vmem>>, vector<1x512xf32>
    %78 = vector.broadcast %77 : vector<1x512xf32> to vector<32x512xf32>
    %79 = arith.mulf %76, %78 : vector<32x512xf32>
    %80 = arith.truncf %79 : vector<32x512xf32> to vector<32x512xbf16>
    %c0_33 = arith.constant 0 : index
    %c0_34 = arith.constant 0 : index
    %81 = vector.load %arg11[%c0_33, %c0_34] : memref<288x512xbf16, #tpu.memory_space<vmem>>, vector<32x512xbf16>
    tpu.vector_store %arg11[%c0_33, %c0_34], %80 {strides = array<i32>} : memref<288x512xbf16, #tpu.memory_space<vmem>>, vector<32x512xbf16>,
    %c16_i32_35 = arith.constant 16 : i32
    %82 = tpu.dynamic_rotate %75 by %c16_i32_35 dim 1 : vector<32x512xf32>, i32 -> vector<32x512xf32>
    %c1_36 = arith.constant 1 : index
    %c0_37 = arith.constant 0 : index
    %83 = vector.load %arg2[%c1_36, %c0_37] : memref<9x512xf32, #tpu.memory_space<vmem>>, vector<1x512xf32>
    %84 = vector.broadcast %83 : vector<1x512xf32> to vector<32x512xf32>
    %85 = arith.mulf %82, %84 : vector<32x512xf32>
    %86 = arith.truncf %85 : vector<32x512xf32> to vector<32x512xbf16>
    %c32 = arith.constant 32 : index
    %c0_38 = arith.constant 0 : index
    %87 = vector.load %arg11[%c32, %c0_38] : memref<288x512xbf16, #tpu.memory_space<vmem>>, vector<32x512xbf16>
    tpu.vector_store %arg11[%c32, %c0_38], %86 {strides = array<i32>} : memref<288x512xbf16, #tpu.memory_space<vmem>>, vector<32x512xbf16>,
    %c15_i32_39 = arith.constant 15 : i32
    %88 = tpu.dynamic_rotate %75 by %c15_i32_39 dim 1 : vector<32x512xf32>, i32 -> vector<32x512xf32>
    %c2_40 = arith.constant 2 : index
    %c0_41 = arith.constant 0 : index
    %89 = vector.load %arg2[%c2_40, %c0_41] : memref<9x512xf32, #tpu.memory_space<vmem>>, vector<1x512xf32>
    %90 = vector.broadcast %89 : vector<1x512xf32> to vector<32x512xf32>
    %91 = arith.mulf %88, %90 : vector<32x512xf32>
    %92 = arith.truncf %91 : vector<32x512xf32> to vector<32x512xbf16>
    %c64 = arith.constant 64 : index
    %c0_42 = arith.constant 0 : index
    %93 = vector.load %arg11[%c64, %c0_42] : memref<288x512xbf16, #tpu.memory_space<vmem>>, vector<32x512xbf16>
    tpu.vector_store %arg11[%c64, %c0_42], %92 {strides = array<i32>} : memref<288x512xbf16, #tpu.memory_space<vmem>>, vector<32x512xbf16>,
    %c1_i32_43 = arith.constant 1 : i32
    %94 = tpu.dynamic_rotate %75 by %c1_i32_43 dim 1 : vector<32x512xf32>, i32 -> vector<32x512xf32>
    %c3_44 = arith.constant 3 : index
    %c0_45 = arith.constant 0 : index
    %95 = vector.load %arg2[%c3_44, %c0_45] : memref<9x512xf32, #tpu.memory_space<vmem>>, vector<1x512xf32>
    %96 = vector.broadcast %95 : vector<1x512xf32> to vector<32x512xf32>
    %97 = arith.mulf %94, %96 : vector<32x512xf32>
    %98 = arith.truncf %97 : vector<32x512xf32> to vector<32x512xbf16>
    %c96 = arith.constant 96 : index
    %c0_46 = arith.constant 0 : index
    %99 = vector.load %arg11[%c96, %c0_46] : memref<288x512xbf16, #tpu.memory_space<vmem>>, vector<32x512xbf16>
    tpu.vector_store %arg11[%c96, %c0_46], %98 {strides = array<i32>} : memref<288x512xbf16, #tpu.memory_space<vmem>>, vector<32x512xbf16>,
    %100 = arith.truncf %75 : vector<32x512xf32> to vector<32x512xbf16>
    %c128 = arith.constant 128 : index
    %c0_47 = arith.constant 0 : index
    %101 = vector.load %arg11[%c128, %c0_47] : memref<288x512xbf16, #tpu.memory_space<vmem>>, vector<32x512xbf16>
    tpu.vector_store %arg11[%c128, %c0_47], %100 {strides = array<i32>} : memref<288x512xbf16, #tpu.memory_space<vmem>>, vector<32x512xbf16>,
    %c511_i32_48 = arith.constant 511 : i32
    %102 = tpu.dynamic_rotate %75 by %c511_i32_48 dim 1 : vector<32x512xf32>, i32 -> vector<32x512xf32>
    %c5_49 = arith.constant 5 : index
    %c0_50 = arith.constant 0 : index
    %103 = vector.load %arg2[%c5_49, %c0_50] : memref<9x512xf32, #tpu.memory_space<vmem>>, vector<1x512xf32>
    %104 = vector.broadcast %103 : vector<1x512xf32> to vector<32x512xf32>
    %105 = arith.mulf %102, %104 : vector<32x512xf32>
    %106 = arith.truncf %105 : vector<32x512xf32> to vector<32x512xbf16>
    %c160 = arith.constant 160 : index
    %c0_51 = arith.constant 0 : index
    %107 = vector.load %arg11[%c160, %c0_51] : memref<288x512xbf16, #tpu.memory_space<vmem>>, vector<32x512xbf16>
    tpu.vector_store %arg11[%c160, %c0_51], %106 {strides = array<i32>} : memref<288x512xbf16, #tpu.memory_space<vmem>>, vector<32x512xbf16>,
    %c497_i32_52 = arith.constant 497 : i32
    %108 = tpu.dynamic_rotate %75 by %c497_i32_52 dim 1 : vector<32x512xf32>, i32 -> vector<32x512xf32>
    %c6_53 = arith.constant 6 : index
    %c0_54 = arith.constant 0 : index
    %109 = vector.load %arg2[%c6_53, %c0_54] : memref<9x512xf32, #tpu.memory_space<vmem>>, vector<1x512xf32>
    %110 = vector.broadcast %109 : vector<1x512xf32> to vector<32x512xf32>
    %111 = arith.mulf %108, %110 : vector<32x512xf32>
    %112 = arith.truncf %111 : vector<32x512xf32> to vector<32x512xbf16>
    %c192 = arith.constant 192 : index
    %c0_55 = arith.constant 0 : index
    %113 = vector.load %arg11[%c192, %c0_55] : memref<288x512xbf16, #tpu.memory_space<vmem>>, vector<32x512xbf16>
    tpu.vector_store %arg11[%c192, %c0_55], %112 {strides = array<i32>} : memref<288x512xbf16, #tpu.memory_space<vmem>>, vector<32x512xbf16>,
    %c496_i32_56 = arith.constant 496 : i32
    %114 = tpu.dynamic_rotate %75 by %c496_i32_56 dim 1 : vector<32x512xf32>, i32 -> vector<32x512xf32>
    %c7_57 = arith.constant 7 : index
    %c0_58 = arith.constant 0 : index
    %115 = vector.load %arg2[%c7_57, %c0_58] : memref<9x512xf32, #tpu.memory_space<vmem>>, vector<1x512xf32>
    %116 = vector.broadcast %115 : vector<1x512xf32> to vector<32x512xf32>
    %117 = arith.mulf %114, %116 : vector<32x512xf32>
    %118 = arith.truncf %117 : vector<32x512xf32> to vector<32x512xbf16>
    %c224 = arith.constant 224 : index
    %c0_59 = arith.constant 0 : index
    %119 = vector.load %arg11[%c224, %c0_59] : memref<288x512xbf16, #tpu.memory_space<vmem>>, vector<32x512xbf16>
    tpu.vector_store %arg11[%c224, %c0_59], %118 {strides = array<i32>} : memref<288x512xbf16, #tpu.memory_space<vmem>>, vector<32x512xbf16>,
    %c495_i32_60 = arith.constant 495 : i32
    %120 = tpu.dynamic_rotate %75 by %c495_i32_60 dim 1 : vector<32x512xf32>, i32 -> vector<32x512xf32>
    %c8_61 = arith.constant 8 : index
    %c0_62 = arith.constant 0 : index
    %121 = vector.load %arg2[%c8_61, %c0_62] : memref<9x512xf32, #tpu.memory_space<vmem>>, vector<1x512xf32>
    %122 = vector.broadcast %121 : vector<1x512xf32> to vector<32x512xf32>
    %123 = arith.mulf %120, %122 : vector<32x512xf32>
    %124 = arith.truncf %123 : vector<32x512xf32> to vector<32x512xbf16>
    %c256 = arith.constant 256 : index
    %c0_63 = arith.constant 0 : index
    %125 = vector.load %arg11[%c256, %c0_63] : memref<288x512xbf16, #tpu.memory_space<vmem>>, vector<32x512xbf16>
    tpu.vector_store %arg11[%c256, %c0_63], %124 {strides = array<i32>} : memref<288x512xbf16, #tpu.memory_space<vmem>>, vector<32x512xbf16>,
    %c0_64 = arith.constant 0 : index
    %c0_65 = arith.constant 0 : index
    %126 = vector.load %arg5[%c0_64, %c0_65] : memref<64x288xbf16, #tpu.memory_space<vmem>>, vector<64x288xbf16>
    %c0_66 = arith.constant 0 : index
    %c0_67 = arith.constant 0 : index
    %127 = vector.load %arg11[%c0_66, %c0_67] : memref<288x512xbf16, #tpu.memory_space<vmem>>, vector<288x512xbf16>
    %cst_68 = arith.constant dense<0.000000e+00> : vector<64x512xf32>
    %128 = tpu.matmul %126, %127, %cst_68 {dimension_numbers = #tpu.dot_dimension_numbers<[1], [0], [0], [1], [0, 0, 1, 1], [], []>} : vector<64x288xbf16>, vector<288x512xbf16>, vector<64x512xf32> -> vector<64x512xf32>
    %c0_69 = arith.constant 0 : index
    %c0_70 = arith.constant 0 : index
    %129 = vector.load %arg6[%c0_69, %c0_70] : memref<64x1xf32, #tpu.memory_space<vmem>>, vector<64x1xf32>
    %130 = vector.broadcast %129 : vector<64x1xf32> to vector<64x512xf32>
    %131 = arith.addf %128, %130 : vector<64x512xf32>
    %cst_71 = arith.constant 0.000000e+00 : f32
    %132 = vector.broadcast %cst_71 : f32 to vector<64x512xf32>
    %133 = arith.maximumf %131, %132 : vector<64x512xf32>
    %c0_72 = arith.constant 0 : index
    %c0_73 = arith.constant 0 : index
    %134 = vector.load %arg7[%c0_72, %c0_73] : memref<512x2xf32, #tpu.memory_space<vmem>>, vector<512x2xf32>
    %cst_74 = arith.constant dense<0.000000e+00> : vector<64x2xf32>
    %135 = tpu.matmul %133, %134, %cst_74 {dimension_numbers = #tpu.dot_dimension_numbers<[1], [0], [0], [1], [0, 0, 1, 1], [], []>} : vector<64x512xf32>, vector<512x2xf32>, vector<64x2xf32> -> vector<64x2xf32>
    %c0_75 = arith.constant 0 : index
    %c0_76 = arith.constant 0 : index
    %136 = vector.load %arg8[%c0_75, %c0_76] : memref<128x64xf32, #tpu.memory_space<vmem>>, vector<128x64xf32>
    %cst_77 = arith.constant dense<0.000000e+00> : vector<128x2xf32>
    %137 = tpu.matmul %136, %135, %cst_77 {dimension_numbers = #tpu.dot_dimension_numbers<[1], [0], [0], [1], [0, 0, 1, 1], [], []>} : vector<128x64xf32>, vector<64x2xf32>, vector<128x2xf32> -> vector<128x2xf32>
    %c0_78 = arith.constant 0 : index
    %c0_79 = arith.constant 0 : index
    %138 = vector.load %arg9[%c0_78, %c0_79] : memref<128x1xf32, #tpu.memory_space<vmem>>, vector<128x1xf32>
    %139 = vector.broadcast %138 : vector<128x1xf32> to vector<128x2xf32>
    %140 = arith.addf %137, %139 : vector<128x2xf32>
    %cst_80 = arith.constant 0.000000e+00 : f32
    %141 = vector.broadcast %cst_80 : f32 to vector<128x2xf32>
    %142 = arith.maximumf %140, %141 : vector<128x2xf32>
    %c0_81 = arith.constant 0 : index
    %c0_82 = arith.constant 0 : index
    %c0_83 = arith.constant 0 : index
    %143 = vector.load %arg10[%c0_81, %c0_82, %c0_83] : memref<1x128x2xf32, #tpu.memory_space<vmem>>, vector<1x128x2xf32>
    %144 = vector.shape_cast %143 : vector<1x128x2xf32> to vector<128x2xf32>
    %145 = vector.shape_cast %142 : vector<128x2xf32> to vector<1x128x2xf32>
    tpu.vector_store %arg10[%c0_81, %c0_82, %c0_83], %145 {strides = array<i32>} : memref<1x128x2xf32, #tpu.memory_space<vmem>>, vector<1x128x2xf32>,
    return
  }
  func.func @transform_0(%arg0: i32) -> (i32, i32, i32) {
    %c0_i32 = arith.constant 0 : i32
    %c0_i32_0 = arith.constant 0 : i32
    %c0_i32_1 = arith.constant 0 : i32
    return %arg0, %c0_i32, %c0_i32_0 : i32, i32, i32
  }
  func.func @transform_1(%arg0: i32) -> (i32, i32) {
    %c0_i32 = arith.constant 0 : i32
    %c0_i32_0 = arith.constant 0 : i32
    %c0_i32_1 = arith.constant 0 : i32
    return %c0_i32, %c0_i32_0 : i32, i32
  }
  func.func @transform_2(%arg0: i32) -> (i32, i32) {
    %c0_i32 = arith.constant 0 : i32
    %c0_i32_0 = arith.constant 0 : i32
    %c0_i32_1 = arith.constant 0 : i32
    return %c0_i32, %c0_i32_0 : i32, i32
  }
  func.func @transform_3(%arg0: i32) -> (i32, i32) {
    %c0_i32 = arith.constant 0 : i32
    %c0_i32_0 = arith.constant 0 : i32
    %c0_i32_1 = arith.constant 0 : i32
    return %c0_i32, %c0_i32_0 : i32, i32
  }
  func.func @transform_4(%arg0: i32) -> (i32, i32) {
    %c0_i32 = arith.constant 0 : i32
    %c0_i32_0 = arith.constant 0 : i32
    %c0_i32_1 = arith.constant 0 : i32
    return %c0_i32, %c0_i32_0 : i32, i32
  }
  func.func @transform_5(%arg0: i32) -> (i32, i32) {
    %c0_i32 = arith.constant 0 : i32
    %c0_i32_0 = arith.constant 0 : i32
    %c0_i32_1 = arith.constant 0 : i32
    return %c0_i32, %c0_i32_0 : i32, i32
  }
  func.func @transform_6(%arg0: i32) -> (i32, i32) {
    %c0_i32 = arith.constant 0 : i32
    %c0_i32_0 = arith.constant 0 : i32
    %c0_i32_1 = arith.constant 0 : i32
    return %c0_i32, %c0_i32_0 : i32, i32
  }
  func.func @transform_7(%arg0: i32) -> (i32, i32) {
    %c0_i32 = arith.constant 0 : i32
    %c0_i32_0 = arith.constant 0 : i32
    %c0_i32_1 = arith.constant 0 : i32
    return %c0_i32, %c0_i32_0 : i32, i32
  }
  func.func @transform_8(%arg0: i32) -> (i32, i32) {
    %c0_i32 = arith.constant 0 : i32
    %c0_i32_0 = arith.constant 0 : i32
    %c0_i32_1 = arith.constant 0 : i32
    return %c0_i32, %c0_i32_0 : i32, i32
  }
  func.func @transform_9(%arg0: i32) -> (i32, i32, i32) {
    %c0_i32 = arith.constant 0 : i32
    %c0_i32_0 = arith.constant 0 : i32
    %c0_i32_1 = arith.constant 0 : i32
    return %arg0, %c0_i32, %c0_i32_0 : i32, i32, i32
  }
}

</mosaic_0001>

<bundles_post_ra>
// kernel: lesion_encoder_pallas.1
= control target key start
LH: loop header
LB: loop body
LE: loop exit
PB: predicated region body
PF: predicated region fallthrough
CT: control target
= control target key end

     0   :  { %v59_v0 = vlaneseq  ;;  %v6976_v1 = vmov 0   ;;  %v4257_v3 = vmov 1   ;;  %s4258_s13 = smov 17   ;;  %s4259_s15 = smov 16   ;;  %v4261_v17 = vmov 2   ;;  %s6966_s2 = inlined_call_operand.vmem [shape: f32[32,9], index: 2, kind: input, shape index: {}]   ;;  %s6967_s0 = inlined_call_operand.vmem [shape: f32[1,1,512], index: 0, kind: input, shape index: {}]   ;;  %s6968_s3 = inlined_call_operand.vmem [shape: f32[32,1], index: 3, kind: input, shape index: {}]   ;;  %s6969_s1 = inlined_call_operand.vmem [shape: f32[9,512], index: 1, kind: input, shape index: {}]   ;;  %s6970_s4 = inlined_call_operand.vmem [shape: bf16[64,288], index: 4, kind: input, shape index: {}]   ;;  %s6971_s5 = inlined_call_operand.vmem [shape: f32[64,1], index: 5, kind: input, shape index: {}]   ;;  %s6972_s8 = inlined_call_operand.vmem [shape: f32[128,1], index: 8, kind: input, shape index: {}]   ;;  %s6973_s6 = inlined_call_operand.vmem [shape: f32[512,2], index: 6, kind: input, shape index: {}]   ;;  %s6974_s7 = inlined_call_operand.vmem [shape: f32[128,64], index: 7, kind: input, shape index: {}]   ;;  %s6975_s9 = inlined_call_operand.vmem [shape: f32[1,128,2], index: 9, kind: output, shape index: {}]  }
   0x1   :  { %4211 = vset.pattern.permute.xlu1 %v6976_v1  ;;  %v4327_v2 = vld [vmem:[%s6966_s2 + $0x10] sm:$0xff]  ;;  %4212 = vset.pattern.permute.xlu0 %v4257_v3  ;;  %v33_v5 = vld [vmem:[%s6967_s0] sm:$0xf]  ;;  %s4260_s16 = smov 15   ;;  %v4378_v15 = vld [vmem:[%s6966_s2 + $0x18] sm:$0xff]  ;;  %s4262_s21 = smov 1  }
   0x2   :  { %136 = vperm.xlu1 %4211, %v4327_v2   ;;  %v60_v4 = vshrl.u32 %v59_v0, 7  ;;  %2828 = vmatprep.mubr.bf16.mxu1 %v6976_v1  ;;  %v36_v14 = vld [vmem:[%s6968_s3 + $0x10] sm:$0xff]  ;;  %v4383_v16 = vld [vmem:[%s6966_s2 + $0x8] sm:$0xff]  ;;  %v4263_v18 = vmov 3   ;;  %v4403_v19 = vld [vmem:[%s6966_s2] sm:$0xff]  ;;  %s4264_s26 = smov 127  }
   0x3   :  { %v35_v20 = vld [vmem:[%s6968_s3 + $0x8] sm:$0xff]  ;;  %v4265_v21 = vmov 4   ;;  %v4266_v22 = vmov 5   ;;  %s4267_s2 = smov 113   ;;  %v4268_v23 = vmov 6   ;;  %s4269_s27 = smov 112  }
   0x4   :  { %v4335_v6 = vsub.s32 0, %v60_v4  ;;  %v4337_v7 = vsub.s32 3, %v60_v4  ;;  %v4339_v8 = vsub.s32 2, %v60_v4  ;;  %v4341_v9 = vsub.s32 1, %v60_v4  ;;  %s4271_s28 = smov 111   ;;  %v37_v26 = vld [vmem:[%s6968_s3 + $0x18] sm:$0xff] }
   0x5   :  { %v4270_v24 = vmov 7   ;;  %v4272_v25 = vmov 8   ;;  %v34_v27 = vld [vmem:[%s6968_s3] sm:$0xff]  ;;  %v4513_v44 = vand.u32 127, %v59_v0  ;;  %vm2710_vm8 = vcmask 261120  }
   0x6   :  { %7051 = vst [vmem:[#allocation3_spill] sm:$0xff] %v4337_v7  ;;  %7052 = vst [vmem:[#allocation4_spill] sm:$0xff] %v4339_v8  ;;  %v4344_v10 = vrot.slane %v33_v5, %v4337_v7  ;;  %v4347_v11 = vrot.slane %v33_v5, %v4335_v6  ;;  %v4354_v12 = vrot.slane %v33_v5, %v4339_v8  ;;  %v4521_v46 = vld [vmem:[%s6969_s1] ss:$8 sm:$0xf]  ;;  %vm3433_vm9 = vcmask 523264  }
   0x7   :  { %7053 = vst [vmem:[#allocation5_spill] sm:$0xff] %v4341_v9  ;;  %v4357_v13 = vrot.slane %v33_v5, %v4341_v9  ;;  %vm89_vm0 = vcmp.lt.s32.totalorder %v4513_v44, 17  ;;  %v4530_v48 = vrot.slane %v4521_v46, %v4339_v8  ;;  %v4539_v50 = vld [vmem:[%s6969_s1 + $0x1] ss:$8 sm:$0xf]  ;;  %vm200_vm1 = vcmp.lt.s32.totalorder %v4513_v44, 16 }
   0x8   :  { %85 = vrot.lane.b32.xlu1 %v4344_v10, %s4258_s13  ;;  %79 = vrot.lane.b32.xlu0 %v4347_v11, %s4258_s13  ;;  %v219_v52 = vrot.slane %v4539_v50, %v4339_v8  ;;  %v4566_v60 = vld [vmem:[%s6969_s1 + $0x2] ss:$8 sm:$0xf]  ;;  %vm304_vm2 = vcmp.lt.s32.totalorder %v4513_v44, 15  ;;  %vm408_vm3 = vcmp.lt.s32.totalorder %v4513_v44, 1  ;;  %vm560_vm4 = vcmp.lt.s32.totalorder %v4513_v44, 127 }
   0x9   :  { %7054 = vst [vmem:[#allocation6_spill] sm:$0xff] %v4530_v48  ;;  %v323_v61 = vrot.slane %v4566_v60, %v4339_v8  ;;  %vm664_vm5 = vcmp.lt.s32.totalorder %v4513_v44, 113  ;;  %vm768_vm6 = vcmp.lt.s32.totalorder %v4513_v44, 112  ;;  %vm872_vm7 = vcmp.lt.s32.totalorder %v4513_v44, 111  ;;  %v3078_v44 = vld [vmem:[%s6973_s6 + $0xf8] sm:$0xff] }
   0xa   :  { %vm3643_vm10 = vcmask 15360  }
   0xc   :  { %83 = vrot.lane.b32.xlu1 %v4354_v12, %s4258_s13  ;;  %81 = vrot.lane.b32.xlu0 %v4357_v13, %s4258_s13 }
  0x10   :  { %50 = vperm.xlu1 %4211, %v36_v14   ;;  %194 = vrot.lane.b32.xlu0 %v4357_v13, %s4259_s15 }
  0x14   :  { %192 = vrot.lane.b32.xlu1 %v4347_v11, %s4259_s15  ;;  %241 = vperm.xlu0 %4212, %v4327_v2  }
  0x15   :  { %4213 = vset.pattern.permute.xlu1 %v4257_v3 }
  0x18   :  { %198 = vrot.lane.b32.xlu1 %v4344_v10, %s4259_s15  ;;  %298 = vrot.lane.b32.xlu0 %v4357_v13, %s4260_s16 }
  0x1c   :  { %245 = vperm.xlu1 %4213, %v4378_v15   ;;  %237 = vperm.xlu0 %4212, %v4383_v16  }
  0x20   :  { %196 = vrot.lane.b32.xlu1 %v4354_v12, %s4259_s15  ;;  %4218 = vset.pattern.permute.xlu0 %v4261_v17 }
  0x21   :  { %345 = vperm.xlu0 %4218, %v4327_v2   ;;  %4214 = vset.pattern.permute.xlu1 %v6976_v1 }
  0x24   :  { %131 = vperm.xlu1 %4214, %v4383_v16  }
  0x25   :  { %406 = vrot.lane.b32.xlu0 %v4344_v10, %s4262_s21 }
  0x28   :  { %296 = vrot.lane.b32.xlu1 %v4347_v11, %s4260_s16 }
  0x29   :  { %341 = vperm.xlu0 %4218, %v4383_v16   ;;  %4215 = vset.pattern.permute.xlu1 %v4261_v17 }
  0x2c   :  { %302 = vrot.lane.b32.xlu1 %v4344_v10, %s4260_s16 }
  0x2d   :  { %4221 = vset.pattern.permute.xlu0 %v4263_v18 }
  0x2e   :  { %453 = vperm.xlu0 %4221, %v4378_v15  }
  0x30   :  { %349 = vperm.xlu1 %4215, %v4378_v15  }
  0x32   :  { %441 = vperm.xlu0 %4221, %v4403_v19  }
  0x34   :  { %300 = vrot.lane.b32.xlu1 %v4354_v12, %s4260_s16 }
  0x35   :  { %4216 = vset.pattern.permute.xlu1 %v6976_v1 }
  0x36   :  { %554 = vrot.lane.b32.xlu0 %v4357_v13, %s4264_s26 }
  0x37   :  { %4225 = vset.pattern.permute.xlu0 %v4265_v21 }
  0x38   :  { %45 = vperm.xlu1 %4216, %v35_v20  }
  0x3a   :  { %505 = vperm.xlu0 %4225, %v4403_v19  }
  0x3c   :  { %4217 = vset.pattern.permute.xlu1 %v4257_v3 }
  0x3d   :  { %233 = vperm.xlu1 %4217, %v4403_v19  }
  0x3e   :  { %4226 = vset.pattern.permute.xlu0 %v4266_v22 }
  0x3f   :  { %601 = vperm.xlu0 %4226, %v4327_v2  }
  0x41   :  { %400 = vrot.lane.b32.xlu1 %v4347_v11, %s4262_s21 }
  0x42   :  { %4219 = vset.pattern.permute.xlu1 %v4263_v18 }
  0x43   :  { %658 = vrot.lane.b32.xlu0 %v4357_v13, %s4267_s2 }
  0x45   :  { %402 = vrot.lane.b32.xlu1 %v4357_v13, %s4262_s21 }
  0x47   :  { %593 = vperm.xlu0 %4226, %v4403_v19  }
  0x49   :  { %449 = vperm.xlu1 %4219, %v4327_v2  }
  0x4b   :  { %4229 = vset.pattern.permute.xlu0 %v4268_v23 }
  0x4c   :  { %705 = vperm.xlu0 %4229, %v4327_v2  }
  0x4d   :  { %404 = vrot.lane.b32.xlu1 %v4354_v12, %s4262_s21 }
  0x4e   :  { %4220 = vset.pattern.permute.xlu1 %v4261_v17 }
  0x50   :  { %762 = vrot.lane.b32.xlu0 %v4357_v13, %s4269_s27 }
  0x51   :  { %337 = vperm.xlu1 %4220, %v4403_v19  }
  0x54   :  { %697 = vperm.xlu0 %4229, %v4403_v19  }
  0x55   :  { %4222 = vset.pattern.permute.xlu1 %v4265_v21 }
  0x56   :  { %513 = vperm.xlu1 %4222, %v4327_v2  }
  0x58   :  { %4232 = vset.pattern.permute.xlu0 %v4270_v24 }
  0x59   :  { %809 = vperm.xlu0 %4232, %v4327_v2  }
  0x5a   :  { %517 = vperm.xlu1 %4222, %v4378_v15  }
  0x5d   :  { %866 = vrot.lane.b32.xlu0 %v4357_v13, %s4271_s28 }
  0x5e   :  { %4223 = vset.pattern.permute.xlu1 %v4263_v18 }
  0x5f   :  { %445 = vperm.xlu1 %4223, %v4383_v16  }
  0x61   :  { %801 = vperm.xlu0 %4232, %v4403_v19  }
  0x63   :  { %552 = vrot.lane.b32.xlu1 %v4347_v11, %s4264_s26 }
  0x64   :  { %4224 = vset.pattern.permute.xlu1 %v4266_v22 }
  0x65   :  { %4235 = vset.pattern.permute.xlu0 %v4272_v25 }
  0x66   :  { %913 = vperm.xlu0 %4235, %v4327_v2  }
  0x67   :  { %556 = vrot.lane.b32.xlu1 %v4354_v12, %s4264_s26 }
  0x6a   :  { %909 = vperm.xlu0 %4235, %v4383_v16  }
  0x6b   :  { %605 = vperm.xlu1 %4224, %v4378_v15  }
  0x6e   :  { %4238 = vset.pattern.permute.xlu0 %v6976_v1 }
  0x6f   :  { %558 = vrot.lane.b32.xlu1 %v4344_v10, %s4264_s26  ;;  %141 = vperm.xlu0 %4238, %v4378_v15  }
  0x70   :  { %4227 = vset.pattern.permute.xlu1 %v4265_v21 }
  0x73   :  { %509 = vperm.xlu1 %4227, %v4383_v16   ;;  %55 = vperm.xlu0 %4238, %v37_v26  }
  0x77   :  { %656 = vrot.lane.b32.xlu1 %v4347_v11, %s4267_s2  ;;  %126 = vperm.xlu0 %4238, %v4403_v19  }
  0x78   :  { %4228 = vset.pattern.permute.xlu1 %v4268_v23 }
  0x7a   :  { %v4467_v29 = vpop.permute.xlu0 %79 }
  0x7b   :  { %660 = vrot.lane.b32.xlu1 %v4354_v12, %s4267_s2  ;;  %40 = vperm.xlu0 %4238, %v34_v27  }
  0x7d   :  { %v4465_v28 = vpop.permute.xlu1 %136 }
  0x7e   :  { %v4474_v31 = vpop.permute.xlu0 %81 }
  0x7f   :  { %709 = vperm.xlu1 %4228, %v4378_v15  }
  0x81   :  { %v4470_v30 = vpop.permute.xlu1 %85 }
  0x82   :  { %v4479_v33 = vpop.permute.xlu0 %194 }
  0x83   :  { %662 = vrot.lane.b32.xlu1 %v4344_v10, %s4267_s2 }
  0x84   :  { %4230 = vset.pattern.permute.xlu1 %v4266_v22 }
  0x85   :  { %v4476_v32 = vpop.permute.xlu1 %83 }
  0x86   :  { %v91_v49 = vsel %vm89_vm0, %v4474_v31, %v4476_v32 }
  0x87   :  { %597 = vperm.xlu1 %4230, %v4383_v16   ;;  %v118_v55 = vmul.f32 %v4530_v48, %v91_v49 }
  0x89   :  { %v4561_v59 = vrot.slane %v118_v55, %v4335_v6 }
  0x8b   :  { %v4481_v34 = vpop.permute.xlu1 %50  ;;  %760 = vrot.lane.b32.xlu1 %v4347_v11, %s4269_s27  ;;  %v170_v2 = vmul.f32 %v4561_v59, %v4465_v28 }
  0x8c   :  { %4231 = vset.pattern.permute.xlu1 %v4270_v24 }
  0x8d   :  { %v186_v18 = vadd.f32 %v170_v2, %v4481_v34 }
  0x8f   :  { %764 = vrot.lane.b32.xlu1 %v4354_v12, %s4269_s27  ;;  %v4488_v35 = vpop.permute.xlu1 %192  ;;  %v4490_v36 = vpop.permute.xlu0 %241 }
  0x93   :  { %813 = vperm.xlu1 %4231, %v4378_v15   ;;  %v4493_v37 = vpop.permute.xlu1 %198  ;;  %v4495_v38 = vpop.permute.xlu0 %298 }
  0x97   :  { %766 = vrot.lane.b32.xlu1 %v4344_v10, %s4269_s27  ;;  %v4499_v39 = vpop.permute.xlu1 %245  ;;  %v4501_v40 = vpop.permute.xlu0 %237 }
  0x98   :  { %4233 = vset.pattern.permute.xlu1 %v4268_v23 }
  0x9b   :  { %701 = vperm.xlu1 %4233, %v4383_v16   ;;  %v4504_v41 = vpop.permute.xlu1 %196 }
  0x9c   :  { %v4506_v42 = vpop.permute.xlu0 %345  ;;  %v202_v53 = vsel %vm200_vm1, %v4479_v33, %v4504_v41 }
  0x9d   :  { %v230_v57 = vmul.f32 %v219_v52, %v202_v53 }
  0x9f   :  { %864 = vrot.lane.b32.xlu1 %v4347_v11, %s4271_s28  ;;  %v4510_v43 = vpop.permute.xlu1 %131  ;;  %v4574_v63 = vrot.slane %v230_v57, %v4335_v6 }
  0xa0   :  { %v4515_v45 = vpop.permute.xlu0 %406  ;;  %4234 = vset.pattern.permute.xlu1 %v4272_v25 }
  0xa1   :  { %v274_v14 = vmul.f32 %v4574_v63, %v4490_v36  ;;  %v270_v21 = vmul.f32 %v4574_v63, %v4501_v40 }
  0xa3   :  { %868 = vrot.lane.b32.xlu1 %v4354_v12, %s4271_s28  ;;  %v4525_v47 = vpop.permute.xlu1 %296  ;;  %v290_v26 = vadd.f32 %v274_v14, %v186_v18 }
  0xa4   :  { %v4541_v51 = vpop.permute.xlu0 %341 }
  0xa7   :  { %917 = vperm.xlu1 %4234, %v4378_v15   ;;  %v4551_v54 = vpop.permute.xlu1 %302  ;;  %v166_v15 = vmul.f32 %v4561_v59, %v4510_v43 }
  0xa9   :  { %v4554_v56 = vpop.permute.xlu0 %453 }
  0xab   :  { %870 = vrot.lane.b32.xlu1 %v4344_v10, %s4271_s28  ;;  %v4558_v58 = vpop.permute.xlu1 %349 }
  0xac   :  { %4236 = vset.pattern.permute.xlu1 %v4270_v24 }
  0xad   :  { %v4571_v62 = vpop.permute.xlu0 %441 }
  0xaf   :  { %805 = vperm.xlu1 %4236, %v4383_v16   ;;  %v4578_v0 = vpop.permute.xlu1 %300 }
  0xb0   :  { %v306_v3 = vsel %vm304_vm2, %v4495_v38, %v4578_v0 }
  0xb1   :  { %v334_v4 = vmul.f32 %v323_v61, %v306_v3  ;;  %v4586_v5 = vpop.permute.xlu0 %554  ;;  %v4629_v3 = vld [vmem:[%s6969_s1 + $0x3] ss:$8 sm:$0xf] }
  0xb3   :  { %v4593_v16 = vrot.slane %v334_v4, %v4335_v6  ;;  %4237 = vset.pattern.permute.xlu1 %v4272_v25  ;;  %v4596_v17 = vpop.permute.xlu1 %45  ;;  %v427_v4 = vrot.slane %v4629_v3, %v4339_v8 }
  0xb4   :  { %v182_v20 = vadd.f32 %v166_v15, %v4596_v17  ;;  %905 = vperm.xlu1 %4237, %v4403_v19  }
  0xb5   :  { %v378_v22 = vmul.f32 %v4593_v16, %v4506_v42  ;;  %v4605_v23 = vpop.permute.xlu0 %505  ;;  %v374_v25 = vmul.f32 %v4593_v16, %v4541_v51 }
  0xb6   :  { %v286_v24 = vadd.f32 %v270_v21, %v182_v20 }
  0xb7   :  { %v394_v49 = vadd.f32 %v378_v22, %v290_v26 }
  0xb8   :  { %v4609_v27 = vpop.permute.xlu1 %233  ;;  %4239 = vset.pattern.permute.xlu1 %v6976_v1  ;;  %v4614_v53 = vadd.f32 %v374_v25, %v286_v24  ;;  %v4655_v1 = vrot.slane %v4521_v46, %v4337_v7 }
  0xba   :  { %v4612_v52 = vpop.permute.xlu0 %601  ;;  %7062 = vst [vmem:[#allocation14_spill] sm:$0xff] %v4655_v1 }
  0xbc   :  { %v4616_v19 = vpop.permute.xlu1 %400 }
  0xbe   :  { %v4618_v55 = vpop.permute.xlu0 %658 }
  0xbf   :  { %7055 = vst [vmem:[#allocation7_spill] sm:$0xff] %v4618_v55 }
  0xc0   :  { %v4620_v57 = vpop.permute.xlu1 %402 }
  0xc2   :  { %v4622_v61 = vpop.permute.xlu0 %593 }
  0xc3   :  { %7056 = vst [vmem:[#allocation8_spill] sm:$0xff] %v4622_v61 }
  0xc4   :  { %v4624_v2 = vpop.permute.xlu1 %449 }
  0xc7   :  { %v4633_v14 = vpop.permute.xlu0 %705 }
  0xc8   :  { %7057 = vst [vmem:[#allocation9_spill] sm:$0xff] %v4633_v14  ;;  %v4636_v15 = vpop.permute.xlu1 %404 }
  0xc9   :  { %v410_v18 = vsel %vm408_vm3, %v4620_v57, %v4636_v15 }
  0xca   :  { %v438_v20 = vmul.f32 %v427_v4, %v410_v18  ;;  %v4663_v4 = vrot.slane %v4521_v46, %v4341_v9  ;;  %v4667_v18 = vrot.slane %v4521_v46, %v4335_v6  ;;  %v203_v46 = vsel %vm200_vm1, %v4488_v35, %v4479_v33 }
  0xcb   :  { %v4642_v21 = vpop.permute.xlu0 %762  ;;  %v223_v33 = vrot.slane %v4539_v50, %v4337_v7 }
  0xcc   :  { %7058 = vst [vmem:[#allocation10_spill] sm:$0xff] %v4642_v21  ;;  %v4645_v22 = vrot.slane %v438_v20, %v4335_v6  ;;  %v4647_v24 = vpop.permute.xlu1 %337  ;;  %7063 = vst [vmem:[#allocation15_spill] sm:$0xff] %v4663_v4  ;;  %v90_v20 = vsel %vm89_vm0, %v4476_v32, %v4470_v30  ;;  %v92_v21 = vsel %vm89_vm0, %v4467_v29, %v4474_v31 }
  0xcd   :  { %7060 = vst [vmem:[#allocation12_spill] sm:$0xff] %v4647_v24  ;;  %7064 = vst [vmem:[#allocation16_spill] sm:$0xff] %v4667_v18  ;;  %v119_v32 = vmul.f32 %v4655_v1, %v90_v20  ;;  %v211_v31 = vrot.slane %v4539_v50, %v4335_v6  ;;  %v117_v61 = vmul.f32 %v4663_v4, %v92_v21 }
  0xce   :  { %7059 = vst [vmem:[#allocation11_spill] sm:$0xff] %v4645_v22  ;;  %v482_v26 = vmul.f32 %v4645_v22, %v4624_v2  ;;  %v201_v20 = vsel %vm200_vm1, %v4504_v41, %v4493_v37  ;;  %v319_v1 = vrot.slane %v4566_v60, %v4341_v9 }
  0xcf   :  { %v4651_v25 = vpop.permute.xlu0 %697 }
  0xd0   :  { %7061 = vst [vmem:[#allocation13_spill] sm:$0xff] %v4651_v25  ;;  %v4659_v14 = vadd.f32 %v482_v26, %v394_v49  ;;  %v93_v49 = vsel %vm89_vm0, %v4470_v30, %v4467_v29  ;;  %v215_v26 = vrot.slane %v4539_v50, %v4341_v9  ;;  %v204_v30 = vsel %vm200_vm1, %v4493_v37, %v4488_v35 }
  0xd1   :  { %v4657_v48 = vpop.permute.xlu1 %513  ;;  %v116_v29 = vmul.f32 %v4667_v18, %v93_v49  ;;  %v4711_v49 = vrot.slane %v119_v32, %v4335_v6  ;;  %v228_v18 = vmul.f32 %v211_v31, %v204_v30  ;;  %v315_v35 = vrot.slane %v4566_v60, %v4335_v6 }
  0xd2   :  { %v229_v24 = vmul.f32 %v215_v26, %v203_v46  ;;  %v327_v50 = vrot.slane %v4566_v60, %v4337_v7  ;;  %v4720_v26 = vld [vmem:[%s6969_s1 + $0x5] ss:$8 sm:$0xf]  ;;  %v4723_v37 = vrot.slane %v117_v61, %v4335_v6  ;;  %v231_v30 = vmul.f32 %v223_v33, %v201_v20  ;;  %v4746_v46 = vld [vmem:[%s6969_s1 + $0x6] ss:$8 sm:$0xf] }
  0xd3   :  { %7068 = vst [vmem:[#allocation20_spill] sm:$0xff] %v4711_v49  ;;  %v4726_v41 = vrot.slane %v116_v29, %v4335_v6  ;;  %v307_v61 = vsel %vm304_vm2, %v4525_v47, %v4495_v38  ;;  %7072 = vst [vmem:[#allocation24_spill] sm:$0xff] %v4746_v46  ;;  %v171_v4 = vmul.f32 %v4711_v49, %v4465_v28 }
  0xd4   :  { %v4687_v25 = vpop.permute.xlu0 %809  ;;  %7069 = vst [vmem:[#allocation21_spill] sm:$0xff] %v4723_v37  ;;  %v4735_v60 = vrot.slane %v229_v24, %v4335_v6  ;;  %v308_v32 = vsel %vm304_vm2, %v4551_v54, %v4525_v47  ;;  %v169_v47 = vmul.f32 %v4723_v37, %v4465_v28 }
  0xd5   :  { %7065 = vst [vmem:[#allocation17_spill] sm:$0xff] %v4687_v25  ;;  %v4692_v55 = vpop.permute.xlu1 %517  ;;  %7070 = vst [vmem:[#allocation22_spill] sm:$0xff] %v4726_v41  ;;  %v168_v20 = vmul.f32 %v4726_v41, %v4465_v28 }
  0xd6   :  { %7066 = vst [vmem:[#allocation18_spill] sm:$0xff] %v4692_v55  ;;  %v185_v28 = vadd.f32 %v169_v47, %v4481_v34  ;;  %v187_v55 = vadd.f32 %v171_v4, %v4481_v34 }
  0xd8   :  { %v4708_v21 = vpop.permute.xlu0 %866 }
  0xd9   :  { %7067 = vst [vmem:[#allocation19_spill] sm:$0xff] %v4708_v21  ;;  %v4761_v21 = vrot.slane %v228_v18, %v4335_v6  ;;  %v332_v18 = vmul.f32 %v315_v35, %v308_v32  ;;  %v305_v32 = vsel %vm304_vm2, %v4578_v0, %v4551_v54 }
  0xda   :  { %v4732_v31 = vpop.permute.xlu1 %445 }
  0xdb   :  { %7071 = vst [vmem:[#allocation23_spill] sm:$0xff] %v4732_v31  ;;  %v478_v29 = vmul.f32 %v4645_v22, %v4732_v31  ;;  %v4781_v31 = vld [vmem:[%s6969_s1 + $0x7] ss:$8 sm:$0xf]  ;;  %v268_v4 = vmul.f32 %v4761_v21, %v4501_v40 }
  0xdc   :  { %v4752_v33 = vpop.permute.xlu0 %801  ;;  %7075 = vst [vmem:[#allocation27_spill] sm:$0xff] %v4781_v31  ;;  %v165_v31 = vmul.f32 %v4723_v37, %v4510_v43 }
  0xdd   :  { %7073 = vst [vmem:[#allocation25_spill] sm:$0xff] %v4752_v33  ;;  %v4768_v24 = vadd.f32 %v478_v29, %v4614_v53  ;;  %v333_v33 = vmul.f32 %v319_v1, %v307_v61  ;;  %v273_v53 = vmul.f32 %v4735_v60, %v4490_v36  ;;  %v4788_v1 = vrot.slane %v231_v30, %v4335_v6 }
  0xde   :  { %v4772_v25 = vpop.permute.xlu1 %552  ;;  %v184_v29 = vadd.f32 %v168_v20, %v4481_v34  ;;  %v272_v30 = vmul.f32 %v4761_v21, %v4490_v36  ;;  %v4834_v34 = vmul.f32 %v4761_v21, %v4499_v39  ;;  %v164_v61 = vmul.f32 %v4726_v41, %v4510_v43 }
  0xdf   :  { %7074 = vst [vmem:[#allocation26_spill] sm:$0xff] %v4768_v24  ;;  %v4806_v35 = vrot.slane %v333_v33, %v4335_v6  ;;  %v4822_v33 = vld [vmem:[%s6969_s1 + $0x20] ss:$8 sm:$0xf]  ;;  %v289_v47 = vadd.f32 %v273_v53, %v185_v28  ;;  %v4826_v24 = vmul.f32 %v4735_v60, %v4499_v39  ;;  %v275_v54 = vmul.f32 %v4788_v1, %v4490_v36 }
  0xe0   :  { %7077 = vst [vmem:[#allocation29_spill] sm:$0xff] %v4822_v33  ;;  %7079 = vst [vmem:[#allocation31_spill] sm:$0xff] %v4834_v34  ;;  %v269_v53 = vmul.f32 %v4735_v60, %v4501_v40  ;;  %v4841_v28 = vrot.slane %v332_v18, %v4335_v6  ;;  %v335_v36 = vmul.f32 %v327_v50, %v305_v32 }
  0xe1   :  { %v4801_v22 = vpop.permute.xlu0 %913  ;;  %7078 = vst [vmem:[#allocation30_spill] sm:$0xff] %v4826_v24  ;;  %v288_v38 = vadd.f32 %v272_v30, %v184_v29  ;;  %v167_v24 = vmul.f32 %v4711_v49, %v4510_v43  ;;  %v271_v18 = vmul.f32 %v4788_v1, %v4501_v40  ;;  %v377_v34 = vmul.f32 %v4806_v35, %v4506_v42 }
  0xe2   :  { %7076 = vst [vmem:[#allocation28_spill] sm:$0xff] %v4801_v22  ;;  %v4813_v20 = vpop.permute.xlu1 %556  ;;  %v411_v50 = vsel %vm408_vm3, %v4616_v19, %v4620_v57  ;;  %v291_v29 = vadd.f32 %v275_v54, %v187_v55  ;;  %v4865_v30 = vmul.f32 %v4574_v63, %v4499_v39  ;;  %v4869_v43 = vmul.f32 %v4788_v1, %v4499_v39 }
  0xe3   :  { %v376_v40 = vmul.f32 %v4841_v28, %v4506_v42  ;;  %v4880_v57 = vrot.slane %v335_v36, %v4335_v6  ;;  %v180_v54 = vadd.f32 %v164_v61, %v4596_v17  ;;  %v181_v39 = vadd.f32 %v165_v31, %v4596_v17 }
  0xe4   :  { %7081 = vst [vmem:[#allocation33_spill] sm:$0xff] %v4869_v43  ;;  %v373_v32 = vmul.f32 %v4806_v35, %v4541_v51  ;;  %v183_v0 = vadd.f32 %v167_v24, %v4596_v17  ;;  %v7082_v55 = vrot.slane %v4629_v3, %v4341_v9  ;;  %v393_v36 = vadd.f32 %v377_v34, %v289_v47 }
  0xe5   :  { %v4845_v22 = vpop.permute.xlu0 %909  ;;  %v372_v31 = vmul.f32 %v4841_v28, %v4541_v51  ;;  %v4906_v49 = vmul.f32 %v4806_v35, %v4558_v58  ;;  %v7086_v24 = vrot.slane %v4629_v3, %v4335_v6  ;;  %v409_v47 = vsel %vm408_vm3, %v4636_v15, %v4515_v45 }
  0xe6   :  { %7080 = vst [vmem:[#allocation32_spill] sm:$0xff] %v4845_v22  ;;  %v4857_v46 = vpop.permute.xlu1 %605  ;;  %v412_v22 = vsel %vm408_vm3, %v4515_v45, %v4616_v19  ;;  %v437_v33 = vmul.f32 %v7082_v55, %v411_v50  ;;  %v4902_v19 = vmul.f32 %v4841_v28, %v4558_v58  ;;  %v530_v50 = vmul.f32 %v4657_v48, %v4354_v12 }
  0xe7   :  { %7085 = vst [vmem:[#allocation36_spill] sm:$0xff] %v4906_v49  ;;  %v436_v34 = vmul.f32 %v7086_v24, %v412_v22  ;;  %v7087_v55 = vrot.slane %v4720_v26, %v4339_v8  ;;  %v284_v37 = vadd.f32 %v268_v4, %v180_v54  ;;  %v392_v41 = vadd.f32 %v376_v40, %v288_v38 }
  0xe8   :  { %7084 = vst [vmem:[#allocation35_spill] sm:$0xff] %v4902_v19  ;;  %v379_v19 = vmul.f32 %v4880_v57, %v4506_v42  ;;  %v287_v9 = vadd.f32 %v271_v18, %v183_v0  ;;  %v4927_v22 = vrot.slane %v437_v33, %v4335_v6  ;;  %v375_v45 = vmul.f32 %v4880_v57, %v4541_v51 }
  0xe9   :  { %v4940_v42 = vmul.f32 %v4605_v23, %v4347_v11  ;;  %v4944_v38 = vmul.f32 %v4605_v23, %v4357_v13  ;;  %v4948_v4 = vmul.f32 %v4605_v23, %v4354_v12  ;;  %v7090_v51 = vrot.slane %v4629_v3, %v4337_v7 }
  0xea   :  { %v4894_v43 = vpop.permute.xlu1 %558  ;;  %v4896_v61 = vpop.permute.xlu0 %141  ;;  %v4955_v33 = vmul.f32 %v4605_v23, %v4344_v10  ;;  %v459_v0 = vrot.slane %v436_v34, %v4335_v6  ;;  %v395_v40 = vadd.f32 %v379_v19, %v291_v29  ;;  %v4961_v54 = vadd.f32 %v372_v31, %v284_v37 }
  0xeb   :  { %7083 = vst [vmem:[#allocation34_spill] sm:$0xff] %v4894_v43  ;;  %v561_v17 = vsel %vm560_vm4, %v4813_v20, %v4894_v43  ;;  %v285_v43 = vadd.f32 %v269_v53, %v181_v39  ;;  %7088 = vst [vmem:[#allocation37_spill] sm:$0xff] %v4940_v42  ;;  %v546_v53 = vadd.f32 %v530_v50, %v4659_v14  ;;  %v7097_v42 = vld [vmem:[#allocation12_spill] sm:$0xff] }
  0xec   :  { %v590_v49 = vmul.f32 %v7087_v55, %v561_v17  ;;  %7089 = vst [vmem:[#allocation38_spill] sm:$0xff] %v4944_v38  ;;  %7091 = vst [vmem:[#allocation39_spill] sm:$0xff] %v4955_v33  ;;  %v174_v3 = vmul.f32 %v4561_v59, %v4896_v61  ;;  %v4969_v17 = vmul.f32 %v4761_v21, %v4609_v27 }
  0xed   :  { %v4963_v39 = vadd.f32 %v373_v32, %v285_v43  ;;  %v480_v23 = vmul.f32 %v459_v0, %v4624_v2  ;;  %v481_v14 = vmul.f32 %v4927_v22, %v4624_v2  ;;  %v4982_v29 = vmul.f32 %v4735_v60, %v4609_v27 }
  0xee   :  { %v4932_v15 = vrot.slane %v590_v49, %v4335_v6  ;;  %v4934_v24 = vpop.permute.xlu1 %509  ;;  %v4936_v8 = vpop.permute.xlu0 %55  ;;  %v439_v49 = vmul.f32 %v7090_v51, %v409_v47  ;;  %v266_v43 = vmul.f32 %v4574_v63, %v4609_v27  ;;  %v4990_v31 = vmul.f32 %v4788_v1, %v4609_v27 }
  0xef   :  { %v190_v32 = vadd.f32 %v174_v3, %v4936_v8  ;;  %v391_v19 = vadd.f32 %v375_v45, %v287_v9  ;;  %v563_v50 = vsel %vm560_vm4, %v4772_v25, %v4586_v5  ;;  %v382_v60 = vmul.f32 %v4593_v16, %v4558_v58 }
  0xf0   :  { %v634_v18 = vmul.f32 %v4932_v15, %v4612_v52  ;;  %v471_v21 = vrot.slane %v439_v49, %v4335_v6  ;;  %v4999_v55 = vmul.f32 %v459_v0, %v4571_v62  ;;  %v5002_v63 = vmul.f32 %v459_v0, %v4554_v56 }
  0xf1   :  { %v5006_v51 = vmul.f32 %v4880_v57, %v4558_v58  ;;  %v294_v9 = vadd.f32 %v4865_v30, %v190_v32  ;;  %v5011_v27 = vmul.f32 %v4927_v22, %v4571_v62  ;;  %v5015_v1 = vmul.f32 %v4927_v22, %v4554_v56 }
  0xf2   :  { %v4974_v34 = vadd.f32 %v634_v18, %v546_v53  ;;  %v4976_v47 = vpop.permute.xlu1 %656  ;;  %v4978_v37 = vpop.permute.xlu0 %126  ;;  %7093 = vst [vmem:[#allocation41_spill] sm:$0xff] %v4999_v55  ;;  %v496_v45 = vadd.f32 %v480_v23, %v392_v41  ;;  %v497_v49 = vadd.f32 %v481_v14, %v393_v36  ;;  %v7095_v18 = vld [vmem:[#allocation11_spill] sm:$0xff]  ;;  %v483_v58 = vmul.f32 %v471_v21, %v4624_v2 }
  0xf3   :  { %7092 = vst [vmem:[#allocation40_spill] sm:$0xff] %v4976_v47  ;;  %7094 = vst [vmem:[#allocation42_spill] sm:$0xff] %v5011_v27  ;;  %v486_v3 = vmul.f32 %v7095_v18, %v4554_v56  ;;  %v7096_v30 = vrot.slane %v4720_v26, %v4335_v6  ;;  %v398_v33 = vadd.f32 %v382_v60, %v294_v9 }
  0xf4   :  { %v5029_v27 = vmul.f32 %v4841_v28, %v7097_v42  ;;  %v5033_v41 = vmul.f32 %v4806_v35, %v7097_v42  ;;  %v528_v36 = vmul.f32 %v4657_v48, %v4347_v11  ;;  %v162_v2 = vmul.f32 %v4561_v59, %v4978_v37 }
  0xf5   :  { %v588_v32 = vmul.f32 %v7096_v30, %v563_v50  ;;  %v370_v23 = vmul.f32 %v4593_v16, %v7097_v42  ;;  %v529_v14 = vmul.f32 %v4657_v48, %v4357_v13  ;;  %v531_v28 = vmul.f32 %v4657_v48, %v4344_v10  ;;  %v7100_v48 = vld [vmem:[#allocation18_spill] sm:$0xff] }
  0xf6   :  { %v5017_v53 = vpop.permute.xlu1 %660  ;;  %v5025_v38 = vpop.permute.xlu0 %40  ;;  %v502_v50 = vadd.f32 %v486_v3, %v398_v33  ;;  %v474_v35 = vmul.f32 %v7095_v18, %v4571_v62  ;;  %v5048_v60 = vmul.f32 %v471_v21, %v4571_v62  ;;  %v5052_v9 = vmul.f32 %v4880_v57, %v7097_v42  ;;  %v7101_v3 = vld [vmem:[#allocation23_spill] sm:$0xff] }
  0xf7   :  { %v178_v59 = vadd.f32 %v162_v2, %v5025_v38  ;;  %v499_v30 = vadd.f32 %v483_v58, %v395_v40  ;;  %v534_v33 = vmul.f32 %v7100_v48, %v4354_v12  ;;  %v476_v55 = vmul.f32 %v459_v0, %v7101_v3 }
  0xf8   :  { %7098 = vst [vmem:[#allocation11_spill] sm:$0xff] %v5048_v60  ;;  %7099 = vst [vmem:[#allocation12_spill] sm:$0xff] %v5052_v9  ;;  %v5062_v18 = vrot.slane %v588_v32, %v4335_v6  ;;  %v5065_v62 = vmul.f32 %v471_v21, %v4554_v56  ;;  %v544_v57 = vadd.f32 %v528_v36, %v496_v45 }
  0xf9   :  { %v477_v42 = vmul.f32 %v4927_v22, %v7101_v3  ;;  %v282_v60 = vadd.f32 %v266_v43, %v178_v59  ;;  %v5069_v2 = vadd.f32 %v529_v14, %v497_v49  ;;  %v5071_v9 = vadd.f32 %v531_v28, %v499_v30  ;;  %v7106_v28 = vld [vmem:[#allocation22_spill] sm:$0xff]  ;;  %v7108_v59 = vld [vmem:[#allocation21_spill] sm:$0xff] }
  0xfa   :  { %v5056_v16 = vpop.permute.xlu1 %709  ;;  %7102 = vst [vmem:[#allocation18_spill] sm:$0xff] %v5062_v18  ;;  %v562_v0 = vsel %vm560_vm4, %v4586_v5, %v4813_v20  ;;  %v550_v40 = vadd.f32 %v534_v33, %v502_v50  ;;  %v5079_v58 = vmul.f32 %v7100_v48, %v4347_v11  ;;  %v5083_v56 = vmul.f32 %v7100_v48, %v4357_v13 }
  0xfb   :  { %v479_v22 = vmul.f32 %v471_v21, %v7101_v3  ;;  %v386_v43 = vadd.f32 %v370_v23, %v282_v60  ;;  %v5090_v49 = vmul.f32 %v7100_v48, %v4344_v10  ;;  %v5093_v5 = vadd.f32 %v476_v55, %v4961_v54  ;;  %v7104_v21 = vld [vmem:[#allocation5_spill] sm:$0xff]  ;;  %v7107_v54 = vld [vmem:[#allocation34_spill] sm:$0xff]  ;;  %v7109_v3 = vld [vmem:[#allocation8_spill] sm:$0xff] }
  0xfc   :  { %v632_v20 = vmul.f32 %v5062_v18, %v4612_v52  ;;  %v638_v32 = vmul.f32 %v4932_v15, %v4857_v46  ;;  %v5100_v36 = vadd.f32 %v477_v42, %v4963_v39  ;;  %v7105_v23 = vrot.slane %v4720_v26, %v7104_v21 }
  0xfd   :  { %v172_v50 = vmul.f32 %v7106_v28, %v4896_v61  ;;  %v490_v60 = vadd.f32 %v474_v35, %v386_v43  ;;  %v564_v55 = vsel %vm560_vm4, %v7107_v54, %v4772_v25  ;;  %v173_v30 = vmul.f32 %v7108_v59, %v4896_v61  ;;  %v7111_v35 = vld [vmem:[#allocation20_spill] sm:$0xff] }
  0xfe   :  { %v5086_v45 = vpop.permute.xlu1 %662  ;;  %v589_v14 = vmul.f32 %v7105_v23, %v562_v0  ;;  %v526_v39 = vmul.f32 %v4934_v24, %v4354_v12  ;;  %v654_v48 = vadd.f32 %v638_v32, %v550_v40  ;;  %v5115_v33 = vadd.f32 %v479_v22, %v391_v19 }
  0xff   :  { %7103 = vst [vmem:[#allocation23_spill] sm:$0xff] %v5086_v45  ;;  %v5119_v42 = vmul.f32 %v5062_v18, %v7109_v3  ;;  %v175_v0 = vmul.f32 %v7111_v35, %v4896_v61  ;;  %v188_v43 = vadd.f32 %v172_v50, %v4936_v8  ;;  %v5126_v25 = vadd.f32 %v632_v20, %v544_v57  ;;  %v7115_v57 = vld [vmem:[#allocation24_spill] sm:$0xff] }
 0x100   :  { %v189_v54 = vadd.f32 %v173_v30, %v4936_v8  ;;  %v538_v12 = vadd.f32 %v4948_v4, %v490_v60  ;;  %v665_v19 = vsel %vm664_vm5, %v5017_v53, %v5086_v45  ;;  %v5135_v40 = vrot.slane %v589_v14, %v4335_v6  ;;  %v7116_v20 = vld [vmem:[#allocation4_spill] sm:$0xff]  ;;  %v7118_v60 = vld [vmem:[#allocation26_spill] sm:$0xff] }
 0x101   :  { %7110 = vst [vmem:[#allocation5_spill] sm:$0xff] %v5119_v42  ;;  %7113 = vst [vmem:[#allocation34_spill] sm:$0xff] %v5126_v25  ;;  %v7114_v61 = vrot.slane %v4720_v26, %v4337_v7  ;;  %v191_v32 = vadd.f32 %v175_v0, %v4936_v8  ;;  %v7117_v50 = vrot.slane %v7115_v57, %v7116_v20  ;;  %v7119_v25 = vld [vmem:[#allocation7_spill] sm:$0xff]  ;;  %v7123_v7 = vld [vmem:[#allocation33_spill] sm:$0xff] }
 0x102   :  { %v5124_v23 = vpop.permute.xlu1 %597  ;;  %v626_v4 = vmul.f32 %v4932_v15, %v7109_v3  ;;  %v542_v42 = vadd.f32 %v526_v39, %v7118_v60  ;;  %v667_v14 = vsel %vm664_vm5, %v4976_v47, %v7119_v25  ;;  %v5155_v8 = vmul.f32 %v5062_v18, %v4857_v46  ;;  %v7126_v47 = vld [vmem:[#allocation9_spill] sm:$0xff] }
 0x103   :  { %7112 = vst [vmem:[#allocation22_spill] sm:$0xff] %v5124_v23  ;;  %v591_v22 = vmul.f32 %v7114_v61, %v564_v55  ;;  %v694_v30 = vmul.f32 %v7117_v50, %v665_v19  ;;  %v630_v26 = vmul.f32 %v4932_v15, %v5124_v23  ;;  %v7121_v55 = vld [vmem:[#allocation31_spill] sm:$0xff]  ;;  %v160_v19 = vmul.f32 %v7106_v28, %v4978_v37  ;;  %v7122_v50 = vld [vmem:[#allocation30_spill] sm:$0xff] }
 0x104   :  { %7120 = vst [vmem:[#allocation21_spill] sm:$0xff] %v5155_v8  ;;  %v292_v0 = vadd.f32 %v7121_v55, %v188_v43  ;;  %v293_v60 = vadd.f32 %v7122_v50, %v189_v54  ;;  %v161_v15 = vmul.f32 %v7108_v59, %v4978_v37  ;;  %v642_v18 = vadd.f32 %v626_v4, %v538_v12  ;;  %v7128_v12 = vld [vmem:[#allocation35_spill] sm:$0xff] }
 0x105   :  { %v5161_v61 = vrot.slane %v694_v30, %v4335_v6  ;;  %v5169_v23 = vadd.f32 %v630_v26, %v542_v42  ;;  %v295_v43 = vadd.f32 %v7123_v7, %v191_v32  ;;  %v7124_v28 = vrot.slane %v7115_v57, %v4335_v6  ;;  %v7125_v30 = vld [vmem:[#allocation13_spill] sm:$0xff] }
 0x106   :  { %v5164_v39 = vpop.permute.xlu1 %760  ;;  %v5181_v54 = vmul.f32 %v5135_v40, %v7109_v3  ;;  %v5184_v59 = vrot.slane %v591_v22, %v4335_v6  ;;  %v176_v42 = vadd.f32 %v160_v19, %v5025_v38  ;;  %v396_v32 = vadd.f32 %v7128_v12, %v292_v0  ;;  %v7129_v19 = vld [vmem:[#allocation36_spill] sm:$0xff] }
 0x107   :  { %v692_v55 = vmul.f32 %v7124_v28, %v667_v14  ;;  %v730_v45 = vmul.f32 %v5161_v61, %v7125_v30  ;;  %v738_v8 = vmul.f32 %v5161_v61, %v7126_v47  ;;  %v742_v7 = vmul.f32 %v5161_v61, %v5056_v16 }
 0x108   :  { %7127 = vst [vmem:[#allocation8_spill] sm:$0xff] %v5181_v54  ;;  %v666_v4 = vsel %vm664_vm5, %v7119_v25, %v5017_v53  ;;  %v177_v14 = vadd.f32 %v161_v15, %v5025_v38  ;;  %v633_v22 = vmul.f32 %v5135_v40, %v4612_v52  ;;  %v397_v28 = vadd.f32 %v7129_v19, %v293_v60 }
 0x109   :  { %v5196_v26 = vadd.f32 %v738_v8, %v4974_v34  ;;  %v163_v54 = vmul.f32 %v7111_v35, %v4978_v37  ;;  %v5203_v0 = vadd.f32 %v742_v7, %v654_v48  ;;  %v524_v12 = vmul.f32 %v4934_v24, %v4347_v11 }
 0x10a   :  { %v765_v50 = vpop.permute.xlu1 %764  ;;  %v399_v53 = vadd.f32 %v5006_v51, %v295_v43  ;;  %v5209_v25 = vrot.slane %v692_v55, %v4335_v6  ;;  %v5211_v34 = vadd.f32 %v730_v45, %v642_v18  ;;  %v637_v8 = vmul.f32 %v5135_v40, %v4857_v46 }
 0x10b   :  { %v7130_v60 = vrot.slane %v7115_v57, %v7104_v21  ;;  %v179_v37 = vadd.f32 %v163_v54, %v5025_v38  ;;  %v280_v48 = vadd.f32 %v4969_v17, %v176_v42  ;;  %v635_v11 = vmul.f32 %v5184_v59, %v4612_v52 }
 0x10c   :  { %v525_v51 = vmul.f32 %v4934_v24, %v4357_v13  ;;  %v500_v18 = vadd.f32 %v5002_v63, %v396_v32  ;;  %v281_v45 = vadd.f32 %v4982_v29, %v177_v14  ;;  %v649_v43 = vadd.f32 %v633_v22, %v5069_v2  ;;  %v7132_v32 = vld [vmem:[#allocation34_spill] sm:$0xff] }
 0x10d   :  { %v693_v15 = vmul.f32 %v7130_v60, %v666_v4  ;;  %v5231_v55 = vmul.f32 %v5184_v59, %v7109_v3  ;;  %v527_v38 = vmul.f32 %v4934_v24, %v4344_v10  ;;  %v501_v52 = vadd.f32 %v5015_v1, %v397_v28  ;;  %v7131_v1 = vld [vmem:[#allocation10_spill] sm:$0xff]  ;;  %v7136_v28 = vld [vmem:[#allocation12_spill] sm:$0xff] }
 0x10e   :  { %v5226_v35 = vpop.permute.xlu1 %813  ;;  %v639_v13 = vmul.f32 %v5184_v59, %v4857_v46  ;;  %v5239_v17 = vadd.f32 %v524_v12, %v5093_v5  ;;  %v503_v29 = vadd.f32 %v5065_v62, %v399_v53  ;;  %v736_v63 = vmul.f32 %v5209_v25, %v7126_v47  ;;  %v7137_v12 = vld [vmem:[#allocation41_spill] sm:$0xff] }
 0x10f   :  { %v5246_v2 = vrot.slane %v693_v15, %v4335_v6  ;;  %v283_v10 = vadd.f32 %v4990_v31, %v179_v37  ;;  %v384_v24 = vadd.f32 %v5029_v27, %v280_v48  ;;  %v771_v46 = vsel %vm768_vm6, %v5164_v39, %v7131_v1  ;;  %v7138_v15 = vld [vmem:[#allocation42_spill] sm:$0xff]  ;;  %v7139_v48 = vld [vmem:[#allocation21_spill] sm:$0xff] }
 0x110   :  { %v5255_v5 = vadd.f32 %v635_v11, %v5071_v9  ;;  %v5258_v62 = vadd.f32 %v525_v51, %v5100_v36  ;;  %v385_v3 = vadd.f32 %v5033_v41, %v281_v45  ;;  %v548_v54 = vadd.f32 %v5079_v58, %v500_v18  ;;  %v7133_v41 = vld [vmem:[#allocation27_spill] sm:$0xff] }
 0x111   :  { %v5263_v31 = vadd.f32 %v527_v38, %v5115_v33  ;;  %v5267_v27 = vmul.f32 %v5209_v25, %v7125_v30  ;;  %v549_v7 = vadd.f32 %v5083_v56, %v501_v52  ;;  %v551_v36 = vadd.f32 %v5090_v49, %v503_v29  ;;  %v7140_v52 = vld [vmem:[#allocation40_spill] sm:$0xff]  ;;  %v7141_v29 = vld [vmem:[#allocation23_spill] sm:$0xff] }
 0x112   :  { %v767_v42 = vpop.permute.xlu1 %766  ;;  %v752_v4 = vadd.f32 %v736_v63, %v7132_v32  ;;  %v7134_v58 = vrot.slane %v7133_v41, %v4335_v6  ;;  %v7135_v33 = vrot.slane %v7133_v41, %v7116_v20  ;;  %v737_v19 = vmul.f32 %v5246_v2, %v7126_v47  ;;  %v7145_v32 = vld [vmem:[#allocation37_spill] sm:$0xff] }
 0x113   :  { %v769_v9 = vsel %vm768_vm6, %v765_v50, %v767_v42  ;;  %v387_v56 = vadd.f32 %v7136_v28, %v283_v10  ;;  %v488_v53 = vadd.f32 %v7137_v12, %v384_v24  ;;  %v770_v49 = vsel %vm768_vm6, %v7131_v1, %v765_v50 }
 0x114   :  { %v796_v14 = vmul.f32 %v7134_v58, %v771_v46  ;;  %v798_v22 = vmul.f32 %v7135_v33, %v769_v9  ;;  %v5289_v60 = vmul.f32 %v5246_v2, %v7125_v30  ;;  %v489_v37 = vadd.f32 %v7138_v15, %v385_v3  ;;  %v7143_v46 = vld [vmem:[#allocation17_spill] sm:$0xff] }
 0x115   :  { %v652_v11 = vadd.f32 %v7139_v48, %v548_v54  ;;  %v653_v45 = vadd.f32 %v637_v8, %v549_v7  ;;  %v740_v38 = vmul.f32 %v5209_v25, %v5056_v16  ;;  %v668_v50 = vsel %vm664_vm5, %v7141_v29, %v7140_v52  ;;  %v7144_v7 = vld [vmem:[#allocation11_spill] sm:$0xff] }
 0x116   :  { %v5294_v51 = vrot.slane %v798_v22, %v4335_v6  ;;  %v5296_v18 = vpop.permute.xlu1 %701  ;;  %v5307_v10 = vrot.slane %v796_v14, %v4335_v6  ;;  %v7142_v24 = vrot.slane %v7133_v41, %v7104_v21  ;;  %v753_v54 = vadd.f32 %v737_v19, %v649_v43  ;;  %v7146_v14 = vld [vmem:[#allocation38_spill] sm:$0xff]  ;;  %v7147_v43 = vld [vmem:[#allocation3_spill] sm:$0xff] }
 0x117   :  { %v734_v63 = vmul.f32 %v5161_v61, %v5296_v18  ;;  %v491_v9 = vadd.f32 %v7144_v7, %v387_v56  ;;  %v536_v58 = vadd.f32 %v7145_v32, %v488_v53  ;;  %v537_v33 = vadd.f32 %v7146_v14, %v489_v37  ;;  %v7149_v53 = vld [vmem:[#allocation19_spill] sm:$0xff]  ;;  %v7150_v37 = vld [vmem:[#allocation25_spill] sm:$0xff] }
 0x118   :  { %v797_v1 = vmul.f32 %v7142_v24, %v770_v49  ;;  %v842_v8 = vmul.f32 %v5294_v51, %v7143_v46  ;;  %v846_v3 = vmul.f32 %v5294_v51, %v5226_v35  ;;  %v741_v22 = vmul.f32 %v5246_v2, %v5056_v16  ;;  %v7154_v24 = vld [vmem:[#allocation22_spill] sm:$0xff] }
 0x119   :  { %v5319_v61 = vadd.f32 %v734_v63, %v5169_v23  ;;  %v7148_v19 = vrot.slane %v7115_v57, %v7147_v43  ;;  %v772_v23 = vsel %vm768_vm6, %v767_v42, %v5164_v39  ;;  %v756_v48 = vadd.f32 %v740_v38, %v652_v11  ;;  %v7151_v57 = vld [vmem:[#allocation29_spill] sm:$0xff]  ;;  %v7153_v63 = vld [vmem:[#allocation39_spill] sm:$0xff] }
 0x11a   :  { %v5325_v28 = vadd.f32 %v842_v8, %v5196_v26  ;;  %v5328_v12 = vadd.f32 %v846_v3, %v5203_v0  ;;  %v865_v49 = vpop.permute.xlu1 %864  ;;  %v834_v26 = vmul.f32 %v5294_v51, %v7150_v37  ;;  %v840_v0 = vmul.f32 %v5307_v10, %v7143_v46  ;;  %v7155_v8 = vld [vmem:[#allocation18_spill] sm:$0xff] }
 0x11b   :  { %v695_v56 = vmul.f32 %v7148_v19, %v668_v50  ;;  %v875_v15 = vsel %vm872_vm7, %v865_v49, %v7149_v53  ;;  %v5344_v52 = vrot.slane %v797_v1, %v4335_v6  ;;  %v7152_v29 = vrot.slane %v7151_v57, %v4335_v6 }
 0x11c   :  { %v5350_v39 = vadd.f32 %v7153_v63, %v491_v9  ;;  %v655_v42 = vadd.f32 %v639_v13, %v551_v36  ;;  %v628_v3 = vmul.f32 %v7155_v8, %v7154_v24  ;;  %v5355_v7 = vadd.f32 %v834_v26, %v5211_v34  ;;  %v7159_v26 = vld [vmem:[#allocation5_spill] sm:$0xff] }
 0x11d   :  { %v900_v50 = vmul.f32 %v7152_v29, %v875_v15  ;;  %v757_v11 = vadd.f32 %v741_v22, %v653_v45  ;;  %v629_v38 = vmul.f32 %v5135_v40, %v7154_v24  ;;  %v7156_v1 = vrot.slane %v7133_v41, %v7147_v43  ;;  %v7157_v22 = vld [vmem:[#allocation28_spill] sm:$0xff] }
 0x11e   :  { %v869_v9 = vpop.permute.xlu1 %868  ;;  %v5366_v13 = vrot.slane %v695_v56, %v4335_v6  ;;  %v631_v36 = vmul.f32 %v5184_v59, %v7154_v24  ;;  %v844_v34 = vmul.f32 %v5307_v10, %v5226_v35  ;;  %v856_v45 = vadd.f32 %v840_v0, %v752_v4 }
 0x11f   :  { %v799_v32 = vmul.f32 %v7156_v1, %v772_v23  ;;  %v5363_v14 = vrot.slane %v900_v50, %v4335_v6  ;;  %v874_v40 = vsel %vm872_vm7, %v7149_v53, %v869_v9  ;;  %v841_v41 = vmul.f32 %v5344_v52, %v7143_v46  ;;  %v7160_v50 = vld [vmem:[#allocation8_spill] sm:$0xff] }
 0x120   :  { %v7158_v56 = vrot.slane %v7151_v57, %v7104_v21  ;;  %v644_v59 = vadd.f32 %v628_v3, %v5239_v17  ;;  %v845_v15 = vmul.f32 %v5344_v52, %v5226_v35  ;;  %v640_v29 = vadd.f32 %v7159_v26, %v536_v58 }
 0x121   :  { %v944_v19 = vmul.f32 %v5363_v14, %v7157_v22  ;;  %v5387_v53 = vadd.f32 %v7160_v50, %v537_v33  ;;  %v645_v4 = vadd.f32 %v629_v38, %v5258_v62  ;;  %v5391_v0 = vrot.slane %v799_v32, %v4335_v6 }
 0x122   :  { %v901_v23 = vmul.f32 %v7158_v56, %v874_v40  ;;  %v918_v8 = vpop.permute.xlu1 %917  ;;  %v739_v17 = vmul.f32 %v5366_v13, %v7126_v47  ;;  %v5399_v3 = vadd.f32 %v631_v36, %v5263_v31  ;;  %v860_v58 = vadd.f32 %v844_v34, %v756_v48 }
 0x123   :  { %v960_v63 = vadd.f32 %v944_v19, %v856_v45  ;;  %v948_v33 = vmul.f32 %v5363_v14, %v918_v8  ;;  %v857_v1 = vadd.f32 %v841_v41, %v753_v54  ;;  %v743_v32 = vmul.f32 %v5366_v13, %v5056_v16 }
 0x124   :  { %v5394_v24 = vrot.slane %v901_v23, %v4335_v6  ;;  %v861_v45 = vadd.f32 %v845_v15, %v757_v11  ;;  %v732_v47 = vmul.f32 %v5209_v25, %v5296_v18  ;;  %v5413_v48 = vmul.f32 %v5366_v13, %v7125_v30 }
 0x125   :  { %v5402_v40 = vmax.f32 %v960_v63, 0.0  ;;  %v964_v31 = vadd.f32 %v948_v33, %v860_v58  ;;  %v843_v54 = vmul.f32 %v5391_v0, %v7143_v46  ;;  %v847_v36 = vmul.f32 %v5391_v0, %v5226_v35 }
 0x126   :  { %v945_v62 = vmul.f32 %v5394_v24, %v7157_v22  ;;  %v949_v38 = vmul.f32 %v5394_v24, %v918_v8  ;;  %v871_v41 = vpop.permute.xlu1 %870  ;;  %v755_v19 = vadd.f32 %v739_v17, %v5255_v5  ;;  %v7162_v35 = vrot.slane %v7151_v57, %v7116_v20 }
 0x127   :  { %1392 = vrot.lane.b32.xlu1 %v5402_v40, %s4262_s21  ;;  %v5421_v11 = vmax.f32 %v964_v31, 0.0  ;;  %v873_v25 = vsel %vm872_vm7, %v869_v9, %v871_v41  ;;  %v876_v30 = vsel %vm872_vm7, %v871_v41, %v865_v49  ;;  %v7163_v23 = vrot.slane %v7151_v57, %v7147_v43 }
 0x128   :  { %v961_v34 = vadd.f32 %v945_v62, %v857_v1  ;;  %v965_v16 = vadd.f32 %v949_v38, %v861_v45  ;;  %v902_v56 = vmul.f32 %v7162_v35, %v873_v25  ;;  %v759_v26 = vadd.f32 %v743_v32, %v655_v42 }
 0x129   :  { %7161 = vst [vmem:[#allocation20_spill] sm:$0xff] %v5421_v11  ;;  %v903_v15 = vmul.f32 %v7163_v23, %v876_v30  ;;  %v733_v50 = vmul.f32 %v5246_v2, %v5296_v18  ;;  %v748_v9 = vadd.f32 %v732_v47, %v644_v59  ;;  %v744_v63 = vadd.f32 %v5267_v27, %v640_v29 }
 0x12a   :  { %v5428_v46 = vmax.f32 %v961_v34, 0.0  ;;  %v859_v49 = vadd.f32 %v843_v54, %v755_v19  ;;  %v931_v5 = vrot.slane %v902_v56, %v4335_v6  ;;  %v806_v58 = vpop.permute.xlu1 %805  ;;  %v863_v57 = vadd.f32 %v847_v36, %v759_v26  ;;  %v7164_v36 = vld [vmem:[#allocation32_spill] sm:$0xff] }
 0x12b   :  { %v935_v17 = vrot.slane %v903_v15, %v4335_v6  ;;  %1394 = vrot.lane.b32.xlu1 %v5421_v11, %s4262_s21  ;;  %v5445_v42 = vmax.f32 %v965_v16, 0.0  ;;  %v836_v2 = vmul.f32 %v5307_v10, %v806_v58  ;;  %v838_v59 = vmul.f32 %v5294_v51, %v806_v58 }
 0x12c   :  { %1400 = vrot.lane.b32.xlu0 %v5428_v46, %s4262_s21  ;;  %v946_v27 = vmul.f32 %v931_v5, %v7157_v22  ;;  %v950_v33 = vmul.f32 %v931_v5, %v918_v8  ;;  %v837_v62 = vmul.f32 %v5344_v52, %v806_v58  ;;  %v832_v45 = vmul.f32 %v5307_v10, %v7150_v37 }
 0x12d   :  { %v947_v29 = vmul.f32 %v935_v17, %v7157_v22  ;;  %v951_v1 = vmul.f32 %v935_v17, %v918_v8  ;;  %v852_v38 = vadd.f32 %v836_v2, %v748_v9  ;;  %v854_v32 = vadd.f32 %v838_v59, %v5319_v61 }
 0x12e   :  { %v5456_v47 = vadd.f32 %v946_v27, %v5325_v28  ;;  %v5459_v51 = vadd.f32 %v950_v33, %v5328_v12  ;;  %v735_v22 = vmul.f32 %v5366_v13, %v5296_v18  ;;  %v749_v8 = vadd.f32 %v733_v50, %v645_v4  ;;  %v5623_v33 = vld [vmem:[%s6969_s1 + $0x3] ss:$8 sm:$0xf] }
 0x12f   :  { %v963_v31 = vadd.f32 %v947_v29, %v859_v49  ;;  %v967_v54 = vadd.f32 %v951_v1, %v863_v57  ;;  %1402 = vrot.lane.b32.xlu1 %v5445_v42, %s4262_s21  ;;  %v940_v61 = vmul.f32 %v5363_v14, %v7164_v36  ;;  %v942_v10 = vmul.f32 %v931_v5, %v7164_v36  ;;  %v906_v34 = vpop.permute.xlu1 %905 }
 0x130   :  { %v745_v12 = vadd.f32 %v5289_v60, %v5387_v53  ;;  %v833_v16 = vmul.f32 %v5344_v52, %v7150_v37  ;;  %v839_v25 = vmul.f32 %v5391_v0, %v806_v58  ;;  %v853_v18 = vadd.f32 %v837_v62, %v749_v8 }
 0x131   :  { %v5468_v28 = vmax.f32 %v963_v31, 0.0  ;;  %v5470_v41 = vmax.f32 %v967_v54, 0.0  ;;  %v956_v13 = vadd.f32 %v940_v61, %v852_v38  ;;  %v5477_v4 = vadd.f32 %v942_v10, %v854_v32 }
 0x132   :  { %v848_v30 = vadd.f32 %v832_v45, %v744_v63  ;;  %v936_v19 = vmul.f32 %v5363_v14, %v906_v34  ;;  %v937_v35 = vmul.f32 %v5394_v24, %v906_v34  ;;  %v938_v56 = vmul.f32 %v931_v5, %v906_v34 }
 0x133   :  { %7165 = vst [vmem:[#allocation24_spill] sm:$0xff] %v5470_v41  ;;  %1416 = vrot.lane.b32.xlu0 %v5468_v28, %s4262_s21  ;;  %v751_v60 = vadd.f32 %v735_v22, %v5399_v3  ;;  %v941_v52 = vmul.f32 %v5394_v24, %v7164_v36  ;;  %v643_v53 = vadd.f32 %v5231_v55, %v5350_v39  ;;  %v5494_v63 = vmax.f32 %v956_v13, 0.0 }
 0x134   :  { %1418 = vrot.lane.b32.xlu1 %v5470_v41, %s4262_s21  ;;  %v835_v14 = vmul.f32 %v5391_v0, %v7150_v37  ;;  %v849_v23 = vadd.f32 %v833_v16, %v745_v12  ;;  %v952_v15 = vadd.f32 %v936_v19, %v848_v30  ;;  %v954_v26 = vadd.f32 %v938_v56, %v5355_v7 }
 0x135   :  { %v855_v50 = vadd.f32 %v839_v25, %v751_v60  ;;  %v943_v9 = vmul.f32 %v935_v17, %v7164_v36  ;;  %v957_v3 = vadd.f32 %v941_v52, %v853_v18  ;;  %7166 = vst [vmem:[#allocation4_spill] sm:$0xff] %v5494_v63  ;;  %v747_v24 = vadd.f32 %v5413_v48, %v643_v53 }
 0x136   :  { %v939_v49 = vmul.f32 %v935_v17, %v906_v34  ;;  %v953_v55 = vadd.f32 %v937_v35, %v849_v23  ;;  %v5497_v39 = vmax.f32 %v952_v15, 0.0  ;;  %v5572_v57 = vmax.f32 %v5459_v51, 0.0 }
 0x137   :  { %v851_v37 = vadd.f32 %v835_v14, %v747_v24  ;;  %v959_v7 = vadd.f32 %v943_v9, %v855_v50  ;;  %v5503_v0 = vmax.f32 %v957_v3, 0.0  ;;  %v5575_v2 = vmax.f32 %v5456_v47, 0.0  ;;  %v5698_v50 = vld [vmem:[%s6969_s1 + $0x2] ss:$8 sm:$0xf] }
 0x138   :  { %1390 = vrot.lane.b32.xlu1 %v5494_v63, %s4262_s21  ;;  %1388 = vrot.lane.b32.xlu0 %v5497_v39, %s4262_s21  ;;  %v5505_v58 = vmax.f32 %v953_v55, 0.0  ;;  %7170 = vst [vmem:[#allocation30_spill] sm:$0xff] %v5572_v57  ;;  %v5602_v59 = vmax.f32 %v5477_v4, 0.0  ;;  %v5604_v27 = vmax.f32 %v954_v26, 0.0  ;;  %v1445_v38 = vrot.slane %v5623_v33, %v7104_v21 }
 0x139   :  { %7167 = vst [vmem:[#allocation26_spill] sm:$0xff] %v5503_v0  ;;  %v955_v5 = vadd.f32 %v939_v49, %v851_v37  ;;  %v5511_v48 = vmax.f32 %v959_v7, 0.0  ;;  %7171 = vst [vmem:[#allocation33_spill] sm:$0xff] %v5575_v2  ;;  %v1441_v54 = vrot.slane %v5623_v33, %v4335_v6  ;;  %v1303_v49 = vrot.slane %v5698_v50, %v7104_v21 }
 0x13a   :  { %7168 = vst [vmem:[#allocation7_spill] sm:$0xff] %v5505_v58  ;;  %7172 = vst [vmem:[#allocation13_spill] sm:$0xff] %v5602_v59 }
 0x13b   :  { %7169 = vst [vmem:[#allocation31_spill] sm:$0xff] %v5511_v48  ;;  %v5513_v17 = vmax.f32 %v955_v5, 0.0  ;;  %7173 = vst [vmem:[#allocation9_spill] sm:$0xff] %v5604_v27 }
 0x13c   :  { %1398 = vrot.lane.b32.xlu1 %v5503_v0, %s4262_s21  ;;  %1396 = vrot.lane.b32.xlu0 %v5505_v58, %s4262_s21 }
 0x140   :  { %1414 = vrot.lane.b32.xlu1 %v5511_v48, %s4262_s21  ;;  %1412 = vrot.lane.b32.xlu0 %v5513_v17, %s4262_s21 }
 0x144   :  { %1252 = vrot.lane.b32.xlu1 %v5421_v11, %s4260_s16  ;;  %1250 = vrot.lane.b32.xlu0 %v5402_v40, %s4260_s16 }
 0x148   :  { %1260 = vrot.lane.b32.xlu1 %v5445_v42, %s4260_s16  ;;  %1258 = vrot.lane.b32.xlu0 %v5428_v46, %s4260_s16 }
 0x14c   :  { %1276 = vrot.lane.b32.xlu1 %v5470_v41, %s4260_s16  ;;  %1274 = vrot.lane.b32.xlu0 %v5468_v28, %s4260_s16 }
 0x150   :  { %1248 = vrot.lane.b32.xlu1 %v5494_v63, %s4260_s16  ;;  %1246 = vrot.lane.b32.xlu0 %v5497_v39, %s4260_s16 }
 0x154   :  { %1256 = vrot.lane.b32.xlu1 %v5503_v0, %s4260_s16  ;;  %1254 = vrot.lane.b32.xlu0 %v5505_v58, %s4260_s16 }
 0x158   :  { %1272 = vrot.lane.b32.xlu1 %v5511_v48, %s4260_s16  ;;  %1270 = vrot.lane.b32.xlu0 %v5513_v17, %s4260_s16 }
 0x15c   :  { %1110 = vrot.lane.b32.xlu1 %v5421_v11, %s4259_s15  ;;  %1108 = vrot.lane.b32.xlu0 %v5402_v40, %s4259_s15 }
 0x160   :  { %1118 = vrot.lane.b32.xlu1 %v5445_v42, %s4259_s15  ;;  %1116 = vrot.lane.b32.xlu0 %v5428_v46, %s4259_s15 }
 0x164   :  { %1134 = vrot.lane.b32.xlu1 %v5470_v41, %s4259_s15  ;;  %1132 = vrot.lane.b32.xlu0 %v5468_v28, %s4259_s15 }
 0x168   :  { %1106 = vrot.lane.b32.xlu1 %v5494_v63, %s4259_s15  ;;  %1104 = vrot.lane.b32.xlu0 %v5497_v39, %s4259_s15 }
 0x16c   :  { %1114 = vrot.lane.b32.xlu1 %v5503_v0, %s4259_s15  ;;  %1112 = vrot.lane.b32.xlu0 %v5505_v58, %s4259_s15 }
 0x170   :  { %1130 = vrot.lane.b32.xlu1 %v5511_v48, %s4259_s15  ;;  %1128 = vrot.lane.b32.xlu0 %v5513_v17, %s4259_s15 }
 0x174   :  { %2026 = vrot.lane.b32.xlu1 %v5445_v42, %s4271_s28  ;;  %2024 = vrot.lane.b32.xlu0 %v5428_v46, %s4271_s28 }
 0x178   :  { %2034 = vrot.lane.b32.xlu1 %v5572_v57, %s4271_s28  ;;  %2032 = vrot.lane.b32.xlu0 %v5575_v2, %s4271_s28 }
 0x17c   :  { %2018 = vrot.lane.b32.xlu1 %v5421_v11, %s4271_s28  ;;  %2016 = vrot.lane.b32.xlu0 %v5402_v40, %s4271_s28 }
 0x180   :  { %990 = vrot.lane.b32.xlu1 %v5421_v11, %s4258_s13  ;;  %988 = vrot.lane.b32.xlu0 %v5402_v40, %s4258_s13 }
 0x184   :  { %998 = vrot.lane.b32.xlu1 %v5445_v42, %s4258_s13  ;;  %996 = vrot.lane.b32.xlu0 %v5428_v46, %s4258_s13 }
 0x188   :  { %1014 = vrot.lane.b32.xlu1 %v5470_v41, %s4258_s13  ;;  %1012 = vrot.lane.b32.xlu0 %v5468_v28, %s4258_s13 }
 0x18c   :  { %2022 = vrot.lane.b32.xlu1 %v5503_v0, %s4271_s28  ;;  %2020 = vrot.lane.b32.xlu0 %v5505_v58, %s4271_s28 }
 0x190   :  { %2030 = vrot.lane.b32.xlu1 %v5602_v59, %s4271_s28  ;;  %2028 = vrot.lane.b32.xlu0 %v5604_v27, %s4271_s28 }
 0x194   :  { %2014 = vrot.lane.b32.xlu1 %v5494_v63, %s4271_s28  ;;  %2012 = vrot.lane.b32.xlu0 %v5497_v39, %s4271_s28 }
 0x198   :  { %986 = vrot.lane.b32.xlu1 %v5494_v63, %s4258_s13  ;;  %984 = vrot.lane.b32.xlu0 %v5497_v39, %s4258_s13 }
 0x199   :  { %v1393_v29 = vpop.permute.xlu1 %1392 }
 0x19c   :  { %994 = vrot.lane.b32.xlu1 %v5503_v0, %s4258_s13  ;;  %992 = vrot.lane.b32.xlu0 %v5505_v58, %s4258_s13 }
 0x19d   :  { %v1395_v1 = vpop.permute.xlu1 %1394 }
 0x19e   :  { %v5627_v62 = vpop.permute.xlu0 %1400 }
 0x19f   :  { %v1430_v32 = vsel %vm408_vm3, %v1393_v29, %v5627_v62 }
 0x1a0   :  { %1010 = vrot.lane.b32.xlu1 %v5511_v48, %s4258_s13  ;;  %1008 = vrot.lane.b32.xlu0 %v5513_v17, %s4258_s13  ;;  %v1467_v31 = vmul.f32 %v1445_v38, %v1430_v32 }
 0x1a1   :  { %v5638_v45 = vpop.permute.xlu1 %1402 }
 0x1a2   :  { %v1431_v47 = vsel %vm408_vm3, %v1395_v1, %v5638_v45 }
 0x1a3   :  { %v1471_v51 = vmul.f32 %v1445_v38, %v1431_v47 }
 0x1a4   :  { %1410 = vrot.lane.b32.xlu1 %v5572_v57, %s4262_s21  ;;  %1408 = vrot.lane.b32.xlu0 %v5575_v2, %s4262_s21 }
 0x1a5   :  { %v5649_v22 = vpop.permute.xlu0 %1416  ;;  %v3959_v8 = vpack.c.bf16 %v1471_v51, %v1467_v31 }
 0x1a6   :  { %v5651_v36 = vpop.permute.xlu1 %1418  ;;  %v1434_v61 = vsel %vm408_vm3, %v5649_v22, %v1393_v29 }
 0x1a7   :  { %v1435_v10 = vsel %vm408_vm3, %v5651_v36, %v1395_v1  ;;  %2723 = vmatprep.subr.bf16.mxu0 %v3959_v8  ;;  %v1466_v34 = vmul.f32 %v1441_v54, %v1434_v61  ;;  %v1299_v1 = vrot.slane %v5698_v50, %v4335_v6 }
 0x1a8   :  { %1884 = vrot.lane.b32.xlu1 %v5445_v42, %s4269_s27  ;;  %v1470_v12 = vmul.f32 %v1441_v54, %v1435_v10  ;;  %1882 = vrot.lane.b32.xlu0 %v5428_v46, %s4269_s27 }
 0x1aa   :  { %v1391_v16 = vpop.permute.xlu1 %1390  ;;  %v3958_v25 = vpack.c.bf16 %v1470_v12, %v1466_v34  ;;  %v1389_v18 = vpop.permute.xlu0 %1388 }
 0x1ac   :  { %1892 = vrot.lane.b32.xlu1 %v5572_v57, %s4269_s27  ;;  %2724 = vmatpush1.bf16.msra.mxu0 %v3958_v25 }
 0x1ad   :  { %1890 = vrot.lane.b32.xlu0 %v5575_v2, %s4269_s27 }
 0x1ae   :  { %v5667_v13 = vpop.permute.xlu1 %1398  ;;  %v5672_v30 = vpop.permute.xlu0 %1396 }
 0x1af   :  { %v1429_v4 = vsel %vm408_vm3, %v1391_v16, %v5667_v13  ;;  %v1428_v35 = vsel %vm408_vm3, %v1389_v18, %v5672_v30 }
 0x1b0   :  { %v1463_v19 = vmul.f32 %v1445_v38, %v1429_v4  ;;  %1876 = vrot.lane.b32.xlu1 %v5421_v11, %s4269_s27  ;;  %v1459_v56 = vmul.f32 %v1445_v38, %v1428_v35 }
 0x1b1   :  { %1874 = vrot.lane.b32.xlu0 %v5402_v40, %s4269_s27 }
 0x1b2   :  { %v5681_v60 = vpop.permute.xlu1 %1414  ;;  %v5686_v53 = vpop.permute.xlu0 %1412  ;;  %v3955_v14 = vpack.c.bf16 %v1463_v19, %v1459_v56 }
 0x1b3   :  { %v1433_v52 = vsel %vm408_vm3, %v5681_v60, %v1391_v16  ;;  %v1432_v15 = vsel %vm408_vm3, %v5686_v53, %v1389_v18 }
 0x1b4   :  { %v1462_v23 = vmul.f32 %v1441_v54, %v1433_v52  ;;  %1406 = vrot.lane.b32.xlu1 %v5602_v59, %s4262_s21  ;;  %v1458_v26 = vmul.f32 %v1441_v54, %v1432_v15  ;;  %2725 = vmatprep.subr.bf16.mxu0 %v3955_v14 }
 0x1b5   :  { %1404 = vrot.lane.b32.xlu0 %v5604_v27, %s4262_s21 }
 0x1b6   :  { %v1253_v9 = vpop.permute.xlu1 %1252  ;;  %v1251_v3 = vpop.permute.xlu0 %1250  ;;  %v3954_v24 = vpack.c.bf16 %v1462_v23, %v1458_v26 }
 0x1b8   :  { %1880 = vrot.lane.b32.xlu1 %v5503_v0, %s4269_s27  ;;  %2726 = vmatpush1.bf16.msra.mxu0 %v3954_v24 }
 0x1b9   :  { %1878 = vrot.lane.b32.xlu0 %v5505_v58, %s4269_s27 }
 0x1ba   :  { %v5706_v55 = vpop.permute.xlu1 %1260  ;;  %v5711_v7 = vpop.permute.xlu0 %1258 }
 0x1bb   :  { %v1289_v37 = vsel %vm304_vm2, %v1253_v9, %v5706_v55  ;;  %v1288_v29 = vsel %vm304_vm2, %v1251_v3, %v5711_v7 }
 0x1bc   :  { %v1329_v5 = vmul.f32 %v1303_v49, %v1289_v37  ;;  %1888 = vrot.lane.b32.xlu1 %v5602_v59, %s4269_s27  ;;  %v1325_v38 = vmul.f32 %v1303_v49, %v1288_v29 }
 0x1bd   :  { %1886 = vrot.lane.b32.xlu0 %v5604_v27, %s4269_s27 }
 0x1be   :  { %v5722_v32 = vpop.permute.xlu1 %1276  ;;  %v5727_v31 = vpop.permute.xlu0 %1274  ;;  %v3951_v51 = vpack.c.bf16 %v1329_v5, %v1325_v38 }
 0x1bf   :  { %v1293_v47 = vsel %vm304_vm2, %v5722_v32, %v1253_v9  ;;  %v1292_v8 = vsel %vm304_vm2, %v5727_v31, %v1251_v3  ;;  %v5771_v3 = vld [vmem:[%s6969_s1 + $0x1] ss:$8 sm:$0xf] }
 0x1c0   :  { %v1328_v54 = vmul.f32 %v1299_v1, %v1293_v47  ;;  %1872 = vrot.lane.b32.xlu1 %v5494_v63, %s4269_s27  ;;  %v1324_v61 = vmul.f32 %v1299_v1, %v1292_v8  ;;  %2727 = vmatprep.subr.bf16.mxu0 %v3951_v51  ;;  %v1161_v5 = vrot.slane %v5771_v3, %v7104_v21 }
 0x1c1   :  { %1870 = vrot.lane.b32.xlu0 %v5497_v39, %s4269_s27 }
 0x1c2   :  { %v1249_v10 = vpop.permute.xlu1 %1248  ;;  %v1247_v34 = vpop.permute.xlu0 %1246  ;;  %v3950_v12 = vpack.c.bf16 %v1328_v54, %v1324_v61  ;;  %v1157_v54 = vrot.slane %v5771_v3, %v4335_v6 }
 0x1c4   :  { %1268 = vrot.lane.b32.xlu1 %v5572_v57, %s4260_s16  ;;  %2728 = vmatpush1.bf16.msra.mxu0 %v3950_v12 }
 0x1c5   :  { %1266 = vrot.lane.b32.xlu0 %v5575_v2, %s4260_s16 }
 0x1c6   :  { %v5740_v16 = vpop.permute.xlu1 %1256  ;;  %v5745_v18 = vpop.permute.xlu0 %1254 }
 0x1c7   :  { %v1287_v25 = vsel %vm304_vm2, %v1249_v10, %v5740_v16  ;;  %v1286_v19 = vsel %vm304_vm2, %v1247_v34, %v5745_v18 }
 0x1c8   :  { %v1321_v4 = vmul.f32 %v1303_v49, %v1287_v25  ;;  %1742 = vrot.lane.b32.xlu1 %v5445_v42, %s4267_s2  ;;  %v1317_v35 = vmul.f32 %v1303_v49, %v1286_v19 }
 0x1c9   :  { %1740 = vrot.lane.b32.xlu0 %v5428_v46, %s4267_s2 }
 0x1ca   :  { %v5754_v56 = vpop.permute.xlu1 %1272  ;;  %v5759_v14 = vpop.permute.xlu0 %1270  ;;  %v3947_v23 = vpack.c.bf16 %v1321_v4, %v1317_v35 }
 0x1cb   :  { %v1291_v52 = vsel %vm304_vm2, %v5754_v56, %v1249_v10  ;;  %v1290_v26 = vsel %vm304_vm2, %v5759_v14, %v1247_v34 }
 0x1cc   :  { %v1320_v15 = vmul.f32 %v1299_v1, %v1291_v52  ;;  %1750 = vrot.lane.b32.xlu1 %v5572_v57, %s4267_s2  ;;  %v1316_v9 = vmul.f32 %v1299_v1, %v1290_v26  ;;  %2729 = vmatprep.subr.bf16.mxu0 %v3947_v23 }
 0x1cd   :  { %1748 = vrot.lane.b32.xlu0 %v5575_v2, %s4267_s2 }
 0x1ce   :  { %v1111_v24 = vpop.permute.xlu1 %1110  ;;  %v1109_v49 = vpop.permute.xlu0 %1108  ;;  %v3946_v37 = vpack.c.bf16 %v1320_v15, %v1316_v9 }
 0x1d0   :  { %1734 = vrot.lane.b32.xlu1 %v5421_v11, %s4267_s2  ;;  %2730 = vmatpush1.bf16.msra.mxu0 %v3946_v37 }
 0x1d1   :  { %1732 = vrot.lane.b32.xlu0 %v5402_v40, %s4267_s2 }
 0x1d2   :  { %v5779_v29 = vpop.permute.xlu1 %1118  ;;  %v5784_v38 = vpop.permute.xlu0 %1116 }
 0x1d3   :  { %v1147_v1 = vsel %vm200_vm1, %v1111_v24, %v5779_v29  ;;  %v1146_v51 = vsel %vm200_vm1, %v1109_v49, %v5784_v38 }
 0x1d4   :  { %v1187_v47 = vmul.f32 %v1161_v5, %v1147_v1  ;;  %1264 = vrot.lane.b32.xlu1 %v5602_v59, %s4260_s16  ;;  %v1183_v8 = vmul.f32 %v1161_v5, %v1146_v51 }
 0x1d5   :  { %1262 = vrot.lane.b32.xlu0 %v5604_v27, %s4260_s16 }
 0x1d6   :  { %v5795_v61 = vpop.permute.xlu1 %1134  ;;  %v5800_v34 = vpop.permute.xlu0 %1132  ;;  %v3943_v12 = vpack.c.bf16 %v1187_v47, %v1183_v8 }
 0x1d7   :  { %v1151_v10 = vsel %vm200_vm1, %v5795_v61, %v1111_v24  ;;  %v1150_v4 = vsel %vm200_vm1, %v5800_v34, %v1109_v49 }
 0x1d8   :  { %v1186_v25 = vmul.f32 %v1157_v54, %v1151_v10  ;;  %1738 = vrot.lane.b32.xlu1 %v5503_v0, %s4267_s2  ;;  %v1182_v19 = vmul.f32 %v1157_v54, %v1150_v4  ;;  %2731 = vmatprep.subr.bf16.mxu0 %v3943_v12 }
 0x1d9   :  { %1736 = vrot.lane.b32.xlu0 %v5505_v58, %s4267_s2 }
 0x1da   :  { %v1107_v35 = vpop.permute.xlu1 %1106  ;;  %v1105_v52 = vpop.permute.xlu0 %1104  ;;  %v3942_v23 = vpack.c.bf16 %v1186_v25, %v1182_v19  ;;  %v5844_v25 = vld [vmem:[%s6969_s1 + $0x20] ss:$8 sm:$0xf] }
 0x1db   :  { %7174 = vst [vmem:[#allocation35_spill] sm:$0xff] %v5844_v25 }
 0x1dc   :  { %1746 = vrot.lane.b32.xlu1 %v5602_v59, %s4267_s2  ;;  %2732 = vmatpush1.bf16.msra.mxu0 %v3942_v23 }
 0x1dd   :  { %1744 = vrot.lane.b32.xlu0 %v5604_v27, %s4267_s2 }
 0x1de   :  { %v5813_v15 = vpop.permute.xlu1 %1114  ;;  %v5818_v9 = vpop.permute.xlu0 %1112 }
 0x1df   :  { %v1145_v26 = vsel %vm200_vm1, %v1107_v35, %v5813_v15  ;;  %v1144_v49 = vsel %vm200_vm1, %v1105_v52, %v5818_v9 }
 0x1e0   :  { %v1179_v24 = vmul.f32 %v1161_v5, %v1145_v26  ;;  %1730 = vrot.lane.b32.xlu1 %v5494_v63, %s4267_s2  ;;  %v1175_v37 = vmul.f32 %v1161_v5, %v1144_v49 }
 0x1e1   :  { %1728 = vrot.lane.b32.xlu0 %v5497_v39, %s4267_s2 }
 0x1e2   :  { %v5827_v1 = vpop.permute.xlu1 %1130  ;;  %v5832_v51 = vpop.permute.xlu0 %1128  ;;  %v3939_v8 = vpack.c.bf16 %v1179_v24, %v1175_v37  ;;  %v2065_v37 = vrot.slane %v5844_v25, %v4335_v6 }
 0x1e3   :  { %v1149_v47 = vsel %vm200_vm1, %v5827_v1, %v1107_v35  ;;  %v1148_v12 = vsel %vm200_vm1, %v5832_v51, %v1105_v52  ;;  %v2069_v52 = vrot.slane %v5844_v25, %v7104_v21 }
 0x1e4   :  { %v1178_v10 = vmul.f32 %v1157_v54, %v1149_v47  ;;  %1126 = vrot.lane.b32.xlu1 %v5572_v57, %s4259_s15  ;;  %v1174_v5 = vmul.f32 %v1157_v54, %v1148_v12  ;;  %2733 = vmatprep.subr.bf16.mxu0 %v3939_v8 }
 0x1e5   :  { %1124 = vrot.lane.b32.xlu0 %v5575_v2, %s4259_s15 }
 0x1e6   :  { %v2027_v4 = vpop.permute.xlu1 %2026  ;;  %v2025_v19 = vpop.permute.xlu0 %2024  ;;  %v3938_v35 = vpack.c.bf16 %v1178_v10, %v1174_v5 }
 0x1e8   :  { %1600 = vrot.lane.b32.xlu1 %v5445_v42, %s4264_s26  ;;  %2734 = vmatpush1.bf16.msra.mxu0 %v3938_v35 }
 0x1e9   :  { %1598 = vrot.lane.b32.xlu0 %v5428_v46, %s4264_s26 }
 0x1ea   :  { %v5852_v54 = vpop.permute.xlu1 %2034  ;;  %v5854_v23 = vpop.permute.xlu0 %2032 }
 0x1eb   :  { %7175 = vst [vmem:[#allocation36_spill] sm:$0xff] %v5852_v54  ;;  %7176 = vst [vmem:[#allocation10_spill] sm:$0xff] %v5854_v23  ;;  %v2051_v26 = vsel %vm872_vm7, %v2027_v4, %v5852_v54  ;;  %v2050_v24 = vsel %vm872_vm7, %v2025_v19, %v5854_v23 }
 0x1ec   :  { %1608 = vrot.lane.b32.xlu1 %v5572_v57, %s4264_s26  ;;  %v2095_v49 = vmul.f32 %v2069_v52, %v2051_v26  ;;  %v2091_v47 = vmul.f32 %v2069_v52, %v2050_v24 }
 0x1ed   :  { %1606 = vrot.lane.b32.xlu0 %v5575_v2, %s4264_s26 }
 0x1ee   :  { %v5868_v8 = vpop.permute.xlu1 %2018  ;;  %v5873_v12 = vpop.permute.xlu0 %2016  ;;  %v3999_v5 = vpack.c.bf16 %v2095_v49, %v2091_v47  ;;  %v7179_v47 = vld [vmem:[#allocation15_spill] sm:$0xff] }
 0x1ef   :  { %7177 = vst [vmem:[#allocation34_spill] sm:$0xff] %v5868_v8  ;;  %v2055_v10 = vsel %vm872_vm7, %v5868_v8, %v2027_v4  ;;  %7178 = vst [vmem:[#allocation27_spill] sm:$0xff] %v5873_v12  ;;  %v2054_v35 = vsel %vm872_vm7, %v5873_v12, %v2025_v19  ;;  %v7180_v12 = vld [vmem:[#allocation16_spill] sm:$0xff] }
 0x1f0   :  { %1592 = vrot.lane.b32.xlu1 %v5421_v11, %s4264_s26  ;;  %v2094_v26 = vmul.f32 %v2065_v37, %v2055_v10  ;;  %2808 = vmatprep.subr.bf16.mxu1 %v3999_v5  ;;  %v2090_v24 = vmul.f32 %v2065_v37, %v2054_v35 }
 0x1f1   :  { %1590 = vrot.lane.b32.xlu0 %v5402_v40, %s4264_s26 }
 0x1f2   :  { %v991_v23 = vpop.permute.xlu1 %990  ;;  %v989_v54 = vpop.permute.xlu0 %988  ;;  %v3998_v25 = vpack.c.bf16 %v2094_v26, %v2090_v24 }
 0x1f4   :  { %1122 = vrot.lane.b32.xlu1 %v5602_v59, %s4259_s15  ;;  %2809 = vmatpush1.bf16.msra.mxu1 %v3998_v25 }
 0x1f5   :  { %1120 = vrot.lane.b32.xlu0 %v5604_v27, %s4259_s15 }
 0x1f6   :  { %v5886_v4 = vpop.permute.xlu1 %998  ;;  %v5891_v49 = vpop.permute.xlu0 %996 }
 0x1f7   :  { %v1027_v19 = vsel %vm89_vm0, %v991_v23, %v5886_v4  ;;  %v1026_v5 = vsel %vm89_vm0, %v989_v54, %v5891_v49 }
 0x1f8   :  { %v1045_v10 = vmul.f32 %v1027_v19, %v7179_v47  ;;  %1596 = vrot.lane.b32.xlu1 %v5503_v0, %s4264_s26  ;;  %v1041_v35 = vmul.f32 %v1026_v5, %v7179_v47 }
 0x1f9   :  { %1594 = vrot.lane.b32.xlu0 %v5505_v58, %s4264_s26 }
 0x1fa   :  { %v5902_v25 = vpop.permute.xlu1 %1014  ;;  %v5907_v24 = vpop.permute.xlu0 %1012  ;;  %v3935_v19 = vpack.c.bf16 %v1045_v10, %v1041_v35  ;;  %v5932_v35 = vld [vmem:[%s6970_s4 + $0x4] ss:$12 sps:$4 sm:$0xff]  }
 0x1fb   :  { %v1031_v26 = vsel %vm89_vm0, %v5902_v25, %v991_v23  ;;  %v1030_v0 = vsel %vm89_vm0, %v5907_v24, %v989_v54  ;;  %2755 = vmatprep.mubr.bf16.mxu0 %v5932_v35 }
 0x1fc   :  { %v1044_v8 = vmul.f32 %v1031_v26, %v7180_v12  ;;  %1604 = vrot.lane.b32.xlu1 %v5602_v59, %s4264_s26  ;;  %v1040_v5 = vmul.f32 %v1030_v0, %v7180_v12  ;;  %2735 = vmatprep.subr.bf16.mxu0 %v3935_v19 }
 0x1fd   :  { %1602 = vrot.lane.b32.xlu0 %v5604_v27, %s4264_s26 }
 0x1fe   :  { %v2023_v58 = vpop.permute.xlu1 %2022  ;;  %v2021_v23 = vpop.permute.xlu0 %2020  ;;  %v3934_v11 = vpack.c.bf16 %v1044_v8, %v1040_v5 }
 0x200   :  { %1588 = vrot.lane.b32.xlu1 %v5494_v63, %s4264_s26  ;;  %2736 = vmatpush1.bf16.msra.mxu0 %v3934_v11 }
 0x201   :  { %1586 = vrot.lane.b32.xlu0 %v5497_v39, %s4264_s26 }
 0x202   :  { %v5922_v54 = vpop.permute.xlu1 %2030  ;;  %v5927_v10 = vpop.permute.xlu0 %2028 }
 0x203   :  { %7181 = vst [vmem:[#allocation12_spill] sm:$0xff] %v5922_v54  ;;  %v2049_v0 = vsel %vm872_vm7, %v2023_v58, %v5922_v54  ;;  %7182 = vst [vmem:[#allocation41_spill] sm:$0xff] %v5927_v10  ;;  %v2048_v26 = vsel %vm872_vm7, %v2021_v23, %v5927_v10 }
 0x204   :  { %v2087_v8 = vmul.f32 %v2069_v52, %v2049_v0  ;;  %1006 = vrot.lane.b32.xlu1 %v5572_v57, %s4258_s13  ;;  %v2083_v11 = vmul.f32 %v2069_v52, %v2048_v26 }
 0x205   :  { %1004 = vrot.lane.b32.xlu0 %v5575_v2, %s4258_s13 }
 0x206   :  { %v5942_v19 = vpop.permute.xlu1 %2014  ;;  %v5947_v0 = vpop.permute.xlu0 %2012  ;;  %v3995_v54 = vpack.c.bf16 %v2087_v8, %v2083_v11  ;;  %v7186_v8 = vmov 0  }
 0x207   :  { %7183 = vst [vmem:[#allocation42_spill] sm:$0xff] %v5942_v19  ;;  %v2053_v5 = vsel %vm872_vm7, %v5942_v19, %v2023_v58  ;;  %7184 = vst [vmem:[#allocation21_spill] sm:$0xff] %v5947_v0  ;;  %v2052_v10 = vsel %vm872_vm7, %v5947_v0, %v2021_v23  ;;  %v5961_v58 = vld [vmem:[%s6970_s4 + $0x8] ss:$12 sps:$4 sm:$0xff]  }
 0x208   :  { %v2086_v63 = vmul.f32 %v2065_v37, %v2053_v5  ;;  %1002 = vrot.lane.b32.xlu1 %v5602_v59, %s4258_s13  ;;  %v2082_v52 = vmul.f32 %v2065_v37, %v2052_v10  ;;  %2810 = vmatprep.subr.bf16.mxu1 %v3995_v54  ;;  %7185 = vst [vmem:[#allocation40_spill] sm:$0xff] %v5961_v58 }
 0x209   :  { %1000 = vrot.lane.b32.xlu0 %v5604_v27, %s4258_s13 }
 0x20a   :  { %v987_v26 = vpop.permute.xlu1 %986  ;;  %v985_v57 = vpop.permute.xlu0 %984  ;;  %v3994_v2 = vpack.c.bf16 %v2086_v63, %v2082_v52 }
 0x20c   :  { %1900 = vrot.lane.b32.xlu1 %v5470_v41, %s4269_s27  ;;  %2811 = vmatpush1.bf16.msra.mxu1 %v3994_v2 }
 0x20d   :  { %1898 = vrot.lane.b32.xlu0 %v5468_v28, %s4269_s27 }
 0x20e   :  { %v5965_v37 = vpop.permute.xlu1 %994  ;;  %v5970_v63 = vpop.permute.xlu0 %992 }
 0x20f   :  { %v1025_v23 = vsel %vm89_vm0, %v987_v26, %v5965_v37  ;;  %v1024_v10 = vsel %vm89_vm0, %v985_v57, %v5970_v63  ;;  %3834 = vmatmul.mubr.msk.bf16.vlgmr.msra.gmra.mxu1 %vm2710_vm8, %v5961_v58  ;;  %v6003_v58 = vrot.slane %v5623_v33, %v7147_v43 }
 0x210   :  { %v1037_v54 = vmul.f32 %v1025_v23, %v7179_v47  ;;  %1896 = vrot.lane.b32.xlu1 %v5511_v48, %s4269_s27  ;;  %v1033_v2 = vmul.f32 %v1024_v10, %v7179_v47  ;;  %2838 = vmatprep.mubr.bf16.mxu1 %v7186_v8  ;;  %v5999_v10 = vrot.slane %v5623_v33, %v7116_v20 }
 0x211   :  { %1894 = vrot.lane.b32.xlu0 %v5513_v17, %s4269_s27 }
 0x212   :  { %v5984_v11 = vpop.permute.xlu1 %1010  ;;  %v5989_v52 = vpop.permute.xlu0 %1008  ;;  %v3931_v23 = vpack.c.bf16 %v1037_v54, %v1033_v2 }
 0x213   :  { %v1029_v5 = vsel %vm89_vm0, %v5984_v11, %v987_v26  ;;  %v1028_v47 = vsel %vm89_vm0, %v5989_v52, %v985_v57  ;;  %v6011_v57 = vld [vmem:[%s6970_s4 + $0x20] ss:$12 sps:$4 sm:$0xff]  }
 0x214   :  { %v1036_v59 = vmul.f32 %v1029_v5, %v7180_v12  ;;  %1758 = vrot.lane.b32.xlu1 %v5470_v41, %s4267_s2  ;;  %v1032_v26 = vmul.f32 %v1028_v47, %v7180_v12  ;;  %2737 = vmatprep.subr.bf16.mxu0 %v3931_v23  ;;  %7187 = vst [vmem:[#allocation23_spill] sm:$0xff] %v6011_v57 }
 0x215   :  { %1756 = vrot.lane.b32.xlu0 %v5468_v28, %s4267_s2 }
 0x216   :  { %v1411_v54 = vpop.permute.xlu1 %1410  ;;  %v1409_v5 = vpop.permute.xlu0 %1408  ;;  %v3930_v12 = vpack.c.bf16 %v1036_v59, %v1032_v26  ;;  %v6036_v59 = vld [vmem:[%s6969_s1 + $0x7] ss:$8 sm:$0xf] }
 0x217   :  { %v1423_v2 = vsel %vm408_vm3, %v1411_v54, %v5651_v36  ;;  %v1427_v33 = vsel %vm408_vm3, %v5638_v45, %v1411_v54  ;;  %v1422_v27 = vsel %vm408_vm3, %v1409_v5, %v5649_v22  ;;  %v1426_v0 = vsel %vm408_vm3, %v5627_v62, %v1409_v5  ;;  %3835 = vmatmul.mubr.msk.bf16.gmra.mxu1 %vm2710_vm8, %v6011_v57 }
 0x218   :  { %v1472_v47 = vmul.f32 %v5999_v10, %v1427_v33  ;;  %v1473_v23 = vmul.f32 %v6003_v58, %v1423_v2  ;;  %1754 = vrot.lane.b32.xlu1 %v5511_v48, %s4267_s2  ;;  %v1468_v36 = vmul.f32 %v5999_v10, %v1426_v0  ;;  %v1469_v45 = vmul.f32 %v6003_v58, %v1422_v27  ;;  %v6052_v2 = vld [vmem:[%s6970_s4 + $0x38] ss:$12 sps:$4 sm:$0xff]  }
 0x219   :  { %1752 = vrot.lane.b32.xlu0 %v5513_v17, %s4267_s2  ;;  %2738 = vmatpush1.bf16.msra.mxu0 %v3930_v12  ;;  %v1927_v27 = vrot.slane %v6036_v59, %v7104_v21  ;;  %7188 = vst [vmem:[#allocation17_spill] sm:$0xff] %v6052_v2 }
 0x21a   :  { %v1885_v22 = vpop.permute.xlu1 %1884  ;;  %v3960_v62 = vpack.c.bf16 %v1472_v47, %v1468_v36  ;;  %v1883_v26 = vpop.permute.xlu0 %1882  ;;  %v3961_v54 = vpack.c.bf16 %v1473_v23, %v1469_v45  ;;  %2848 = vmatprep.mubr.bf16.mxu1 %v7186_v8  ;;  %v1923_v23 = vrot.slane %v6036_v59, %v4335_v6 }
 0x21c   :  { %1616 = vrot.lane.b32.xlu1 %v5470_v41, %s4264_s26  ;;  %2869 = vmatprep.subr.bf16.mxu1 %v3961_v54 }
 0x21d   :  { %1614 = vrot.lane.b32.xlu0 %v5468_v28, %s4264_s26  ;;  %2870 = vmatpush1.bf16.msra.mxu1 %v3960_v62 }
 0x21e   :  { %v6047_v0 = vpop.permute.xlu1 %1892 }
 0x21f   :  { %v1909_v33 = vsel %vm768_vm6, %v1885_v22, %v6047_v0  ;;  %v6057_v5 = vpop.permute.xlu0 %1890  ;;  %3836 = vmatmul.mubr.msk.bf16.gmra.mxu1 %vm2710_vm8, %v6052_v2 }
 0x220   :  { %v1953_v12 = vmul.f32 %v1927_v27, %v1909_v33  ;;  %v1908_v47 = vsel %vm768_vm6, %v1883_v26, %v6057_v5  ;;  %1612 = vrot.lane.b32.xlu1 %v5511_v48, %s4264_s26  ;;  %2858 = vmatprep.mubr.bf16.mxu1 %v7186_v8 }
 0x221   :  { %v1949_v36 = vmul.f32 %v1927_v27, %v1908_v47  ;;  %1610 = vrot.lane.b32.xlu0 %v5513_v17, %s4264_s26 }
 0x222   :  { %v6068_v45 = vpop.permute.xlu1 %1876 }
 0x223   :  { %v1913_v62 = vsel %vm768_vm6, %v6068_v45, %v1885_v22  ;;  %v6075_v54 = vpop.permute.xlu0 %1874  ;;  %v3991_v33 = vpack.c.bf16 %v1953_v12, %v1949_v36  ;;  %v6088_v22 = vld [vmem:[%s6970_s4 + $0x50] ss:$12 sps:$4 sm:$0xff]  }
 0x224   :  { %v1952_v57 = vmul.f32 %v1923_v23, %v1913_v62  ;;  %v1912_v47 = vsel %vm768_vm6, %v6075_v54, %v1883_v26  ;;  %2042 = vrot.lane.b32.xlu1 %v5470_v41, %s4271_s28  ;;  %7189 = vst [vmem:[#allocation11_spill] sm:$0xff] %v6088_v22 }
 0x225   :  { %v1948_v19 = vmul.f32 %v1923_v23, %v1912_v47  ;;  %2040 = vrot.lane.b32.xlu0 %v5468_v28, %s4271_s28  ;;  %2739 = vmatprep.subr.bf16.mxu0 %v3991_v33 }
 0x226   :  { %v1407_v2 = vpop.permute.xlu1 %1406 }
 0x227   :  { %v1421_v12 = vsel %vm408_vm3, %v1407_v2, %v5681_v60  ;;  %v1425_v26 = vsel %vm408_vm3, %v5667_v13, %v1407_v2  ;;  %v1405_v36 = vpop.permute.xlu0 %1404  ;;  %v3990_v62 = vpack.c.bf16 %v1952_v57, %v1948_v19  ;;  %3837 = vmatmul.mubr.msk.bf16.gmra.mxu1 %vm2710_vm8, %v6088_v22 }
 0x228   :  { %v1464_v47 = vmul.f32 %v5999_v10, %v1425_v26  ;;  %v1465_v33 = vmul.f32 %v6003_v58, %v1421_v12  ;;  %v1420_v8 = vsel %vm408_vm3, %v1405_v36, %v5686_v53  ;;  %v1424_v41 = vsel %vm408_vm3, %v5672_v30, %v1405_v36  ;;  %2038 = vrot.lane.b32.xlu1 %v5511_v48, %s4271_s28  ;;  %v2242_v53 = vld [vmem:[%s6971_s5] sm:$0xff] }
 0x229   :  { %v1460_v60 = vmul.f32 %v5999_v10, %v1424_v41  ;;  %v1461_v13 = vmul.f32 %v6003_v58, %v1420_v8  ;;  %2036 = vrot.lane.b32.xlu0 %v5513_v17, %s4271_s28  ;;  %2740 = vmatpush2.bf16.msra.mxu0 %v3990_v62  ;;  %v2245_v58 = vld [vmem:[%s6971_s5 + $0x18] sm:$0xff]  ;;  %v2247_v62 = vld [vmem:[%s6971_s5 + $0x28] sm:$0xff] }
 0x22a   :  { %v1881_v19 = vpop.permute.xlu1 %1880  ;;  %2901 = vmatprep.mubr.bf16.mxu1 %v5932_v35 }
 0x22b   :  { %v3956_v30 = vpack.c.bf16 %v1464_v47, %v1460_v60  ;;  %v1879_v57 = vpop.permute.xlu0 %1878  ;;  %v3957_v2 = vpack.c.bf16 %v1465_v33, %v1461_v13 }
 0x22d   :  { %2252 = vperm.xlu0 %4238, %v2242_v53   ;;  %2871 = vmatprep.subr.bf16.mxu1 %v3957_v2 }
 0x22e   :  { %2872 = vmatpush1.bf16.msra.mxu1 %v3956_v30  ;;  %v6116_v41 = vpop.permute.xlu1 %1888  ;;  %v1311_v30 = vrot.slane %v5698_v50, %v7147_v43 }
 0x22f   :  { %v1907_v8 = vsel %vm768_vm6, %v1881_v19, %v6116_v41  ;;  %v6124_v10 = vpop.permute.xlu0 %1886 }
 0x230   :  { %v1945_v12 = vmul.f32 %v1927_v27, %v1907_v8  ;;  %v1906_v35 = vsel %vm768_vm6, %v1879_v57, %v6124_v10 }
 0x231   :  { %v1941_v26 = vmul.f32 %v1927_v27, %v1906_v35  ;;  %2267 = vperm.xlu0 %4238, %v2245_v58   ;;  %v1307_v27 = vrot.slane %v5698_v50, %v7116_v20 }
 0x232   :  { %v6129_v36 = vpop.permute.xlu1 %1872 }
 0x233   :  { %v1911_v47 = vsel %vm768_vm6, %v6129_v36, %v1881_v19  ;;  %v6137_v33 = vpop.permute.xlu0 %1870  ;;  %v3987_v60 = vpack.c.bf16 %v1945_v12, %v1941_v26  ;;  %v2249_v19 = vld [vmem:[%s6971_s5 + $0x38] sm:$0xff] }
 0x234   :  { %v1944_v13 = vmul.f32 %v1923_v23, %v1911_v47  ;;  %v1910_v53 = vsel %vm768_vm6, %v6137_v33, %v1879_v57 }
 0x235   :  { %v1940_v2 = vmul.f32 %v1923_v23, %v1910_v53  ;;  %2277 = vperm.xlu0 %4238, %v2247_v62   ;;  %2741 = vmatprep.subr.bf16.mxu0 %v3987_v60 }
 0x236   :  { %v1269_v58 = vpop.permute.xlu1 %1268 }
 0x237   :  { %v1281_v8 = vsel %vm304_vm2, %v1269_v58, %v5722_v32  ;;  %v1285_v57 = vsel %vm304_vm2, %v5706_v55, %v1269_v58  ;;  %v1267_v12 = vpop.permute.xlu0 %1266  ;;  %v3986_v35 = vpack.c.bf16 %v1944_v13, %v1940_v2  ;;  %v6164_v55 = vld [vmem:[%s6969_s1 + $0x6] ss:$8 sm:$0xf] }
 0x238   :  { %v1330_v26 = vmul.f32 %v1307_v27, %v1285_v57  ;;  %v1331_v50 = vmul.f32 %v1311_v30, %v1281_v8  ;;  %v1280_v23 = vsel %vm304_vm2, %v1267_v12, %v5727_v31  ;;  %v1284_v62 = vsel %vm304_vm2, %v5711_v7, %v1267_v12  ;;  %v3338_v13 = vld [vmem:[%s6972_s8 + $0x8] sm:$0xff] }
 0x239   :  { %v1326_v47 = vmul.f32 %v1307_v27, %v1284_v62  ;;  %v1327_v60 = vmul.f32 %v1311_v30, %v1280_v23  ;;  %2287 = vperm.xlu0 %4238, %v2249_v19   ;;  %2742 = vmatpush2.bf16.msra.mxu0 %v3986_v35  ;;  %v1785_v7 = vrot.slane %v6164_v55, %v7104_v21  ;;  %v3340_v19 = vld [vmem:[%s6972_s8 + $0x18] sm:$0xff]  ;;  %v3342_v62 = vld [vmem:[%s6972_s8 + $0x28] sm:$0xff] }
 0x23a   :  { %v1743_v32 = vpop.permute.xlu1 %1742 }
 0x23b   :  { %v3952_v53 = vpack.c.bf16 %v1330_v26, %v1326_v47  ;;  %v1741_v31 = vpop.permute.xlu0 %1740  ;;  %v3953_v2 = vpack.c.bf16 %v1331_v50, %v1327_v60  ;;  %v1781_v26 = vrot.slane %v6164_v55, %v4335_v6 }
 0x23d   :  { %3360 = vperm.xlu0 %4238, %v3338_v13   ;;  %2873 = vmatprep.subr.bf16.mxu1 %v3953_v2 }
 0x23e   :  { %2874 = vmatpush1.bf16.msra.mxu1 %v3952_v53  ;;  %v6171_v58 = vpop.permute.xlu1 %1750 }
 0x23f   :  { %v1767_v8 = vsel %vm664_vm5, %v1743_v32, %v6171_v58  ;;  %v6179_v57 = vpop.permute.xlu0 %1748 }
 0x240   :  { %v1811_v12 = vmul.f32 %v1785_v7, %v1767_v8  ;;  %v1766_v35 = vsel %vm664_vm5, %v1741_v31, %v6179_v57 }
 0x241   :  { %v1807_v50 = vmul.f32 %v1785_v7, %v1766_v35  ;;  %3370 = vperm.xlu0 %4238, %v3340_v19   ;;  %v3344_v35 = vld [vmem:[%s6972_s8 + $0x38] sm:$0xff] }
 0x242   :  { %v6186_v23 = vpop.permute.xlu1 %1734 }
 0x243   :  { %v1771_v47 = vsel %vm664_vm5, %v6186_v23, %v1743_v32  ;;  %v6194_v60 = vpop.permute.xlu0 %1732  ;;  %v3983_v13 = vpack.c.bf16 %v1811_v12, %v1807_v50 }
 0x244   :  { %v1810_v53 = vmul.f32 %v1781_v26, %v1771_v47  ;;  %v1770_v2 = vsel %vm664_vm5, %v6194_v60, %v1741_v31 }
 0x245   :  { %v1806_v8 = vmul.f32 %v1781_v26, %v1770_v2  ;;  %3380 = vperm.xlu0 %4238, %v3342_v62   ;;  %2743 = vmatprep.subr.bf16.mxu0 %v3983_v13 }
 0x246   :  { %v1265_v19 = vpop.permute.xlu1 %1264 }
 0x247   :  { %v1279_v32 = vsel %vm304_vm2, %v1265_v19, %v5754_v56  ;;  %v1283_v12 = vsel %vm304_vm2, %v5740_v16, %v1265_v19  ;;  %v1263_v50 = vpop.permute.xlu0 %1262  ;;  %v3982_v47 = vpack.c.bf16 %v1810_v53, %v1806_v8  ;;  %v2243_v56 = vld [vmem:[%s6971_s5 + $0x8] sm:$0xff] }
 0x248   :  { %v1322_v22 = vmul.f32 %v1307_v27, %v1283_v12  ;;  %v1323_v31 = vmul.f32 %v1311_v30, %v1279_v32  ;;  %v1278_v62 = vsel %vm304_vm2, %v1263_v50, %v5759_v14  ;;  %v1282_v13 = vsel %vm304_vm2, %v5745_v18, %v1263_v50  ;;  %v3346_v53 = vld [vmem:[%s6972_s8 + $0x48] sm:$0xff]  ;;  %2257 = vperm.xlu1 %4239, %v2243_v56   ;;  %v2244_v18 = vld [vmem:[%s6971_s5 + $0x10] sm:$0xff]  ;;  %v2246_v12 = vld [vmem:[%s6971_s5 + $0x20] sm:$0xff] }
 0x249   :  { %v1318_v2 = vmul.f32 %v1307_v27, %v1282_v13  ;;  %v1319_v48 = vmul.f32 %v1311_v30, %v1278_v62  ;;  %3390 = vperm.xlu0 %4238, %v3344_v35   ;;  %2744 = vmatpush2.bf16.msra.mxu0 %v3982_v47  ;;  %v3348_v30 = vld [vmem:[%s6972_s8 + $0x58] sm:$0xff] }
 0x24a   :  { %v1739_v16 = vpop.permute.xlu1 %1738 }
 0x24b   :  { %v3948_v8 = vpack.c.bf16 %v1322_v22, %v1318_v2  ;;  %v1737_v14 = vpop.permute.xlu0 %1736  ;;  %v3949_v19 = vpack.c.bf16 %v1323_v31, %v1319_v48  ;;  %v3350_v31 = vld [vmem:[%s6972_s8 + $0x68] sm:$0xff] }
 0x24c   :  { %2262 = vperm.xlu1 %4239, %v2244_v18  }
 0x24d   :  { %3400 = vperm.xlu0 %4238, %v3346_v53   ;;  %2875 = vmatprep.subr.bf16.mxu1 %v3949_v19  ;;  %v6254_v53 = vrot.slane %v5771_v3, %v7116_v20  ;;  %v2248_v19 = vld [vmem:[%s6971_s5 + $0x30] sm:$0xff] }
 0x24e   :  { %2876 = vmatpush1.bf16.msra.mxu1 %v3948_v8  ;;  %v6223_v27 = vpop.permute.xlu1 %1746  ;;  %v1169_v8 = vrot.slane %v5771_v3, %v7147_v43 }
 0x24f   :  { %v1765_v22 = vsel %vm664_vm5, %v1739_v16, %v6223_v27  ;;  %v6231_v35 = vpop.permute.xlu0 %1744 }
 0x250   :  { %v1803_v48 = vmul.f32 %v1785_v7, %v1765_v22  ;;  %v1764_v32 = vsel %vm664_vm5, %v1737_v14, %v6231_v35  ;;  %2272 = vperm.xlu1 %4239, %v2246_v12  }
 0x251   :  { %v1799_v50 = vmul.f32 %v1785_v7, %v1764_v32  ;;  %3410 = vperm.xlu0 %4238, %v3348_v30   ;;  %v3352_v30 = vld [vmem:[%s6972_s8 + $0x78] sm:$0xff] }
 0x252   :  { %v6239_v47 = vpop.permute.xlu1 %1730 }
 0x253   :  { %v1769_v62 = vsel %vm664_vm5, %v6239_v47, %v1739_v16  ;;  %v6247_v13 = vpop.permute.xlu0 %1728  ;;  %v3979_v56 = vpack.c.bf16 %v1803_v48, %v1799_v50 }
 0x254   :  { %v1802_v2 = vmul.f32 %v1781_v26, %v1769_v62  ;;  %v1768_v7 = vsel %vm664_vm5, %v6247_v13, %v1737_v14  ;;  %2282 = vperm.xlu1 %4239, %v2248_v19   ;;  %v6284_v62 = vld [vmem:[%s6969_s1 + $0x5] ss:$8 sm:$0xf] }
 0x255   :  { %v1798_v16 = vmul.f32 %v1781_v26, %v1768_v7  ;;  %3420 = vperm.xlu0 %4238, %v3350_v31   ;;  %2745 = vmatprep.subr.bf16.mxu0 %v3979_v56  ;;  %v3337_v26 = vld [vmem:[%s6972_s8] sm:$0xff] }
 0x256   :  { %v1127_v18 = vpop.permute.xlu1 %1126 }
 0x257   :  { %v1139_v14 = vsel %vm200_vm1, %v1127_v18, %v5795_v61  ;;  %v1143_v3 = vsel %vm200_vm1, %v5779_v29, %v1127_v18  ;;  %v1125_v22 = vpop.permute.xlu0 %1124  ;;  %v3978_v48 = vpack.c.bf16 %v1802_v2, %v1798_v16 }
 0x258   :  { %v1188_v32 = vmul.f32 %v6254_v53, %v1143_v3  ;;  %v1189_v12 = vmul.f32 %v1169_v8, %v1139_v14  ;;  %v1138_v50 = vsel %vm200_vm1, %v1125_v22, %v5800_v34  ;;  %v1142_v61 = vsel %vm200_vm1, %v5784_v38, %v1125_v22  ;;  %3355 = vperm.xlu1 %4239, %v3337_v26   ;;  %v3339_v34 = vld [vmem:[%s6972_s8 + $0x10] sm:$0xff]  ;;  %v3341_v14 = vld [vmem:[%s6972_s8 + $0x20] sm:$0xff] }
 0x259   :  { %v1184_v31 = vmul.f32 %v6254_v53, %v1142_v61  ;;  %v1185_v29 = vmul.f32 %v1169_v8, %v1138_v50  ;;  %3430 = vperm.xlu0 %4238, %v3352_v30   ;;  %2746 = vmatpush2.bf16.msra.mxu0 %v3978_v48  ;;  %v1643_v38 = vrot.slane %v6284_v62, %v7104_v21  ;;  %v3343_v61 = vld [vmem:[%s6972_s8 + $0x30] sm:$0xff] }
 0x25a   :  { %v1601_v56 = vpop.permute.xlu1 %1600  ;;  %v1639_v22 = vrot.slane %v6284_v62, %v4335_v6 }
 0x25b   :  { %v3944_v2 = vpack.c.bf16 %v1188_v32, %v1184_v31  ;;  %v1599_v7 = vpop.permute.xlu0 %1598  ;;  %v3945_v19 = vpack.c.bf16 %v1189_v12, %v1185_v29 }
 0x25c   :  { %3365 = vperm.xlu1 %4239, %v3339_v34  }
 0x25d   :  { %2877 = vmatprep.subr.bf16.mxu1 %v3945_v19 }
 0x25e   :  { %2878 = vmatpush1.bf16.msra.mxu1 %v3944_v2  ;;  %v6291_v16 = vpop.permute.xlu1 %1608 }
 0x25f   :  { %v1625_v18 = vsel %vm560_vm4, %v1601_v56, %v6291_v16  ;;  %v6296_v30 = vpop.permute.xlu0 %1606 }
 0x260   :  { %v1669_v3 = vmul.f32 %v1643_v38, %v1625_v18  ;;  %v1624_v21 = vsel %vm560_vm4, %v1599_v7, %v6296_v30  ;;  %3375 = vperm.xlu1 %4239, %v3341_v14   ;;  %v3345_v14 = vld [vmem:[%s6972_s8 + $0x40] sm:$0xff] }
 0x261   :  { %v1665_v48 = vmul.f32 %v1643_v38, %v1624_v21 }
 0x262   :  { %v6306_v26 = vpop.permute.xlu1 %1592 }
 0x263   :  { %v1629_v32 = vsel %vm560_vm4, %v6306_v26, %v1601_v56  ;;  %v6311_v12 = vpop.permute.xlu0 %1590  ;;  %v3975_v50 = vpack.c.bf16 %v1669_v3, %v1665_v48 }
 0x264   :  { %v1668_v31 = vmul.f32 %v1639_v22, %v1629_v32  ;;  %v1628_v6 = vsel %vm560_vm4, %v6311_v12, %v1599_v7  ;;  %3385 = vperm.xlu1 %4239, %v3343_v61  }
 0x265   :  { %v1664_v29 = vmul.f32 %v1639_v22, %v1628_v6  ;;  %2747 = vmatprep.subr.bf16.mxu0 %v3975_v50  ;;  %v3347_v6 = vld [vmem:[%s6972_s8 + $0x50] sm:$0xff] }
 0x266   :  { %v1123_v2 = vpop.permute.xlu1 %1122 }
 0x267   :  { %v1137_v56 = vsel %vm200_vm1, %v1123_v2, %v5827_v1  ;;  %v1141_v19 = vsel %vm200_vm1, %v5813_v15, %v1123_v2  ;;  %v1121_v34 = vpop.permute.xlu0 %1120  ;;  %v3974_v18 = vpack.c.bf16 %v1668_v31, %v1664_v29 }
 0x268   :  { %v1180_v7 = vmul.f32 %v6254_v53, %v1141_v19  ;;  %v1181_v3 = vmul.f32 %v1169_v8, %v1137_v56  ;;  %v1136_v21 = vsel %vm200_vm1, %v1121_v34, %v5832_v51  ;;  %v1140_v1 = vsel %vm200_vm1, %v5818_v9, %v1121_v34  ;;  %3395 = vperm.xlu1 %4239, %v3345_v14  }
 0x269   :  { %v1176_v48 = vmul.f32 %v6254_v53, %v1140_v1  ;;  %v1177_v15 = vmul.f32 %v1169_v8, %v1136_v21  ;;  %2748 = vmatpush2.bf16.msra.mxu0 %v3974_v18  ;;  %v3349_v8 = vld [vmem:[%s6972_s8 + $0x60] sm:$0xff] }
 0x26a   :  { %v1597_v32 = vpop.permute.xlu1 %1596 }
 0x26b   :  { %v3940_v50 = vpack.c.bf16 %v1180_v7, %v1176_v48  ;;  %v1595_v61 = vpop.permute.xlu0 %1594  ;;  %v3941_v31 = vpack.c.bf16 %v1181_v3, %v1177_v15  ;;  %v3351_v7 = vld [vmem:[%s6972_s8 + $0x70] sm:$0xff] }
 0x26c   :  { %3405 = vperm.xlu1 %4239, %v3347_v6   ;;  %v7190_v6 = vld [vmem:[#allocation6_spill] sm:$0xff] }
 0x26d   :  { %2879 = vmatprep.subr.bf16.mxu1 %v3941_v31  ;;  %v3967_v31 = vpack.c.bf16 %v5445_v42, %v5428_v46  ;;  %v7192_v46 = vld [vmem:[#allocation20_spill] sm:$0xff] }
 0x26e   :  { %2880 = vmatpush1.bf16.msra.mxu1 %v3940_v50  ;;  %v6339_v51 = vpop.permute.xlu1 %1604  ;;  %v3966_v42 = vpack.c.bf16 %v7192_v46, %v5402_v40 }
 0x26f   :  { %v1623_v9 = vsel %vm560_vm4, %v1597_v32, %v6339_v51  ;;  %v6344_v53 = vpop.permute.xlu0 %1602 }
 0x270   :  { %v1661_v29 = vmul.f32 %v1643_v38, %v1623_v9  ;;  %v1622_v2 = vsel %vm560_vm4, %v1595_v61, %v6344_v53  ;;  %3415 = vperm.xlu1 %4239, %v3349_v8  }
 0x271   :  { %v1657_v56 = vmul.f32 %v1643_v38, %v1622_v2 }
 0x272   :  { %v6352_v19 = vpop.permute.xlu1 %1588 }
 0x273   :  { %v1627_v34 = vsel %vm560_vm4, %v6352_v19, %v1597_v32  ;;  %v6357_v18 = vpop.permute.xlu0 %1586  ;;  %v3971_v14 = vpack.c.bf16 %v1661_v29, %v1657_v56  ;;  %v7193_v56 = vld [vmem:[#allocation7_spill] sm:$0xff] }
 0x274   :  { %v1660_v3 = vmul.f32 %v1639_v22, %v1627_v34  ;;  %v1626_v21 = vsel %vm560_vm4, %v6357_v18, %v1595_v61  ;;  %3425 = vperm.xlu1 %4239, %v3351_v7   ;;  %v7191_v61 = vld [vmem:[#allocation14_spill] sm:$0xff]  ;;  %v1935_v7 = vrot.slane %v6036_v59, %v7147_v43 }
 0x275   :  { %v1656_v38 = vmul.f32 %v1639_v22, %v1626_v21  ;;  %2749 = vmatprep.subr.bf16.mxu0 %v3971_v14  ;;  %v7194_v34 = vld [vmem:[#allocation26_spill] sm:$0xff] }
 0x276   :  { %v1007_v1 = vpop.permute.xlu1 %1006  ;;  %v3963_v14 = vpack.c.bf16 %v7194_v34, %v7193_v56 }
 0x277   :  { %v1019_v48 = vsel %vm89_vm0, %v1007_v1, %v5902_v25  ;;  %v1023_v15 = vsel %vm89_vm0, %v5886_v4, %v1007_v1  ;;  %v1005_v32 = vpop.permute.xlu0 %1004  ;;  %v3970_v50 = vpack.c.bf16 %v1660_v3, %v1656_v38 }
 0x278   :  { %v1046_v9 = vmul.f32 %v1023_v15, %v7190_v6  ;;  %v1047_v22 = vmul.f32 %v1019_v48, %v7191_v61  ;;  %v1018_v8 = vsel %vm89_vm0, %v1005_v32, %v5907_v24  ;;  %v1022_v25 = vsel %vm89_vm0, %v5891_v49, %v1005_v32 }
 0x279   :  { %v1042_v29 = vmul.f32 %v1022_v25, %v7190_v6  ;;  %v1043_v4 = vmul.f32 %v1018_v8, %v7191_v61  ;;  %2750 = vmatpush2.bf16.msra.mxu0 %v3970_v50  ;;  %v1931_v24 = vrot.slane %v6036_v59, %v7116_v20  ;;  %v7195_v50 = vld [vmem:[#allocation4_spill] sm:$0xff] }
 0x27a   :  { %2751 = vmatprep.subr.bf16.mxu0 %v3967_v31  ;;  %v1003_v2 = vpop.permute.xlu1 %1002  ;;  %v3962_v31 = vpack.c.bf16 %v7195_v50, %v5497_v39 }
 0x27b   :  { %v3936_v49 = vpack.c.bf16 %v1046_v9, %v1042_v29  ;;  %v1017_v3 = vsel %vm89_vm0, %v1003_v2, %v5984_v11  ;;  %v1021_v21 = vsel %vm89_vm0, %v5965_v37, %v1003_v2  ;;  %v1001_v38 = vpop.permute.xlu0 %1000  ;;  %v3937_v40 = vpack.c.bf16 %v1047_v22, %v1043_v4 }
 0x27c   :  { %v1038_v1 = vmul.f32 %v1021_v21, %v7190_v6  ;;  %v1039_v48 = vmul.f32 %v1017_v3, %v7191_v61  ;;  %v1016_v15 = vsel %vm89_vm0, %v1001_v38, %v5989_v52  ;;  %v1020_v59 = vsel %vm89_vm0, %v5970_v63, %v1001_v38 }
 0x27d   :  { %v1034_v11 = vmul.f32 %v1020_v59, %v7190_v6  ;;  %v1035_v32 = vmul.f32 %v1016_v15, %v7191_v61  ;;  %2752 = vmatpush2.bf16.msra.mxu0 %v3966_v42  ;;  %2881 = vmatprep.subr.bf16.mxu1 %v3937_v40  ;;  %v1789_v2 = vrot.slane %v6164_v55, %v7116_v20 }
 0x27e   :  { %2753 = vmatprep.subr.bf16.mxu0 %v3963_v14  ;;  %2882 = vmatpush1.bf16.msra.mxu1 %v3936_v49  ;;  %v1901_v37 = vpop.permute.xlu1 %1900 }
 0x27f   :  { %v3932_v9 = vpack.c.bf16 %v1038_v1, %v1034_v11  ;;  %v1905_v52 = vsel %vm768_vm6, %v6047_v0, %v1901_v37  ;;  %v1917_v63 = vsel %vm768_vm6, %v1901_v37, %v6068_v45  ;;  %v1899_v6 = vpop.permute.xlu0 %1898  ;;  %v3933_v22 = vpack.c.bf16 %v1039_v48, %v1035_v32  ;;  %v6424_v0 = vld [vmem:[%s6970_s4] ss:$12 sps:$4 sm:$0xff]   ;;  %v6429_v45 = vld [vmem:[%s6970_s4 + $0x1c] ss:$12 sps:$4 sm:$0xff]  }
 0x280   :  { %v1954_v61 = vmul.f32 %v1931_v24, %v1905_v52  ;;  %v1955_v8 = vmul.f32 %v1935_v7, %v1917_v63  ;;  %v1904_v25 = vsel %vm768_vm6, %v6057_v5, %v1899_v6  ;;  %v1916_v39 = vsel %vm768_vm6, %v1899_v6, %v6075_v54 }
 0x281   :  { %v1950_v29 = vmul.f32 %v1931_v24, %v1904_v25  ;;  %v1951_v4 = vmul.f32 %v1935_v7, %v1916_v39  ;;  %2754 = vmatpush2.bf16.msra.mxu0 %v3962_v31  ;;  %2883 = vmatprep.subr.bf16.mxu1 %v3933_v22  ;;  %v1793_v54 = vrot.slane %v6164_v55, %v7147_v43 }
 0x282   :  { %2884 = vmatpush1.bf16.msra.mxu1 %v3932_v9  ;;  %v1897_v5 = vpop.permute.xlu1 %1896 }
 0x283   :  { %v3992_v46 = vpack.c.bf16 %v1954_v61, %v1950_v29  ;;  %v1903_v42 = vsel %vm768_vm6, %v6116_v41, %v1897_v5  ;;  %v1915_v56 = vsel %vm768_vm6, %v1897_v5, %v6129_v36  ;;  %v1895_v34 = vpop.permute.xlu0 %1894  ;;  %v3993_v14 = vpack.c.bf16 %v1955_v8, %v1951_v4 }
 0x284   :  { %v1946_v49 = vmul.f32 %v1931_v24, %v1903_v42  ;;  %v1947_v3 = vmul.f32 %v1935_v7, %v1915_v56  ;;  %v1902_v21 = vsel %vm768_vm6, %v6124_v10, %v1895_v34  ;;  %v1914_v55 = vsel %vm768_vm6, %v1895_v34, %v6137_v33  ;;  %2756 = vmatmul.mubr.bf16.vlgmr.msra.gmra.mxu0 %v6424_v0 }
 0x285   :  { %v1942_v38 = vmul.f32 %v1931_v24, %v1902_v21  ;;  %v1943_v41 = vmul.f32 %v1935_v7, %v1914_v55  ;;  %2885 = vmatprep.subr.bf16.mxu1 %v3993_v14  ;;  %2765 = vmatprep.mubr.bf16.mxu0 %v6429_v45 }
 0x286   :  { %2886 = vmatpush2.bf16.msra.mxu1 %v3992_v46  ;;  %v1759_v36 = vpop.permute.xlu1 %1758 }
 0x287   :  { %v3988_v40 = vpack.c.bf16 %v1946_v49, %v1942_v38  ;;  %v1763_v1 = vsel %vm664_vm5, %v6171_v58, %v1759_v36  ;;  %v1775_v10 = vsel %vm664_vm5, %v1759_v36, %v6186_v23  ;;  %v1757_v48 = vpop.permute.xlu0 %1756  ;;  %v3989_v33 = vpack.c.bf16 %v1947_v3, %v1943_v41  ;;  %v6464_v58 = vld [vmem:[%s6970_s4 + $0x18] ss:$12 sps:$4 sm:$0xff]   ;;  %v6469_v23 = vld [vmem:[%s6970_s4 + $0x34] ss:$12 sps:$4 sm:$0xff]  }
 0x288   :  { %v1812_v15 = vmul.f32 %v1789_v2, %v1763_v1  ;;  %v1813_v59 = vmul.f32 %v1793_v54, %v1775_v10  ;;  %v1762_v24 = vsel %vm664_vm5, %v6179_v57, %v1757_v48  ;;  %v1774_v7 = vsel %vm664_vm5, %v1757_v48, %v6194_v60  ;;  %v7197_v1 = vld [vmem:[#allocation36_spill] sm:$0xff]  ;;  %v7198_v48 = vld [vmem:[#allocation34_spill] sm:$0xff] }
 0x289   :  { %v1808_v11 = vmul.f32 %v1789_v2, %v1762_v24  ;;  %v1809_v32 = vmul.f32 %v1793_v54, %v1774_v7  ;;  %2887 = vmatprep.subr.bf16.mxu1 %v3989_v33  ;;  %v1647_v57 = vrot.slane %v6284_v62, %v7116_v20  ;;  %v1651_v60 = vrot.slane %v6284_v62, %v7147_v43  ;;  %v7199_v24 = vld [vmem:[#allocation10_spill] sm:$0xff] }
 0x28a   :  { %2888 = vmatpush2.bf16.msra.mxu1 %v3988_v40  ;;  %v1755_v37 = vpop.permute.xlu1 %1754 }
 0x28b   :  { %v3984_v50 = vpack.c.bf16 %v1812_v15, %v1808_v11  ;;  %v1761_v31 = vsel %vm664_vm5, %v6223_v27, %v1755_v37  ;;  %v1773_v9 = vsel %vm664_vm5, %v1755_v37, %v6239_v47  ;;  %v1753_v52 = vpop.permute.xlu0 %1752  ;;  %v3985_v63 = vpack.c.bf16 %v1813_v59, %v1809_v32  ;;  %v7200_v11 = vld [vmem:[#allocation27_spill] sm:$0xff]  ;;  %v6544_v37 = vld [vmem:[%s6970_s4 + $0x48] ss:$12 sps:$4 sm:$0xff]  }
 0x28c   :  { %v1804_v6 = vmul.f32 %v1789_v2, %v1761_v31  ;;  %v1805_v22 = vmul.f32 %v1793_v54, %v1773_v9  ;;  %v1760_v61 = vsel %vm664_vm5, %v6231_v35, %v1753_v52  ;;  %v1772_v62 = vsel %vm664_vm5, %v1753_v52, %v6247_v13  ;;  %2766 = vmatmul.mubr.bf16.gmra.mxu0 %v6464_v58  ;;  %v7202_v52 = vld [vmem:[#allocation33_spill] sm:$0xff] }
 0x28d   :  { %v1800_v8 = vmul.f32 %v1789_v2, %v1760_v61  ;;  %v1801_v27 = vmul.f32 %v1793_v54, %v1772_v62  ;;  %2889 = vmatprep.subr.bf16.mxu1 %v3985_v63  ;;  %2775 = vmatprep.mubr.bf16.mxu0 %v6469_v23  ;;  %v7203_v63 = vld [vmem:[#allocation30_spill] sm:$0xff]  ;;  %v7204_v61 = vld [vmem:[#allocation12_spill] sm:$0xff] }
 0x28e   :  { %2890 = vmatpush2.bf16.msra.mxu1 %v3984_v50  ;;  %v1617_v47 = vpop.permute.xlu1 %1616  ;;  %v7201_v50 = vld [vmem:[#allocation24_spill] sm:$0xff] }
 0x28f   :  { %v3980_v25 = vpack.c.bf16 %v1804_v6, %v1800_v8  ;;  %v1621_v39 = vsel %vm560_vm4, %v6291_v16, %v1617_v47  ;;  %v1633_v35 = vsel %vm560_vm4, %v1617_v47, %v6306_v26  ;;  %v1615_v29 = vpop.permute.xlu0 %1614  ;;  %v3981_v13 = vpack.c.bf16 %v1805_v22, %v1801_v27  ;;  %v6504_v16 = vld [vmem:[%s6970_s4 + $0x30] ss:$12 sps:$4 sm:$0xff]   ;;  %v6509_v26 = vld [vmem:[%s6970_s4 + $0x4c] ss:$12 sps:$4 sm:$0xff]  }
 0x290   :  { %v1670_v4 = vmul.f32 %v1647_v57, %v1621_v39  ;;  %v1671_v5 = vmul.f32 %v1651_v60, %v1633_v35  ;;  %v1620_v2 = vsel %vm560_vm4, %v6296_v30, %v1615_v29  ;;  %v1632_v54 = vsel %vm560_vm4, %v1615_v29, %v6311_v12  ;;  %v7196_v30 = vld [vmem:[#allocation35_spill] sm:$0xff]  ;;  %v7205_v8 = vld [vmem:[#allocation42_spill] sm:$0xff] }
 0x291   :  { %v1666_v46 = vmul.f32 %v1647_v57, %v1620_v2  ;;  %v1667_v42 = vmul.f32 %v1651_v60, %v1632_v54  ;;  %2891 = vmatprep.subr.bf16.mxu1 %v3981_v13  ;;  %v2073_v34 = vrot.slane %v7196_v30, %v7116_v20  ;;  %v2077_v12 = vrot.slane %v7196_v30, %v7147_v43  ;;  %v7207_v13 = vld [vmem:[#allocation21_spill] sm:$0xff]  ;;  %v7208_v54 = vld [vmem:[#allocation31_spill] sm:$0xff] }
 0x292   :  { %2892 = vmatpush2.bf16.msra.mxu1 %v3980_v25  ;;  %v1613_v56 = vpop.permute.xlu1 %1612  ;;  %v3969_v31 = vpack.c.bf16 %v7201_v50, %v5468_v28  ;;  %v3968_v6 = vpack.c.bf16 %v7203_v63, %v7202_v52  ;;  %v7206_v28 = vld [vmem:[#allocation41_spill] sm:$0xff]  ;;  %v3047_v50 = vld [vmem:[%s6973_s6] sm:$0xff] }
 0x293   :  { %v3976_v14 = vpack.c.bf16 %v1670_v4, %v1666_v46  ;;  %v1619_v49 = vsel %vm560_vm4, %v6339_v51, %v1613_v56  ;;  %v1631_v3 = vsel %vm560_vm4, %v1613_v56, %v6352_v19  ;;  %v1611_v21 = vpop.permute.xlu0 %1610  ;;  %v3977_v55 = vpack.c.bf16 %v1671_v5, %v1667_v42  ;;  %v3109_v52 = vld [vmem:[%s6973_s6 + $0x1f0] sm:$0xff] }
 0x294   :  { %v1662_v38 = vmul.f32 %v1647_v57, %v1619_v49  ;;  %v1663_v41 = vmul.f32 %v1651_v60, %v1631_v3  ;;  %v1618_v20 = vsel %vm560_vm4, %v6344_v53, %v1611_v21  ;;  %v1630_v43 = vsel %vm560_vm4, %v1611_v21, %v6357_v18  ;;  %2776 = vmatmul.mubr.bf16.gmra.mxu0 %v6504_v16  ;;  %v7211_v49 = vld [vmem:[#allocation13_spill] sm:$0xff] }
 0x295   :  { %v1658_v36 = vmul.f32 %v1647_v57, %v1618_v20  ;;  %v1659_v51 = vmul.f32 %v1651_v60, %v1630_v43  ;;  %2893 = vmatprep.subr.bf16.mxu1 %v3977_v55  ;;  %2785 = vmatprep.mubr.bf16.mxu0 %v6509_v26  ;;  %v3965_v46 = vpack.c.bf16 %v7208_v54, %v5513_v17  ;;  %v7209_v42 = vmov 0   ;;  %v3062_v17 = vld [vmem:[%s6973_s6 + $0x78] sm:$0xff]  ;;  %v3061_v21 = vld [vmem:[%s6973_s6 + $0x70] sm:$0xff]  ;;  %v3060_v55 = vld [vmem:[%s6973_s6 + $0x68] sm:$0xff] }
 0x296   :  { %2894 = vmatpush2.bf16.msra.mxu1 %v3976_v14  ;;  %v2043_v19 = vpop.permute.xlu1 %2042  ;;  %v7210_v14 = vld [vmem:[#allocation9_spill] sm:$0xff]  ;;  %v3074_v20 = vld [vmem:[%s6973_s6 + $0xd8] sm:$0xff]  ;;  %v3100_v54 = vld [vmem:[%s6973_s6 + $0x1a8] sm:$0xff] }
 0x297   :  { %v3972_v40 = vpack.c.bf16 %v1662_v38, %v1658_v36  ;;  %v2047_v10 = vsel %vm872_vm7, %v7197_v1, %v2043_v19  ;;  %v2059_v53 = vsel %vm872_vm7, %v2043_v19, %v7198_v48  ;;  %v2041_v33 = vpop.permute.xlu0 %2040  ;;  %v3973_v18 = vpack.c.bf16 %v1663_v41, %v1659_v51  ;;  %v3059_v38 = vld [vmem:[%s6973_s6 + $0x60] sm:$0xff]  ;;  %v3058_v43 = vld [vmem:[%s6973_s6 + $0x58] sm:$0xff]  ;;  %v3057_v36 = vld [vmem:[%s6973_s6 + $0x50] sm:$0xff] }
 0x298   :  { %v2096_v15 = vmul.f32 %v2073_v34, %v2047_v10  ;;  %v2097_v59 = vmul.f32 %v2077_v12, %v2059_v53  ;;  %v2046_v7 = vsel %vm872_vm7, %v7199_v24, %v2041_v33  ;;  %v2058_v32 = vsel %vm872_vm7, %v2041_v33, %v7200_v11  ;;  %v7213_v41 = vld [vmem:[#allocation23_spill] sm:$0xff]  ;;  %v3056_v51 = vld [vmem:[%s6973_s6 + $0x48] sm:$0xff]  ;;  %v7214_v19 = vld [vmem:[#allocation17_spill] sm:$0xff] }
 0x299   :  { %v2092_v57 = vmul.f32 %v2073_v34, %v2046_v7  ;;  %v2093_v60 = vmul.f32 %v2077_v12, %v2058_v32  ;;  %2895 = vmatprep.subr.bf16.mxu1 %v3973_v18  ;;  %v3964_v3 = vpack.c.bf16 %v7211_v49, %v7210_v14  ;;  %v3055_v1 = vld [vmem:[%s6973_s6 + $0x40] sm:$0xff]  ;;  %v3054_v10 = vld [vmem:[%s6973_s6 + $0x38] sm:$0xff]  ;;  %v3053_v48 = vld [vmem:[%s6973_s6 + $0x30] sm:$0xff] }
 0x29a   :  { %2896 = vmatpush2.bf16.msra.mxu1 %v3972_v40  ;;  %v2039_v9 = vpop.permute.xlu1 %2038  ;;  %v3071_v40 = vld [vmem:[%s6973_s6 + $0xc0] sm:$0xff]  ;;  %v3068_v53 = vld [vmem:[%s6973_s6 + $0xa8] sm:$0xff]  ;;  %v3066_v24 = vld [vmem:[%s6973_s6 + $0x98] sm:$0xff] }
 0x29b   :  { %v4000_v22 = vpack.c.bf16 %v2096_v15, %v2092_v57  ;;  %v2045_v62 = vsel %vm872_vm7, %v7204_v61, %v2039_v9  ;;  %v2057_v27 = vsel %vm872_vm7, %v2039_v9, %v7205_v8  ;;  %2897 = vmatprep.subr.bf16.mxu1 %v3969_v31  ;;  %v2037_v47 = vpop.permute.xlu0 %2036  ;;  %v4001_v25 = vpack.c.bf16 %v2097_v59, %v2093_v60  ;;  %v7215_v33 = vld [vmem:[#allocation11_spill] sm:$0xff]  ;;  %v3052_v18 = vld [vmem:[%s6973_s6 + $0x28] sm:$0xff]  ;;  %v3050_v7 = vld [vmem:[%s6973_s6 + $0x18] sm:$0xff] }
 0x29c   :  { %v2088_v39 = vmul.f32 %v2073_v34, %v2045_v62  ;;  %v2089_v35 = vmul.f32 %v2077_v12, %v2057_v27  ;;  %v2044_v29 = vsel %vm872_vm7, %v7206_v28, %v2037_v47  ;;  %v2056_v4 = vsel %vm872_vm7, %v2037_v47, %v7207_v13  ;;  %2786 = vmatmul.mubr.bf16.gmra.mxu0 %v6544_v37  ;;  %v3067_v15 = vld [vmem:[%s6973_s6 + $0xa0] sm:$0xff]  ;;  %v3065_v11 = vld [vmem:[%s6973_s6 + $0x90] sm:$0xff]  ;;  %v3048_v57 = vld [vmem:[%s6973_s6 + $0x8] sm:$0xff] }
 0x29d   :  { %v2084_v5 = vmul.f32 %v2073_v34, %v2044_v29  ;;  %v2085_v2 = vmul.f32 %v2077_v12, %v2056_v4  ;;  %2954 = vmatprep.subr.bf16.mxu0 %v4001_v25  ;;  %2974 = vmatprep.mubr.bf16.mxu0 %v7209_v42  ;;  %v7212_v34 = vld [vmem:[#allocation40_spill] sm:$0xff]  ;;  %v3077_v12 = vld [vmem:[%s6973_s6 + $0xf0] sm:$0xff]  ;;  %v3051_v59 = vld [vmem:[%s6973_s6 + $0x20] sm:$0xff] }
 0x29e   :  { %2898 = vmatpush2.bf16.msra.mxu1 %v3968_v6  ;;  %2955 = vmatpush1.bf16.msra.mxu0 %v4000_v22  ;;  %v3049_v32 = vld [vmem:[%s6973_s6 + $0x10] sm:$0xff]  ;;  %v3063_v60 = vld [vmem:[%s6973_s6 + $0x80] sm:$0xff]  ;;  %v3110_v31 = vld [vmem:[%s6973_s6 + $0x1f8] sm:$0xff] }
 0x29f   :  { %v3996_v56 = vpack.c.bf16 %v2088_v39, %v2084_v5  ;;  %2899 = vmatprep.subr.bf16.mxu1 %v3965_v46  ;;  %v3997_v30 = vpack.c.bf16 %v2089_v35, %v2085_v2  ;;  %v3094_v9 = vld [vmem:[%s6973_s6 + $0x178] sm:$0xff]  ;;  %v3093_v63 = vld [vmem:[%s6973_s6 + $0x170] sm:$0xff]  ;;  %v3108_v6 = vld [vmem:[%s6973_s6 + $0x1e8] sm:$0xff] }
 0x2a0   :  { %v3092_v22 = vld [vmem:[%s6973_s6 + $0x168] sm:$0xff]  ;;  %v3107_v61 = vld [vmem:[%s6973_s6 + $0x1e0] sm:$0xff]  ;;  %v3106_v8 = vld [vmem:[%s6973_s6 + $0x1d8] sm:$0xff] }
 0x2a1   :  { %2956 = vmatprep.subr.bf16.mxu0 %v3997_v30  ;;  %v3091_v62 = vld [vmem:[%s6973_s6 + $0x160] sm:$0xff]  ;;  %v3090_v27 = vld [vmem:[%s6973_s6 + $0x158] sm:$0xff]  ;;  %v3105_v47 = vld [vmem:[%s6973_s6 + $0x1d0] sm:$0xff] }
 0x2a2   :  { %2900 = vmatpush2.bf16.msra.mxu1 %v3964_v3  ;;  %2957 = vmatpush1.bf16.msra.mxu0 %v3996_v56  ;;  %v3089_v25 = vld [vmem:[%s6973_s6 + $0x150] sm:$0xff]  ;;  %v3104_v39 = vld [vmem:[%s6973_s6 + $0x1c8] sm:$0xff]  ;;  %v3103_v28 = vld [vmem:[%s6973_s6 + $0x1c0] sm:$0xff] }
 0x2a3   :  { %4002 = vmatprep.subr.mxu1 %v3078_v44  ;;  %4058 = vmatprep.subr.mxu0 %v3110_v31  ;;  %v3088_v35 = vld [vmem:[%s6973_s6 + $0x148] sm:$0xff]  ;;  %v3087_v29 = vld [vmem:[%s6973_s6 + $0x140] sm:$0xff]  ;;  %v3102_v13 = vld [vmem:[%s6973_s6 + $0x1b8] sm:$0xff] }
 0x2a4   :  { %v3086_v4 = vld [vmem:[%s6973_s6 + $0x138] sm:$0xff]  ;;  %v3101_v5 = vld [vmem:[%s6973_s6 + $0x1b0] sm:$0xff]  ;;  %v3084_v46 = vld [vmem:[%s6973_s6 + $0x128] sm:$0xff] }
 0x2a5   :  { %2902 = vmatmul.mubr.bf16.vlgmr.msra.gmra.mxu1 %v6424_v0  ;;  %3838 = vmatmul.mubr.msk.bf16.vlgmr.msra.gmra.mxu0 %vm2710_vm8, %v7212_v34  ;;  %v3076_v0 = vld [vmem:[%s6973_s6 + $0xe8] sm:$0xff]  ;;  %v3085_v2 = vld [vmem:[%s6973_s6 + $0x130] sm:$0xff]  ;;  %v3083_v56 = vld [vmem:[%s6973_s6 + $0x120] sm:$0xff] }
 0x2a6   :  { %2911 = vmatprep.mubr.bf16.mxu1 %v6429_v45  ;;  %2984 = vmatprep.mubr.bf16.mxu0 %v7209_v42  ;;  %v3075_v45 = vld [vmem:[%s6973_s6 + $0xe0] sm:$0xff]  ;;  %v3098_v30 = vld [vmem:[%s6973_s6 + $0x198] sm:$0xff]  ;;  %v3097_v49 = vld [vmem:[%s6973_s6 + $0x190] sm:$0xff] }
 0x2a7   :  { %4003 = vmatpush3.msra.mxu1 %v3062_v17  ;;  %4059 = vmatpush3.msra.mxu0 %v3094_v9  ;;  %v3082_v14 = vld [vmem:[%s6973_s6 + $0x118] sm:$0xff]  ;;  %v3081_v3 = vld [vmem:[%s6973_s6 + $0x110] sm:$0xff]  ;;  %v3096_v44 = vld [vmem:[%s6973_s6 + $0x188] sm:$0xff] }
 0x2a8   :  { %4004 = vmatprep.subr.mxu1 %v3077_v12  ;;  %4060 = vmatprep.subr.mxu0 %v3109_v52  ;;  %v3080_v17 = vld [vmem:[%s6973_s6 + $0x108] sm:$0xff]  ;;  %v3095_v34 = vld [vmem:[%s6973_s6 + $0x180] sm:$0xff] }
 0x2a9   :  { %4005 = vmatpush3.msra.mxu1 %v3061_v21  ;;  %4061 = vmatpush3.msra.mxu0 %v3093_v63  ;;  %v3079_v12 = vld [vmem:[%s6973_s6 + $0x100] sm:$0xff] }
 0x2aa   :  { %4006 = vmatprep.subr.mxu1 %v3076_v0  ;;  %4062 = vmatprep.subr.mxu0 %v3108_v6 }
 0x2ab   :  { %4007 = vmatpush3.msra.mxu1 %v3060_v55  ;;  %4063 = vmatpush3.msra.mxu0 %v3092_v22 }
 0x2ac   :  { %4008 = vmatprep.subr.mxu1 %v3075_v45  ;;  %4064 = vmatprep.subr.mxu0 %v3107_v61 }
 0x2ad   :  { %2912 = vmatmul.mubr.bf16.gmra.mxu1 %v6464_v58  ;;  %3839 = vmatmul.mubr.msk.bf16.gmra.mxu0 %vm2710_vm8, %v7213_v41  ;;  %v3073_v58 = vld [vmem:[%s6973_s6 + $0xd0] sm:$0xff] }
 0x2ae   :  { %2921 = vmatprep.mubr.bf16.mxu1 %v6469_v23  ;;  %2994 = vmatprep.mubr.bf16.mxu0 %v7209_v42  ;;  %v3072_v23 = vld [vmem:[%s6973_s6 + $0xc8] sm:$0xff] }
 0x2af   :  { %4009 = vmatpush3.msra.mxu1 %v3059_v38  ;;  %4065 = vmatpush3.msra.mxu0 %v3091_v62 }
 0x2b0   :  { %4010 = vmatprep.subr.mxu1 %v3074_v20  ;;  %4066 = vmatprep.subr.mxu0 %v3106_v8 }
 0x2b1   :  { %4011 = vmatpush3.msra.mxu1 %v3058_v43  ;;  %4067 = vmatpush3.msra.mxu0 %v3090_v27 }
 0x2b2   :  { %4012 = vmatprep.subr.mxu1 %v3073_v58  ;;  %4068 = vmatprep.subr.mxu0 %v3105_v47  ;;  %v6778_v58 = vpop.permute.xlu0 %2252 }
 0x2b3   :  { %4013 = vmatpush3.msra.mxu1 %v3057_v36  ;;  %4069 = vmatpush3.msra.mxu0 %v3089_v25 }
 0x2b4   :  { %4014 = vmatprep.subr.mxu1 %v3072_v23  ;;  %4070 = vmatprep.subr.mxu0 %v3104_v39 }
 0x2b5   :  { %2922 = vmatmul.mubr.bf16.gmra.mxu1 %v6504_v16  ;;  %3840 = vmatmul.mubr.msk.bf16.gmra.mxu0 %vm2710_vm8, %v7214_v19  ;;  %v3070_v16 = vld [vmem:[%s6973_s6 + $0xb8] sm:$0xff] }
 0x2b6   :  { %2931 = vmatprep.mubr.bf16.mxu1 %v6509_v26  ;;  %3004 = vmatprep.mubr.bf16.mxu0 %v7209_v42  ;;  %v3069_v26 = vld [vmem:[%s6973_s6 + $0xb0] sm:$0xff]  ;;  %v3099_v42 = vld [vmem:[%s6973_s6 + $0x1a0] sm:$0xff]  ;;  %v6790_v9 = vpop.permute.xlu0 %2267 }
 0x2b7   :  { %4015 = vmatpush3.msra.mxu1 %v3056_v51  ;;  %4071 = vmatpush3.msra.mxu0 %v3088_v35 }
 0x2b8   :  { %4016 = vmatprep.subr.mxu1 %v3071_v40  ;;  %4072 = vmatprep.subr.mxu0 %v3103_v28 }
 0x2b9   :  { %4017 = vmatpush3.msra.mxu1 %v3055_v1  ;;  %4073 = vmatpush3.msra.mxu0 %v3087_v29 }
 0x2ba   :  { %4018 = vmatprep.subr.mxu1 %v3070_v16  ;;  %4074 = vmatprep.subr.mxu0 %v3102_v13 }
 0x2bb   :  { %4019 = vmatpush3.msra.mxu1 %v3054_v10  ;;  %4075 = vmatpush3.msra.mxu0 %v3086_v4 }
 0x2bc   :  { %4020 = vmatprep.subr.mxu1 %v3069_v26  ;;  %4076 = vmatprep.subr.mxu0 %v3101_v5 }
 0x2bd   :  { %2932 = vmatmul.mubr.bf16.gmra.mxu1 %v6544_v37  ;;  %3841 = vmatmul.mubr.msk.bf16.gmra.mxu0 %vm2710_vm8, %v7215_v33  ;;  %v3064_v37 = vld [vmem:[%s6973_s6 + $0x88] sm:$0xff] }
 0x2be   :  { %4021 = vmatpush3.msra.mxu1 %v3053_v48  ;;  %4077 = vmatpush3.msra.mxu0 %v3085_v2 }
 0x2bf   :  { %4022 = vmatprep.subr.mxu1 %v3068_v53  ;;  %4078 = vmatprep.subr.mxu0 %v3100_v54 }
 0x2c0   :  { %4023 = vmatpush3.msra.mxu1 %v3052_v18  ;;  %4079 = vmatpush3.msra.mxu0 %v3084_v46  ;;  %v6798_v46 = vpop.permute.xlu0 %2277 }
 0x2c1   :  { %4024 = vmatprep.subr.mxu1 %v3067_v15  ;;  %4080 = vmatprep.subr.mxu0 %v3099_v42 }
 0x2c2   :  { %4025 = vmatpush3.msra.mxu1 %v3051_v59  ;;  %4081 = vmatpush3.msra.mxu0 %v3083_v56 }
 0x2c3   :  { %4026 = vmatprep.subr.mxu1 %v3066_v24  ;;  %4082 = vmatprep.subr.mxu0 %v3098_v30  ;;  %v6781_v51 = vpop.permute.xlu1 %2257 }
 0x2c4   :  { %4027 = vmatpush3.msra.mxu1 %v3050_v7  ;;  %4083 = vmatpush3.msra.mxu0 %v3082_v14 }
 0x2c5   :  { %4028 = vmatprep.subr.mxu1 %v3065_v11  ;;  %4084 = vmatprep.subr.mxu0 %v3097_v49 }
 0x2c6   :  { %4029 = vmatpush3.msra.mxu1 %v3049_v32  ;;  %4085 = vmatpush3.msra.mxu0 %v3081_v3 }
 0x2c7   :  { %4030 = vmatprep.subr.mxu1 %v3064_v37  ;;  %4086 = vmatprep.subr.mxu0 %v3096_v44  ;;  %v6786_v7 = vpop.permute.xlu1 %2262 }
 0x2c8   :  { %4031 = vmatpush3.msra.mxu1 %v3048_v57  ;;  %4087 = vmatpush3.msra.mxu0 %v3080_v17 }
 0x2c9   :  { %4032 = vmatprep.subr.mxu1 %v3063_v60  ;;  %4088 = vmatprep.subr.mxu0 %v3095_v34 }
 0x2ca   :  { %4033 = vmatpush3.msra.mxu1 %v3047_v50  ;;  %4089 = vmatpush3.msra.mxu0 %v3079_v12 }
 0x2cb   :  { %v6794_v25 = vpop.permute.xlu1 %2272 }
 0x2cf   :  { %v2830_v21 = vpop.f32.mrf.mxu1  ;;  %v6802_v12 = vpop.permute.xlu1 %2282 }
 0x2d1   :  { %v2832_v0 = vpop.f32.mrf.mxu1 }
 0x2d3   :  { %v2834_v55 = vpop.f32.mrf.mxu1 }
 0x2d5   :  { %v2836_v45 = vpop.f32.mrf.mxu1 }
 0x2d7   :  { %v2840_v38 = vpop.f32.mrf.mxu1 }
 0x2d9   :  { %v2842_v41 = vpop.f32.mrf.mxu1 }
 0x2db   :  { %v2844_v20 = vpop.f32.mrf.mxu1 }
 0x2dd   :  { %v2846_v43 = vpop.f32.mrf.mxu1 }
 0x2df   :  { %v2850_v1 = vpop.f32.mrf.mxu1 }
 0x2e1   :  { %v2852_v15 = vpop.f32.mrf.mxu1 }
 0x2e3   :  { %v2854_v31 = vpop.f32.mrf.mxu1 }
 0x2e5   :  { %v2856_v47 = vpop.f32.mrf.mxu1 }
 0x2e7   :  { %v2860_v54 = vpop.f32.mrf.mxu1 }
 0x2e9   :  { %v2862_v34 = vpop.f32.mrf.mxu1 }
 0x344   :  { %v2757_v36 = vpop.f32.mrf.mxu0 }
 0x345   :  { %v2758_v23 = vadd.f32 %v2757_v36, %v6778_v58  ;;  %v2864_v36 = vpop.f32.mrf.mxu1 }
 0x346   :  { %v2759_v19 = vpop.f32.mrf.mxu0 }
 0x347   :  { %v2760_v40 = vadd.f32 %v2759_v19, %v6778_v58  ;;  %v2831_v16 = vadd.f32 %v2830_v21, %v2758_v23  ;;  %v6806_v23 = vpop.permute.xlu0 %2287 }
 0x348   :  { %v2761_v10 = vpop.f32.mrf.mxu0 }
 0x349   :  { %v2833_v26 = vadd.f32 %v2832_v0, %v2760_v40  ;;  %v2762_v48 = vadd.f32 %v2761_v10, %v6781_v51  ;;  %v3015_v59 = vmax.f32 %v2831_v16, 0.0 }
 0x34a   :  { %v2763_v53 = vpop.f32.mrf.mxu0 }
 0x34b   :  { %v3016_v33 = vmax.f32 %v2833_v26, 0.0  ;;  %v2764_v18 = vadd.f32 %v2763_v53, %v6781_v51  ;;  %v2835_v24 = vadd.f32 %v2834_v55, %v2762_v48 }
 0x34c   :  { %v2767_v11 = vpop.f32.mrf.mxu0 }
 0x34d   :  { %v2837_v32 = vadd.f32 %v2836_v45, %v2764_v18  ;;  %v2768_v37 = vadd.f32 %v2767_v11, %v6786_v7  ;;  %3175 = vmatprep.mubr.f32.mxu1 %v3016_v33  ;;  %v3019_v52 = vmax.f32 %v2835_v24, 0.0  ;;  %v2866_v33 = vpop.f32.mrf.mxu1 }
 0x34e   :  { %v2769_v57 = vpop.f32.mrf.mxu0  ;;  %3176 = vmatmul.mubr.f32.vlgmr.msra.gmra.mxu1 %v3015_v59 }
 0x34f   :  { %v3020_v60 = vmax.f32 %v2837_v32, 0.0  ;;  %v2770_v50 = vadd.f32 %v2769_v57, %v6786_v7  ;;  %v2841_v63 = vadd.f32 %v2840_v38, %v2768_v37 }
 0x350   :  { %v2771_v6 = vpop.f32.mrf.mxu0 }
 0x351   :  { %v2843_v22 = vadd.f32 %v2842_v41, %v2770_v50  ;;  %v2772_v61 = vadd.f32 %v2771_v6, %v6790_v9  ;;  %3180 = vmatprep.mubr.f32.mxu1 %v3020_v60  ;;  %v3023_v39 = vmax.f32 %v2841_v63, 0.0 }
 0x352   :  { %v2773_v62 = vpop.f32.mrf.mxu0  ;;  %3181 = vmatmul.mubr.f32.gmra.mxu1 %v3019_v52 }
 0x353   :  { %v3024_v8 = vmax.f32 %v2843_v22, 0.0  ;;  %v2774_v27 = vadd.f32 %v2773_v62, %v6790_v9  ;;  %v2845_v35 = vadd.f32 %v2844_v20, %v2772_v61 }
 0x354   :  { %v2777_v28 = vpop.f32.mrf.mxu0 }
 0x355   :  { %v2847_v29 = vadd.f32 %v2846_v43, %v2774_v27  ;;  %v2778_v13 = vadd.f32 %v2777_v28, %v6794_v25  ;;  %3185 = vmatprep.mubr.f32.mxu1 %v3024_v8  ;;  %v3027_v42 = vmax.f32 %v2845_v35, 0.0 }
 0x356   :  { %v2779_v4 = vpop.f32.mrf.mxu0  ;;  %3186 = vmatmul.mubr.f32.gmra.mxu1 %v3023_v39 }
 0x357   :  { %v3028_v5 = vmax.f32 %v2847_v29, 0.0  ;;  %v2780_v2 = vadd.f32 %v2779_v4, %v6794_v25  ;;  %v2851_v56 = vadd.f32 %v2850_v1, %v2778_v13 }
 0x358   :  { %v2781_v30 = vpop.f32.mrf.mxu0 }
 0x359   :  { %v2853_v14 = vadd.f32 %v2852_v15, %v2780_v2  ;;  %v2782_v49 = vadd.f32 %v2781_v30, %v6798_v46  ;;  %3190 = vmatprep.mubr.f32.mxu1 %v3028_v5  ;;  %v3031_v21 = vmax.f32 %v2851_v56, 0.0 }
 0x35a   :  { %v2783_v3 = vpop.f32.mrf.mxu0  ;;  %3191 = vmatmul.mubr.f32.gmra.mxu1 %v3027_v42 }
 0x35b   :  { %v3032_v44 = vmax.f32 %v2853_v14, 0.0  ;;  %v2784_v17 = vadd.f32 %v2783_v3, %v6798_v46  ;;  %v2855_v0 = vadd.f32 %v2854_v31, %v2782_v49 }
 0x35c   :  { %v2787_v55 = vpop.f32.mrf.mxu0 }
 0x35d   :  { %v2857_v45 = vadd.f32 %v2856_v47, %v2784_v17  ;;  %v2788_v38 = vadd.f32 %v2787_v55, %v6802_v12  ;;  %3195 = vmatprep.mubr.f32.mxu1 %v3032_v44  ;;  %v3035_v19 = vmax.f32 %v2855_v0, 0.0 }
 0x35e   :  { %v2789_v41 = vpop.f32.mrf.mxu0  ;;  %3196 = vmatmul.mubr.f32.gmra.mxu1 %v3031_v21 }
 0x35f   :  { %v3036_v20 = vmax.f32 %v2857_v45, 0.0  ;;  %v2790_v43 = vadd.f32 %v2789_v41, %v6802_v12  ;;  %v2861_v40 = vadd.f32 %v2860_v54, %v2788_v38 }
 0x360   :  { %v2791_v1 = vpop.f32.mrf.mxu0 }
 0x361   :  { %v2863_v16 = vadd.f32 %v2862_v34, %v2790_v43  ;;  %v2792_v10 = vadd.f32 %v2791_v1, %v6806_v23  ;;  %3200 = vmatprep.mubr.f32.mxu1 %v3036_v20  ;;  %v3039_v18 = vmax.f32 %v2861_v40, 0.0 }
 0x362   :  { %v2793_v26 = vpop.f32.mrf.mxu0  ;;  %3201 = vmatmul.mubr.f32.gmra.mxu1 %v3035_v19 }
 0x363   :  { %v3040_v48 = vmax.f32 %v2863_v16, 0.0  ;;  %v2794_v53 = vadd.f32 %v2793_v26, %v6806_v23  ;;  %v2865_v15 = vadd.f32 %v2864_v36, %v2792_v10 }
 0x365   :  { %v2867_v59 = vadd.f32 %v2866_v33, %v2794_v53  ;;  %v2903_v24 = vpop.f32.mrf.mxu1  ;;  %3205 = vmatprep.mubr.f32.mxu1 %v3040_v48  ;;  %v2976_v11 = vpop.f32.mrf.mxu0  ;;  %v3043_v50 = vmax.f32 %v2865_v15, 0.0 }
 0x366   :  { %v2904_v32 = vadd.f32 %v2903_v24, %v6778_v58  ;;  %3206 = vmatmul.mubr.f32.gmra.mxu1 %v3039_v18 }
 0x367   :  { %v3044_v37 = vmax.f32 %v2867_v59, 0.0  ;;  %v2905_v57 = vpop.f32.mrf.mxu1  ;;  %v2978_v60 = vpop.f32.mrf.mxu0 }
 0x368   :  { %v2906_v31 = vadd.f32 %v2905_v57, %v6778_v58  ;;  %v2977_v52 = vadd.f32 %v2976_v11, %v2904_v32 }
 0x369   :  { %v2907_v63 = vpop.f32.mrf.mxu1  ;;  %3210 = vmatprep.mubr.f32.mxu1 %v3044_v37  ;;  %v2980_v6 = vpop.f32.mrf.mxu0 }
 0x36a   :  { %v2908_v22 = vadd.f32 %v2907_v63, %v6781_v51  ;;  %v2979_v61 = vadd.f32 %v2978_v60, %v2906_v31  ;;  %3211 = vmatmul.mubr.f32.gmra.mxu1 %v3043_v50  ;;  %v3017_v39 = vmax.f32 %v2977_v52, 0.0 }
 0x36b   :  { %v2909_v62 = vpop.f32.mrf.mxu1  ;;  %v2982_v8 = vpop.f32.mrf.mxu0 }
 0x36c   :  { %v3018_v27 = vmax.f32 %v2979_v61, 0.0  ;;  %v2910_v47 = vadd.f32 %v2909_v62, %v6781_v51  ;;  %v2981_v35 = vadd.f32 %v2980_v6, %v2908_v22 }
 0x36d   :  { %v2913_v28 = vpop.f32.mrf.mxu1  ;;  %v2986_v29 = vpop.f32.mrf.mxu0 }
 0x36e   :  { %v2914_v13 = vadd.f32 %v2913_v28, %v6786_v7  ;;  %v2983_v58 = vadd.f32 %v2982_v8, %v2910_v47  ;;  %3280 = vmatprep.mubr.f32.mxu0 %v3018_v27  ;;  %v3021_v42 = vmax.f32 %v2981_v35, 0.0  ;;  %v3321_v28 = vld [vmem:[%s6974_s7] sm:$0xff] }
 0x36f   :  { %v2915_v4 = vpop.f32.mrf.mxu1  ;;  %3281 = vmatmul.mubr.f32.vlgmr.msra.gmra.mxu0 %v3017_v39  ;;  %v2988_v5 = vpop.f32.mrf.mxu0 }
 0x370   :  { %v3022_v2 = vmax.f32 %v2983_v58, 0.0  ;;  %v2916_v54 = vadd.f32 %v2915_v4, %v6786_v7  ;;  %v2987_v56 = vadd.f32 %v2986_v29, %v2914_v13  ;;  %v3323_v29 = vld [vmem:[%s6974_s7 + $0x10] sm:$0xff] }
 0x371   :  { %v2917_v30 = vpop.f32.mrf.mxu1  ;;  %v2990_v14 = vpop.f32.mrf.mxu0  ;;  %4157 = vmatprep.mubr.msk.f32.mxu1 %vm3433_vm9, %v3323_v29  ;;  %v3330_v29 = vld [vmem:[%s6974_s7 + $0x48] sm:$0xff] }
 0x372   :  { %v2918_v51 = vadd.f32 %v2917_v30, %v6790_v9  ;;  %v2989_v49 = vadd.f32 %v2988_v5, %v2916_v54  ;;  %3285 = vmatprep.mubr.f32.mxu0 %v3022_v2  ;;  %v3025_v21 = vmax.f32 %v2987_v56, 0.0 }
 0x373   :  { %v2919_v3 = vpop.f32.mrf.mxu1  ;;  %3286 = vmatmul.mubr.f32.gmra.mxu0 %v3021_v42  ;;  %v2992_v44 = vpop.f32.mrf.mxu0 }
 0x374   :  { %v3026_v17 = vmax.f32 %v2989_v49, 0.0  ;;  %v2920_v34 = vadd.f32 %v2919_v3, %v6790_v9  ;;  %v2991_v0 = vadd.f32 %v2990_v14, %v2918_v51 }
 0x375   :  { %v2923_v55 = vpop.f32.mrf.mxu1  ;;  %v2996_v45 = vpop.f32.mrf.mxu0 }
 0x376   :  { %v2924_v7 = vadd.f32 %v2923_v55, %v6794_v25  ;;  %v2993_v38 = vadd.f32 %v2992_v44, %v2920_v34  ;;  %3290 = vmatprep.mubr.f32.mxu0 %v3026_v17  ;;  %v3029_v19 = vmax.f32 %v2991_v0, 0.0 }
 0x377   :  { %v2925_v41 = vpop.f32.mrf.mxu1  ;;  %3291 = vmatmul.mubr.f32.gmra.mxu0 %v3025_v21  ;;  %v2998_v20 = vpop.f32.mrf.mxu0 }
 0x378   :  { %v3030_v43 = vmax.f32 %v2993_v38, 0.0  ;;  %v2926_v36 = vadd.f32 %v2925_v41, %v6794_v25  ;;  %v2997_v40 = vadd.f32 %v2996_v45, %v2924_v7 }
 0x379   :  { %v2927_v1 = vpop.f32.mrf.mxu1  ;;  %v3000_v16 = vpop.f32.mrf.mxu0 }
 0x37a   :  { %v2928_v9 = vadd.f32 %v2927_v1, %v6798_v46  ;;  %v2999_v10 = vadd.f32 %v2998_v20, %v2926_v36  ;;  %3295 = vmatprep.mubr.f32.mxu0 %v3030_v43  ;;  %v3033_v18 = vmax.f32 %v2997_v40, 0.0 }
 0x37b   :  { %v2929_v26 = vpop.f32.mrf.mxu1  ;;  %3296 = vmatmul.mubr.f32.gmra.mxu0 %v3029_v19  ;;  %v3002_v48 = vpop.f32.mrf.mxu0 }
 0x37c   :  { %v3034_v53 = vmax.f32 %v2999_v10, 0.0  ;;  %v2930_v33 = vadd.f32 %v2929_v26, %v6798_v46  ;;  %v3001_v15 = vadd.f32 %v3000_v16, %v2928_v9 }
 0x37d   :  { %v2933_v59 = vpop.f32.mrf.mxu1  ;;  %v3006_v24 = vpop.f32.mrf.mxu0 }
 0x37e   :  { %v2934_v25 = vadd.f32 %v2933_v59, %v6802_v12  ;;  %v3003_v11 = vadd.f32 %v3002_v48, %v2930_v33  ;;  %3300 = vmatprep.mubr.f32.mxu0 %v3034_v53  ;;  %v3037_v50 = vmax.f32 %v3001_v15, 0.0 }
 0x37f   :  { %v2935_v32 = vpop.f32.mrf.mxu1  ;;  %3301 = vmatmul.mubr.f32.gmra.mxu0 %v3033_v18  ;;  %v3008_v37 = vpop.f32.mrf.mxu0 }
 0x380   :  { %v3038_v57 = vmax.f32 %v3003_v11, 0.0  ;;  %v2936_v60 = vadd.f32 %v2935_v32, %v6802_v12  ;;  %v3007_v31 = vadd.f32 %v3006_v24, %v2934_v25 }
 0x381   :  { %v2937_v52 = vpop.f32.mrf.mxu1  ;;  %v3010_v63 = vpop.f32.mrf.mxu0 }
 0x382   :  { %v2938_v46 = vadd.f32 %v2937_v52, %v6806_v23  ;;  %v3009_v6 = vadd.f32 %v3008_v37, %v2936_v60  ;;  %3305 = vmatprep.mubr.f32.mxu0 %v3038_v57  ;;  %v3041_v8 = vmax.f32 %v3007_v31, 0.0 }
 0x383   :  { %v2939_v22 = vpop.f32.mrf.mxu1  ;;  %3306 = vmatmul.mubr.f32.gmra.mxu0 %v3037_v50  ;;  %v3012_v47 = vpop.f32.mrf.mxu0 }
 0x384   :  { %v3042_v61 = vmax.f32 %v3009_v6, 0.0  ;;  %v2940_v62 = vadd.f32 %v2939_v22, %v6806_v23  ;;  %v3011_v27 = vadd.f32 %v3010_v63, %v2938_v46 }
 0x386   :  { %v3013_v39 = vadd.f32 %v3012_v47, %v2940_v62  ;;  %3310 = vmatprep.mubr.f32.mxu0 %v3042_v61  ;;  %v3045_v35 = vmax.f32 %v3011_v27, 0.0  ;;  %v3324_v27 = vld [vmem:[%s6974_s7 + $0x18] sm:$0xff]  ;;  %v3325_v47 = vld [vmem:[%s6974_s7 + $0x20] sm:$0xff] }
 0x387   :  { %3311 = vmatmul.mubr.f32.gmra.mxu0 %v3041_v8  ;;  %v3322_v8 = vld [vmem:[%s6974_s7 + $0x8] sm:$0xff] }
 0x388   :  { %v3046_v12 = vmax.f32 %v3013_v39, 0.0  ;;  %v3326_v39 = vld [vmem:[%s6974_s7 + $0x28] sm:$0xff] }
 0x38a   :  { %3315 = vmatprep.mubr.f32.mxu0 %v3046_v12  ;;  %v3327_v12 = vld [vmem:[%s6974_s7 + $0x30] sm:$0xff] }
 0x38b   :  { %3316 = vmatmul.mubr.f32.gmra.mxu0 %v3045_v35  ;;  %v3328_v35 = vld [vmem:[%s6974_s7 + $0x38] sm:$0xff] }
 0x38c   :  { %4154 = vmatprep.mubr.msk.f32.mxu0 %vm3433_vm9, %v3321_v28  ;;  %v3329_v28 = vld [vmem:[%s6974_s7 + $0x40] sm:$0xff] }
 0x40e   :  { %v6834_v23 = vpop.f32.mrf.mxu1 }
 0x410   :  { %v6836_v13 = vpop.f32.mrf.mxu1 }
 0x411   :  { %v4036_v22 = vadd.f32 %v6836_v13, %v6834_v23  ;;  %v3331_v23 = vld [vmem:[%s6974_s7 + $0x50] sm:$0xff]  ;;  %v3332_v13 = vld [vmem:[%s6974_s7 + $0x58] sm:$0xff] }
 0x412   :  { %v6838_v58 = vpop.f32.mrf.mxu1 }
 0x414   :  { %v6840_v4 = vpop.f32.mrf.mxu1 }
 0x415   :  { %v4039_v63 = vadd.f32 %v6840_v4, %v6838_v58  ;;  %v3333_v58 = vld [vmem:[%s6974_s7 + $0x60] sm:$0xff]  ;;  %v3334_v4 = vld [vmem:[%s6974_s7 + $0x68] sm:$0xff] }
 0x416   :  { %v4040_v5 = vpop.f32.mrf.mxu1 }
 0x418   :  { %v4041_v2 = vpop.f32.mrf.mxu1 }
 0x419   :  { %v4042_v50 = vadd.f32 %v4041_v2, %v4040_v5  ;;  %v3335_v5 = vld [vmem:[%s6974_s7 + $0x70] sm:$0xff]  ;;  %v3336_v2 = vld [vmem:[%s6974_s7 + $0x78] sm:$0xff] }
 0x41a   :  { %v4043_v54 = vpop.f32.mrf.mxu1 }
 0x41c   :  { %v4044_v42 = vpop.f32.mrf.mxu1 }
 0x41d   :  { %v4045_v37 = vadd.f32 %v4044_v42, %v4043_v54  ;;  %v3361_v54 = vpop.permute.xlu0 %3360  ;;  %v3356_v42 = vpop.permute.xlu1 %3355 }
 0x41e   :  { %v4046_v56 = vpop.f32.mrf.mxu1 }
 0x420   :  { %v4047_v51 = vpop.f32.mrf.mxu1 }
 0x421   :  { %v4048_v25 = vadd.f32 %v4047_v51, %v4046_v56  ;;  %v3371_v56 = vpop.permute.xlu0 %3370 }
 0x422   :  { %v4049_v44 = vpop.f32.mrf.mxu1 }
 0x424   :  { %v4050_v21 = vpop.f32.mrf.mxu1 }
 0x425   :  { %v4051_v15 = vadd.f32 %v4050_v21, %v4049_v44 }
 0x426   :  { %v4052_v45 = vpop.f32.mrf.mxu1 }
 0x428   :  { %v4053_v41 = vpop.f32.mrf.mxu1 }
 0x429   :  { %v4054_v53 = vadd.f32 %v4053_v41, %v4052_v45 }
 0x42a   :  { %v4055_v36 = vpop.f32.mrf.mxu1 }
 0x42c   :  { %v4056_v1 = vpop.f32.mrf.mxu1 }
 0x42d   :  { %v4057_v10 = vadd.f32 %v4056_v1, %v4055_v36 }
 0x42f   :  { %v4090_v30 = vpop.f32.mrf.mxu0 }
 0x431   :  { %v4091_v14 = vpop.f32.mrf.mxu0 }
 0x432   :  { %v4092_v46 = vadd.f32 %v4091_v14, %v4090_v30  ;;  %v3366_v30 = vpop.permute.xlu1 %3365  ;;  %v3381_v14 = vpop.permute.xlu0 %3380 }
 0x433   :  { %v4093_v49 = vpop.f32.mrf.mxu0 }
 0x434   :  { %v3283_v62 = vadd.f32 %v4092_v46, %v4036_v22 }
 0x435   :  { %v4094_v3 = vpop.f32.mrf.mxu0 }
 0x436   :  { %v4095_v31 = vadd.f32 %v4094_v3, %v4093_v49  ;;  %v3376_v51 = vpop.permute.xlu1 %3375  ;;  %v3391_v49 = vpop.permute.xlu0 %3390 }
 0x437   :  { %v4096_v17 = vpop.f32.mrf.mxu0 }
 0x438   :  { %v3288_v61 = vadd.f32 %v4095_v31, %v4039_v63 }
 0x439   :  { %v4097_v34 = vpop.f32.mrf.mxu0 }
 0x43a   :  { %v4098_v57 = vadd.f32 %v4097_v34, %v4096_v17  ;;  %v3386_v17 = vpop.permute.xlu1 %3385 }
 0x43b   :  { %v4099_v0 = vpop.f32.mrf.mxu0 }
 0x43c   :  { %v3293_v6 = vadd.f32 %v4098_v57, %v4042_v50 }
 0x43d   :  { %v4100_v55 = vpop.f32.mrf.mxu0 }
 0x43e   :  { %v4101_v11 = vadd.f32 %v4100_v55, %v4099_v0 }
 0x43f   :  { %v4102_v7 = vpop.f32.mrf.mxu0 }
 0x440   :  { %v3298_v52 = vadd.f32 %v4101_v11, %v4045_v37 }
 0x441   :  { %v4103_v38 = vpop.f32.mrf.mxu0 }
 0x442   :  { %v4104_v59 = vadd.f32 %v4103_v38, %v4102_v7 }
 0x443   :  { %v4105_v20 = vpop.f32.mrf.mxu0 }
 0x444   :  { %v3303_v60 = vadd.f32 %v4104_v59, %v4048_v25 }
 0x445   :  { %v4106_v43 = vpop.f32.mrf.mxu0 }
 0x446   :  { %v4107_v33 = vadd.f32 %v4106_v43, %v4105_v20 }
 0x447   :  { %v4108_v19 = vpop.f32.mrf.mxu0 }
 0x448   :  { %v3308_v32 = vadd.f32 %v4107_v33, %v4051_v15 }
 0x449   :  { %v4109_v40 = vpop.f32.mrf.mxu0 }
 0x44a   :  { %v4110_v26 = vadd.f32 %v4109_v40, %v4108_v19  ;;  %v3401_v40 = vpop.permute.xlu0 %3400 }
 0x44b   :  { %v4111_v16 = vpop.f32.mrf.mxu0 }
 0x44c   :  { %v3313_v24 = vadd.f32 %v4110_v26, %v4054_v53 }
 0x44d   :  { %v4112_v9 = vpop.f32.mrf.mxu0 }
 0x44e   :  { %v4113_v48 = vadd.f32 %v4112_v9, %v4111_v16  ;;  %v3411_v59 = vpop.permute.xlu0 %3410 }
 0x450   :  { %v3318_v18 = vadd.f32 %v4113_v48, %v4057_v10  ;;  %v3396_v10 = vpop.permute.xlu1 %3395 }
 0x452   :  { %4138 = vmatprep.subr.mxu0 %v3318_v18  ;;  %4178 = vmatprep.subr.mxu1 %v3318_v18  ;;  %v3421_v63 = vpop.permute.xlu0 %3420 }
 0x453   :  { %4139 = vmatpush3.msra.mxu0 %v3318_v18  ;;  %4186 = vmatpush3.msra.mxu1 %v3318_v18 }
 0x454   :  { %4140 = vmatprep.subr.mxu0 %v3313_v24  ;;  %4179 = vmatprep.subr.mxu1 %v3313_v24 }
 0x455   :  { %4141 = vmatpush3.msra.mxu0 %v3313_v24  ;;  %4187 = vmatpush3.msra.mxu1 %v3313_v24 }
 0x456   :  { %4142 = vmatprep.subr.mxu0 %v3308_v32  ;;  %4180 = vmatprep.subr.mxu1 %v3308_v32 }
 0x457   :  { %4143 = vmatpush3.msra.mxu0 %v3308_v32  ;;  %4188 = vmatpush3.msra.mxu1 %v3308_v32  ;;  %v3406_v32 = vpop.permute.xlu1 %3405 }
 0x458   :  { %4144 = vmatprep.subr.mxu0 %v3303_v60  ;;  %4181 = vmatprep.subr.mxu1 %v3303_v60 }
 0x459   :  { %4145 = vmatpush3.msra.mxu0 %v3303_v60  ;;  %4189 = vmatpush3.msra.mxu1 %v3303_v60 }
 0x45a   :  { %4146 = vmatprep.subr.mxu0 %v3298_v52  ;;  %4182 = vmatprep.subr.mxu1 %v3298_v52 }
 0x45b   :  { %4147 = vmatpush3.msra.mxu0 %v3298_v52  ;;  %4190 = vmatpush3.msra.mxu1 %v3298_v52 }
 0x45c   :  { %4148 = vmatprep.subr.mxu0 %v3293_v6  ;;  %4183 = vmatprep.subr.mxu1 %v3293_v6 }
 0x45d   :  { %4149 = vmatpush3.msra.mxu0 %v3293_v6  ;;  %4191 = vmatpush3.msra.mxu1 %v3293_v6 }
 0x45e   :  { %4150 = vmatprep.subr.mxu0 %v3288_v61  ;;  %4184 = vmatprep.subr.mxu1 %v3288_v61 }
 0x45f   :  { %4151 = vmatpush3.msra.mxu0 %v3288_v61  ;;  %4192 = vmatpush3.msra.mxu1 %v3288_v61  ;;  %v3416_v61 = vpop.permute.xlu1 %3415 }
 0x460   :  { %4152 = vmatprep.subr.mxu0 %v3283_v62  ;;  %4185 = vmatprep.subr.mxu1 %v3283_v62 }
 0x461   :  { %4153 = vmatpush3.msra.mxu0 %v3283_v62  ;;  %4193 = vmatpush3.msra.mxu1 %v3283_v62 }
 0x462   :  { %4155 = vmatmul.mubr.msk.f32.vlgmr.msra.gmra.mxu0 %vm3433_vm9, %v3322_v8  ;;  %4158 = vmatmul.mubr.msk.f32.vlgmr.msra.gmra.mxu1 %vm3433_vm9, %v3324_v27 }
 0x463   :  { %4160 = vmatprep.mubr.msk.f32.mxu1 %vm3433_vm9, %v3325_v47 }
 0x466   :  { %4161 = vmatmul.mubr.msk.f32.gmra.mxu1 %vm3433_vm9, %v3326_v39 }
 0x467   :  { %4163 = vmatprep.mubr.msk.f32.mxu1 %vm3433_vm9, %v3327_v12 }
 0x46a   :  { %4164 = vmatmul.mubr.msk.f32.gmra.mxu1 %vm3433_vm9, %v3328_v35  ;;  %v3431_v35 = vpop.permute.xlu0 %3430 }
 0x46b   :  { %4166 = vmatprep.mubr.msk.f32.mxu1 %vm3433_vm9, %v3329_v28 }
 0x46e   :  { %4167 = vmatmul.mubr.msk.f32.gmra.mxu1 %vm3433_vm9, %v3330_v29 }
 0x46f   :  { %4169 = vmatprep.mubr.msk.f32.mxu1 %vm3433_vm9, %v3331_v23 }
 0x472   :  { %4170 = vmatmul.mubr.msk.f32.gmra.mxu1 %vm3433_vm9, %v3332_v13  ;;  %v3426_v13 = vpop.permute.xlu1 %3425 }
 0x473   :  { %4172 = vmatprep.mubr.msk.f32.mxu1 %vm3433_vm9, %v3333_v58 }
 0x476   :  { %4173 = vmatmul.mubr.msk.f32.gmra.mxu1 %vm3433_vm9, %v3334_v4 }
 0x477   :  { %4175 = vmatprep.mubr.msk.f32.mxu1 %vm3433_vm9, %v3335_v5 }
 0x47a   :  { %4176 = vmatmul.mubr.msk.f32.gmra.mxu1 %vm3433_vm9, %v3336_v2 }
 0x522   :  { %v4156_v3 = vpop.f32.mrf.mxu0  ;;  %v4159_v44 = vpop.f32.mrf.mxu1 }
 0x523   :  { %v3554_v34 = vadd.f32 %v4156_v3, %v3361_v54  ;;  %v3564_v21 = vadd.f32 %v4159_v44, %v3371_v56 }
 0x524   :  { %v3548_v0 = vpop.f32.mrf.mxu0  ;;  %v3558_v55 = vpop.f32.mrf.mxu1 }
 0x525   :  { %v3628_v45 = vmax.f32 %v3554_v34, 0.0  ;;  %v3630_v7 = vmax.f32 %v3564_v21, 0.0  ;;  %v3549_v38 = vadd.f32 %v3548_v0, %v3356_v42  ;;  %v3559_v41 = vadd.f32 %v3558_v55, %v3366_v30 }
 0x526   :  { %v4162_v20 = vpop.f32.mrf.mxu1 }
 0x527   :  { %3645 = vst.msk [vmem:[%s6975_s9 + $0x8] sm:$0xff] %vm3643_vm10, %v3628_v45  ;;  %3647 = vst.msk [vmem:[%s6975_s9 + $0x18] sm:$0xff] %vm3643_vm10, %v3630_v7  ;;  %v3627_v43 = vmax.f32 %v3549_v38, 0.0  ;;  %v3629_v36 = vmax.f32 %v3559_v41, 0.0  ;;  %v3574_v19 = vadd.f32 %v4162_v20, %v3381_v14 }
 0x528   :  { %v3568_v1 = vpop.f32.mrf.mxu1 }
 0x529   :  { %3644 = vst.msk [vmem:[%s6975_s9] sm:$0xff] %vm3643_vm10, %v3627_v43  ;;  %3646 = vst.msk [vmem:[%s6975_s9 + $0x10] sm:$0xff] %vm3643_vm10, %v3629_v36  ;;  %v3632_v16 = vmax.f32 %v3574_v19, 0.0  ;;  %v3569_v9 = vadd.f32 %v3568_v1, %v3376_v51 }
 0x52a   :  { %v4165_v26 = vpop.f32.mrf.mxu1 }
 0x52b   :  { %3649 = vst.msk [vmem:[%s6975_s9 + $0x28] sm:$0xff] %vm3643_vm10, %v3632_v16  ;;  %v3631_v48 = vmax.f32 %v3569_v9, 0.0  ;;  %v3584_v53 = vadd.f32 %v4165_v26, %v3391_v49 }
 0x52c   :  { %v3578_v33 = vpop.f32.mrf.mxu1 }
 0x52d   :  { %3648 = vst.msk [vmem:[%s6975_s9 + $0x20] sm:$0xff] %vm3643_vm10, %v3631_v48  ;;  %v3634_v18 = vmax.f32 %v3584_v53, 0.0  ;;  %v3579_v15 = vadd.f32 %v3578_v33, %v3386_v17 }
 0x52e   :  { %v4168_v24 = vpop.f32.mrf.mxu1 }
 0x52f   :  { %3651 = vst.msk [vmem:[%s6975_s9 + $0x38] sm:$0xff] %vm3643_vm10, %v3634_v18  ;;  %v3633_v25 = vmax.f32 %v3579_v15, 0.0  ;;  %v3594_v11 = vadd.f32 %v4168_v24, %v3401_v40 }
 0x530   :  { %v3588_v37 = vpop.f32.mrf.mxu1 }
 0x531   :  { %3650 = vst.msk [vmem:[%s6975_s9 + $0x30] sm:$0xff] %vm3643_vm10, %v3633_v25  ;;  %v3636_v57 = vmax.f32 %v3594_v11, 0.0  ;;  %v3589_v60 = vadd.f32 %v3588_v37, %v3396_v10 }
 0x532   :  { %v4171_v50 = vpop.f32.mrf.mxu1 }
 0x533   :  { %3653 = vst.msk [vmem:[%s6975_s9 + $0x48] sm:$0xff] %vm3643_vm10, %v3636_v57  ;;  %v3635_v31 = vmax.f32 %v3589_v60, 0.0  ;;  %v3604_v52 = vadd.f32 %v4171_v50, %v3411_v59 }
 0x534   :  { %v3598_v46 = vpop.f32.mrf.mxu1 }
 0x535   :  { %3652 = vst.msk [vmem:[%s6975_s9 + $0x40] sm:$0xff] %vm3643_vm10, %v3635_v31  ;;  %v3638_v6 = vmax.f32 %v3604_v52, 0.0  ;;  %v3599_v22 = vadd.f32 %v3598_v46, %v3406_v32 }
 0x536   :  { %v4174_v62 = vpop.f32.mrf.mxu1 }
 0x537   :  { %3655 = vst.msk [vmem:[%s6975_s9 + $0x58] sm:$0xff] %vm3643_vm10, %v3638_v6  ;;  %v3637_v8 = vmax.f32 %v3599_v22, 0.0  ;;  %v3614_v27 = vadd.f32 %v4174_v62, %v3421_v63 }
 0x538   :  { %v3608_v47 = vpop.f32.mrf.mxu1 }
 0x539   :  { %3654 = vst.msk [vmem:[%s6975_s9 + $0x50] sm:$0xff] %vm3643_vm10, %v3637_v8  ;;  %v3640_v39 = vmax.f32 %v3614_v27, 0.0  ;;  %v3609_v12 = vadd.f32 %v3608_v47, %v3416_v61 }
 0x53a   :  { %v4177_v28 = vpop.f32.mrf.mxu1 }
 0x53b   :  { %3657 = vst.msk [vmem:[%s6975_s9 + $0x68] sm:$0xff] %vm3643_vm10, %v3640_v39  ;;  %v3639_v29 = vmax.f32 %v3609_v12, 0.0  ;;  %v3624_v23 = vadd.f32 %v4177_v28, %v3431_v35 }
 0x53c   :  { %v3618_v58 = vpop.f32.mrf.mxu1 }
 0x53d   :  { %3656 = vst.msk [vmem:[%s6975_s9 + $0x60] sm:$0xff] %vm3643_vm10, %v3639_v29  ;;  %v3642_v4 = vmax.f32 %v3624_v23, 0.0  ;;  %v3619_v5 = vadd.f32 %v3618_v58, %v3426_v13 }
 0x53f   :  { %3659 = vst.msk [vmem:[%s6975_s9 + $0x78] sm:$0xff] %vm3643_vm10, %v3642_v4  ;;  %v3641_v2 = vmax.f32 %v3619_v5, 0.0 }
 0x541   :  { %3658 = vst.msk [vmem:[%s6975_s9 + $0x70] sm:$0xff] %vm3643_vm10, %v3641_v2 }

</bundles_post_ra>
